<compile_context>
chip_gen: v7x
topology: tpu7x:2x2x1
jax: 0.10.0
libtpu: 0.0.40
codegen_flags: <defaults>
</compile_context>

<pallas_src>
from functools import partial

import numpy as np

import jax
import jax.numpy as jnp
from jax import lax
from jax.experimental import pallas as pl
from jax.experimental.pallas import tpu as pltpu


# ----------------------------- Pallas kernel -------------------------------

def _net_kernel(x_ref, w1_ref, w2_ref, wfc_ref, bias_ref, o_ref):
    """Whole Net forward for a batch tile.

    x_ref   : [bt, 7, 112]   pixels, lane = (row mod 4)*28 + col
    w1_ref  : [140, 240]     conv1 block-matmul weight (bf16)
    w2_ref  : [5, 120, 160]  conv2 per-tap weights (bf16)
    wfc_ref : [80, 40]       fc weight, per-pool-row blocks of 10 logits (bf16)
    bias_ref: [3, 256]       packed biases: row0=conv1(240) row1=conv2(160) row2=fc(10)
    o_ref   : [bt, 128]      log_softmax, lane-padded to 128
    """
    bt = x_ref.shape[0]
    x = x_ref[...]                                            # [bt, 7, 112] f32
    # class c = (image row mod 4) lives at lanes [c*28, (c+1)*28)
    cls = [x[:, :, c * 28:(c + 1) * 28] for c in range(4)]    # 4 x [bt, 7, 28]

    # ---- conv1 (1->10, k5): one fused MXU matmul over all 25 taps ----------
    # Output rows per image (24) ordered by (row mod 4) classes [0,2,1,3],
    # 6 rows each, so maxpool-over-height = max of the two 12-row halves and
    # the pooled rows come out parity-split (needed by conv2's slicing).
    tap_blocks = []
    for di in range(5):
        rows = []
        for c in (0, 2, 1, 3):
            sc = (c + di) % 4
            off = (c + di) // 4
            rows.append(cls[sc][:, off:off + 6, :])           # [bt, 6, 28]
        tap_blocks.append(jnp.concatenate(rows, axis=1))      # [bt, 24, 28]
    lhs1 = jnp.concatenate(tap_blocks, axis=2)                # [bt, 24, 140]
    acc1 = jnp.dot(lhs1.reshape(bt * 24, 140).astype(jnp.bfloat16),
                   w1_ref[...],
                   preferred_element_type=jnp.float32)        # [bt*24, 240]
    acc1 = acc1 + bias_ref[0:1, :240]
    a1 = acc1.reshape(bt, 24, 240)
    p1 = jnp.maximum(a1[:, :12, :], a1[:, 12:, :])            # maxpool rows
    p1 = jnp.maximum(p1[:, :, :120], p1[:, :, 120:])          # maxpool cols
    p1 = jnp.maximum(p1, 0.0)                                 # relu [bt,12,120]

    # ---- conv2 (10->20, k5): 5 accumulating per-tap dots -------------------
    # Avoids materializing a 600-lane LHS: each tap's LHS is just a sublane
    # concat of two [bt,4,120] slices of p1 (lane width < 128, no lane shifts).
    acc2 = None
    for di in range(5):
        rows = []
        for pm in (0, 1):
            ps = (pm + di) % 2
            a = (pm + di) // 2
            start = ps * 6 + a
            rows.append(p1[:, start:start + 4, :])            # [bt, 4, 120]
        lhs = jnp.concatenate(rows, axis=1)                   # [bt, 8, 120]
        d = jnp.dot(lhs.reshape(bt * 8, 120).astype(jnp.bfloat16),
                    w2_ref[di],
                    preferred_element_type=jnp.float32)       # [bt*8, 160]
        acc2 = d if acc2 is None else acc2 + d
    acc2 = acc2 + bias_ref[1:2, :160]
    a2 = acc2.reshape(bt, 8, 160)
    p2 = jnp.maximum(a2[:, :4, :], a2[:, 4:, :])              # maxpool rows
    p2 = jnp.maximum(p2[:, :, :80], p2[:, :, 80:])            # maxpool cols
    p2 = jnp.maximum(p2, 0.0)                                 # relu [bt,4,80]

    # ---- fc (320 -> 10) + log_softmax --------------------------------------
    # Pad the 4 pooled rows to 8 so the (bt*8, 80) reshape stays tile-aligned;
    # the padded rows are zeros and their fc contribution is never read.
    p2p = jnp.concatenate([p2, jnp.zeros((bt, 4, 80), jnp.float32)], axis=1)
    z = jnp.dot(p2p.reshape(bt * 8, 80).astype(jnp.bfloat16), wfc_ref[...],
                preferred_element_type=jnp.float32)           # [bt*8, 40]
    z3 = z.reshape(bt, 8, 40)
    logits = bias_ref[2:3, :10] + z3[:, 0:1, 0:10]            # [bt, 1, 10]
    for g in range(1, 4):
        logits = logits + z3[:, g:g + 1, g * 10:(g + 1) * 10]

    mx = jnp.max(logits, axis=-1, keepdims=True)
    sh = logits - mx
    lse = jnp.log(jnp.sum(jnp.exp(sh), axis=-1, keepdims=True))
    out = sh - lse                                            # [bt, 1, 10]
    out = jnp.concatenate(
        [out, jnp.zeros((bt, 1, 118), jnp.float32)], axis=-1)  # [bt, 1, 128]
    o_ref[...] = out.reshape(bt, 128)                         # dense 2-D store


# --------------------- wrapper-side weight re-packing -----------------------

def _build_conv1_blocks(w1, b1):
    """w1 [10,1,5,5] -> [140, 240] bf16 block-matmul weight, bias -> (240,) f32.

    Output lane l1 = pv*120 + t*10 + o with output column v = 2t + pv, so the
    width maxpool is a max of the two 120-lane halves.
    """
    l1 = np.arange(240)
    pv, rem = l1 // 120, l1 % 120
    t, o = rem // 10, rem % 10
    v = 2 * t + pv
    di = np.arange(5)[:, None, None]
    w = np.arange(28)[None, :, None]
    dj = w - v[None, None, :]
    valid = (dj >= 0) & (dj <= 4)
    djc = np.clip(dj, 0, 4)
    shape = (5, 28, 240)
    blk = jnp.where(
        jnp.asarray(np.broadcast_to(valid, shape)),
        w1[np.broadcast_to(o[None, None, :], shape), 0,
           np.broadcast_to(di, shape), np.broadcast_to(djc, shape)],
        0.0)
    blk = blk.reshape(140, 240).astype(jnp.bfloat16)
    bias = b1[o].astype(jnp.float32)                  # (240,)
    return blk, bias


def _build_conv2_blocks(w2, b2):
    """w2 [20,10,5,5] -> [5, 120, 160] bf16 per-tap weights, bias -> (160,) f32.

    Input lane = t*10 + o (p1 layout); output lane l2 = pn*80 + h*20 + q with
    output column n = 2h + pn, so the width maxpool is a max of lane halves.
    """
    l2 = np.arange(160)
    pn, rem = l2 // 80, l2 % 80
    h, q = rem // 20, rem % 20
    n = 2 * h + pn
    di = np.arange(5)[:, None, None]
    f = np.arange(120)[None, :, None]
    t, o = f // 10, f % 10
    dj = t - n[None, None, :]
    valid = (dj >= 0) & (dj <= 4)
    djc = np.clip(dj, 0, 4)
    shape = (5, 120, 160)
    blk = jnp.where(
        jnp.asarray(np.broadcast_to(valid, shape)),
        w2[np.broadcast_to(q[None, None, :], shape),
           np.broadcast_to(o, shape),
           np.broadcast_to(di, shape),
           np.broadcast_to(djc, shape)],
        0.0)
    blk = blk.astype(jnp.bfloat16)                    # (5, 120, 160)
    bias = b2[q].astype(jnp.float32)                  # (160,)
    return blk, bias


def _build_fc_block(wfc):
    """wfc [10, 320] -> [80, 40] bf16: column block g holds the 10 logits'
    contribution of pooled row g, absorbing PyTorch's NCHW flatten order
    (flat = q*16 + g*4 + h) into a weight permutation."""
    f = np.arange(80)[:, None]
    col = np.arange(40)[None, :]
    h, q = f // 20, f % 20
    g, z = col // 10, col % 10
    flat = q * 16 + g * 4 + h
    z_b = np.broadcast_to(z, (80, 40))
    return wfc[z_b, flat].astype(jnp.bfloat16)


def _round_up(x, m):
    return (x + m - 1) // m * m


def _cdiv(a, b):
    return (a + b - 1) // b


# ------------------------------- forward -----------------------------------

@partial(jax.jit, static_argnames=("batch_tile",))
def net_forward(x_nchw, params, batch_tile=None):
    n = x_nchw.shape[0]
    x = x_nchw.reshape(n, 784).astype(jnp.float32)

    if batch_tile is None:
        npad8 = _round_up(max(n, 1), 8)
        if npad8 <= 8:
            bt = npad8
        else:
            # >= 2 grid steps whenever possible (both v7x TCs), <= 256 rows/step
            steps = max(2, _cdiv(npad8, 256))
            bt = _round_up(_cdiv(npad8, steps), 8)
    else:
        bt = batch_tile
        assert bt % 8 == 0, "batch_tile must be a multiple of 8"
    npad = _round_up(n, bt)
    if npad != n:
        x = jnp.concatenate([x, jnp.zeros((npad - n, 784), jnp.float32)], 0)

    # Lane-dense input: x7[b, r, c*28 + col] = x[b, 4r + c, col]
    # (pure reshape of the contiguous 784 pixels -- no data movement).
    x7 = x.reshape(npad, 7, 112)

    w1blk, b1v = _build_conv1_blocks(params["w1"], params["b1"])
    w2blk, b2v = _build_conv2_blocks(params["w2"], params["b2"])
    wfc_blk = _build_fc_block(params["wfc"])

    # Pack all biases into one f32 block: one BlockSpec / DMA instead of three.
    bias_pack = jnp.zeros((3, 256), jnp.float32)
    bias_pack = bias_pack.at[0, :240].set(b1v)
    bias_pack = bias_pack.at[1, :160].set(b2v)
    bias_pack = bias_pack.at[2, :10].set(params["bfc"].astype(jnp.float32))

    grid = (npad // bt,)
    out = pl.pallas_call(
        _net_kernel,
        out_shape=jax.ShapeDtypeStruct((npad, 128), jnp.float32),
        grid_spec=pltpu.PrefetchScalarGridSpec(
            num_scalar_prefetch=0,
            grid=grid,
            in_specs=[
                pl.BlockSpec((bt, 7, 112), lambda i: (i, 0, 0)),
                pl.BlockSpec((140, 240), lambda i: (0, 0)),
                pl.BlockSpec((5, 120, 160), lambda i: (0, 0, 0)),
                pl.BlockSpec((80, 40), lambda i: (0, 0)),
                pl.BlockSpec((3, 256), lambda i: (0, 0)),
            ],
            out_specs=pl.BlockSpec((bt, 128), lambda i: (i, 0)),
        ),
        compiler_params=pltpu.CompilerParams(
            dimension_semantics=("parallel",),
            vmem_limit_bytes=48 * 1024 * 1024,
        ),
    )(x7, w1blk, w2blk, wfc_blk, bias_pack)

    return out[:n, :10]


# --------------------------- reference & init -------------------------------

def net_forward_ref(x, params):
    """Pure-JAX (XLA) reference of the PyTorch Net forward."""
    y = lax.conv_general_dilated(
        x.astype(jnp.float32), params["w1"], (1, 1), "VALID",
        dimension_numbers=("NCHW", "OIHW", "NCHW"))
    y = y + params["b1"].reshape(1, 10, 1, 1)
    y = lax.reduce_window(y, -jnp.inf, lax.max, (1, 1, 2, 2), (1, 1, 2, 2),
                          "VALID")
    y = jnp.maximum(y, 0.0)
    y = lax.conv_general_dilated(
        y, params["w2"], (1, 1), "VALID",
        dimension_numbers=("NCHW", "OIHW", "NCHW"))
    y = y + params["b2"].reshape(1, 20, 1, 1)
    y = lax.reduce_window(y, -jnp.inf, lax.max, (1, 1, 2, 2), (1, 1, 2, 2),
                          "VALID")
    y = jnp.maximum(y, 0.0)
    feat = y.reshape(x.shape[0], -1)
    logits = feat @ params["wfc"].T + params["bfc"]
    return jax.nn.log_softmax(logits, axis=-1)


def init_params(key):
    """Deterministic init mimicking PyTorch's default uniform(+-1/sqrt(fan_in))."""
    ks = jax.random.split(key, 6)

    def u(k, shape, fan_in):
        b = 1.0 / (fan_in ** 0.5)
        return jax.random.uniform(k, shape, jnp.float32, -b, b)

    return {
        "w1": u(ks[0], (10, 1, 5, 5), 1 * 5 * 5),
        "b1": u(ks[1], (10,), 1 * 5 * 5),
        "w2": u(ks[2], (20, 10, 5, 5), 10 * 5 * 5),
        "b2": u(ks[3], (20,), 10 * 5 * 5),
        "wfc": u(ks[4], (10, 320), 320),
        "bfc": u(ks[5], (10,), 320),
    }


def _check(x, params, tol):
    out = net_forward(x, params)
    jax.block_until_ready(out)
    n = x.shape[0]
    assert out.shape == (n, 10)
    # log_softmax rows must exponentiate-sum to 1
    assert jnp.allclose(jnp.sum(jnp.exp(out), axis=-1), 1.0, atol=1e-3)
    ref = net_forward_ref(x, params)
    max_err = float(jnp.max(jnp.abs(out - ref)))
    assert max_err < tol, f"mismatch vs reference: max|diff|={max_err}"
    return out


if __name__ == "__main__":
    key = jax.random.PRNGKey(0)
    pkey, xkey, xkey2 = jax.random.split(key, 3)
    params = init_params(pkey)
    # MNIST geometry is forced by fc(320, 10): input must be [N, 1, 28, 28].
    # bf16 MXU operands with f32 accumulation -> 5e-2 log-prob tolerance.
    x_small = jax.random.normal(xkey, (2, 1, 28, 28), dtype=jnp.float32)
    _check(x_small, params, tol=5e-2)            # single-step grid path

    x_big = jax.random.normal(xkey2, (24, 1, 28, 28), dtype=jnp.float32)
    _check(x_big, params, tol=5e-2)              # multi-step grid + batch padding

    print("KERNEL_OK")
</pallas_src>

<mosaic_0001>
module attributes {stable_mosaic.version = 11 : i64} {
  func.func @_net_kernel(%arg0: i32, %arg1: memref<8x7x112xf32, #tpu.memory_space<vmem>>, %arg2: memref<140x240xbf16, #tpu.memory_space<vmem>>, %arg3: memref<5x120x160xbf16, #tpu.memory_space<vmem>>, %arg4: memref<80x40xbf16, #tpu.memory_space<vmem>>, %arg5: memref<3x256xf32, #tpu.memory_space<vmem>>, %arg6: memref<8x128xf32, #tpu.memory_space<vmem>>) attributes {dimension_semantics = [#tpu.dimension_semantics<parallel>], iteration_bounds = array<i64: 1>, scalar_prefetch = 0 : i64, scratch_operands = 0 : i64, tpu.core_type = #tpu.core_type<tc>, window_params = [{transform_indices = @transform_0, window_bounds = array<i64: 8, 7, 112>}, {pipeline_mode = #tpu.pipeline_mode<synchronous>, transform_indices = @transform_1, window_bounds = array<i64: 140, 240>}, {pipeline_mode = #tpu.pipeline_mode<synchronous>, transform_indices = @transform_2, window_bounds = array<i64: 5, 120, 160>}, {pipeline_mode = #tpu.pipeline_mode<synchronous>, transform_indices = @transform_3, window_bounds = array<i64: 80, 40>}, {pipeline_mode = #tpu.pipeline_mode<synchronous>, transform_indices = @transform_4, window_bounds = array<i64: 3, 256>}, {transform_indices = @transform_5, window_bounds = array<i64: 8, 128>}]} {
    %c0 = arith.constant 0 : index
    %c0_0 = arith.constant 0 : index
    %c0_1 = arith.constant 0 : index
    %0 = vector.load %arg1[%c0, %c0_0, %c0_1] : memref<8x7x112xf32, #tpu.memory_space<vmem>>, vector<8x7x112xf32>
    %1 = vector.extract_strided_slice %0 {offsets = [0, 0, 0], sizes = [8, 7, 28], strides = [1, 1, 1]} : vector<8x7x112xf32> to vector<8x7x28xf32>
    %2 = vector.extract_strided_slice %0 {offsets = [0, 0, 28], sizes = [8, 7, 28], strides = [1, 1, 1]} : vector<8x7x112xf32> to vector<8x7x28xf32>
    %3 = vector.extract_strided_slice %0 {offsets = [0, 0, 56], sizes = [8, 7, 28], strides = [1, 1, 1]} : vector<8x7x112xf32> to vector<8x7x28xf32>
    %4 = vector.extract_strided_slice %0 {offsets = [0, 0, 84], sizes = [8, 7, 28], strides = [1, 1, 1]} : vector<8x7x112xf32> to vector<8x7x28xf32>
    %5 = vector.extract_strided_slice %1 {offsets = [0, 0, 0], sizes = [8, 6, 28], strides = [1, 1, 1]} : vector<8x7x28xf32> to vector<8x6x28xf32>
    %6 = vector.extract_strided_slice %3 {offsets = [0, 0, 0], sizes = [8, 6, 28], strides = [1, 1, 1]} : vector<8x7x28xf32> to vector<8x6x28xf32>
    %7 = vector.extract_strided_slice %2 {offsets = [0, 0, 0], sizes = [8, 6, 28], strides = [1, 1, 1]} : vector<8x7x28xf32> to vector<8x6x28xf32>
    %8 = vector.extract_strided_slice %4 {offsets = [0, 0, 0], sizes = [8, 6, 28], strides = [1, 1, 1]} : vector<8x7x28xf32> to vector<8x6x28xf32>
    %9 = tpu.concatenate %5, %6, %7, %8 in 1 : vector<8x6x28xf32>, vector<8x6x28xf32>, vector<8x6x28xf32>, vector<8x6x28xf32> -> vector<8x24x28xf32>
    %10 = vector.extract_strided_slice %2 {offsets = [0, 0, 0], sizes = [8, 6, 28], strides = [1, 1, 1]} : vector<8x7x28xf32> to vector<8x6x28xf32>
    %11 = vector.extract_strided_slice %4 {offsets = [0, 0, 0], sizes = [8, 6, 28], strides = [1, 1, 1]} : vector<8x7x28xf32> to vector<8x6x28xf32>
    %12 = vector.extract_strided_slice %3 {offsets = [0, 0, 0], sizes = [8, 6, 28], strides = [1, 1, 1]} : vector<8x7x28xf32> to vector<8x6x28xf32>
    %13 = vector.extract_strided_slice %1 {offsets = [0, 1, 0], sizes = [8, 6, 28], strides = [1, 1, 1]} : vector<8x7x28xf32> to vector<8x6x28xf32>
    %14 = tpu.concatenate %10, %11, %12, %13 in 1 : vector<8x6x28xf32>, vector<8x6x28xf32>, vector<8x6x28xf32>, vector<8x6x28xf32> -> vector<8x24x28xf32>
    %15 = vector.extract_strided_slice %3 {offsets = [0, 0, 0], sizes = [8, 6, 28], strides = [1, 1, 1]} : vector<8x7x28xf32> to vector<8x6x28xf32>
    %16 = vector.extract_strided_slice %1 {offsets = [0, 1, 0], sizes = [8, 6, 28], strides = [1, 1, 1]} : vector<8x7x28xf32> to vector<8x6x28xf32>
    %17 = vector.extract_strided_slice %4 {offsets = [0, 0, 0], sizes = [8, 6, 28], strides = [1, 1, 1]} : vector<8x7x28xf32> to vector<8x6x28xf32>
    %18 = vector.extract_strided_slice %2 {offsets = [0, 1, 0], sizes = [8, 6, 28], strides = [1, 1, 1]} : vector<8x7x28xf32> to vector<8x6x28xf32>
    %19 = tpu.concatenate %15, %16, %17, %18 in 1 : vector<8x6x28xf32>, vector<8x6x28xf32>, vector<8x6x28xf32>, vector<8x6x28xf32> -> vector<8x24x28xf32>
    %20 = vector.extract_strided_slice %4 {offsets = [0, 0, 0], sizes = [8, 6, 28], strides = [1, 1, 1]} : vector<8x7x28xf32> to vector<8x6x28xf32>
    %21 = vector.extract_strided_slice %2 {offsets = [0, 1, 0], sizes = [8, 6, 28], strides = [1, 1, 1]} : vector<8x7x28xf32> to vector<8x6x28xf32>
    %22 = vector.extract_strided_slice %1 {offsets = [0, 1, 0], sizes = [8, 6, 28], strides = [1, 1, 1]} : vector<8x7x28xf32> to vector<8x6x28xf32>
    %23 = vector.extract_strided_slice %3 {offsets = [0, 1, 0], sizes = [8, 6, 28], strides = [1, 1, 1]} : vector<8x7x28xf32> to vector<8x6x28xf32>
    %24 = tpu.concatenate %20, %21, %22, %23 in 1 : vector<8x6x28xf32>, vector<8x6x28xf32>, vector<8x6x28xf32>, vector<8x6x28xf32> -> vector<8x24x28xf32>
    %25 = vector.extract_strided_slice %1 {offsets = [0, 1, 0], sizes = [8, 6, 28], strides = [1, 1, 1]} : vector<8x7x28xf32> to vector<8x6x28xf32>
    %26 = vector.extract_strided_slice %3 {offsets = [0, 1, 0], sizes = [8, 6, 28], strides = [1, 1, 1]} : vector<8x7x28xf32> to vector<8x6x28xf32>
    %27 = vector.extract_strided_slice %2 {offsets = [0, 1, 0], sizes = [8, 6, 28], strides = [1, 1, 1]} : vector<8x7x28xf32> to vector<8x6x28xf32>
    %28 = vector.extract_strided_slice %4 {offsets = [0, 1, 0], sizes = [8, 6, 28], strides = [1, 1, 1]} : vector<8x7x28xf32> to vector<8x6x28xf32>
    %29 = tpu.concatenate %25, %26, %27, %28 in 1 : vector<8x6x28xf32>, vector<8x6x28xf32>, vector<8x6x28xf32>, vector<8x6x28xf32> -> vector<8x24x28xf32>
    %30 = tpu.concatenate %9, %14, %19, %24, %29 in 2 : vector<8x24x28xf32>, vector<8x24x28xf32>, vector<8x24x28xf32>, vector<8x24x28xf32>, vector<8x24x28xf32> -> vector<8x24x140xf32>
    %31 = vector.shape_cast %30 : vector<8x24x140xf32> to vector<192x140xf32>
    %32 = arith.truncf %31 : vector<192x140xf32> to vector<192x140xbf16>
    %c0_2 = arith.constant 0 : index
    %c0_3 = arith.constant 0 : index
    %33 = vector.load %arg2[%c0_2, %c0_3] : memref<140x240xbf16, #tpu.memory_space<vmem>>, vector<140x240xbf16>
    %cst = arith.constant dense<0.000000e+00> : vector<192x240xf32>
    %34 = tpu.matmul %32, %33, %cst {dimension_numbers = #tpu.dot_dimension_numbers<[1], [0], [0], [1], [0, 0, 1, 1], [], []>} : vector<192x140xbf16>, vector<140x240xbf16>, vector<192x240xf32> -> vector<192x240xf32>
    %c0_4 = arith.constant 0 : index
    %c0_5 = arith.constant 0 : index
    %35 = vector.load %arg5[%c0_4, %c0_5] : memref<3x256xf32, #tpu.memory_space<vmem>>, vector<1x240xf32>
    %36 = vector.broadcast %35 : vector<1x240xf32> to vector<192x240xf32>
    %37 = arith.addf %34, %36 : vector<192x240xf32>
    %38 = vector.shape_cast %37 : vector<192x240xf32> to vector<8x24x240xf32>
    %39 = vector.extract_strided_slice %38 {offsets = [0, 0, 0], sizes = [8, 12, 240], strides = [1, 1, 1]} : vector<8x24x240xf32> to vector<8x12x240xf32>
    %40 = vector.extract_strided_slice %38 {offsets = [0, 12, 0], sizes = [8, 12, 240], strides = [1, 1, 1]} : vector<8x24x240xf32> to vector<8x12x240xf32>
    %41 = arith.maximumf %39, %40 : vector<8x12x240xf32>
    %42 = vector.extract_strided_slice %41 {offsets = [0, 0, 0], sizes = [8, 12, 120], strides = [1, 1, 1]} : vector<8x12x240xf32> to vector<8x12x120xf32>
    %43 = vector.extract_strided_slice %41 {offsets = [0, 0, 120], sizes = [8, 12, 120], strides = [1, 1, 1]} : vector<8x12x240xf32> to vector<8x12x120xf32>
    %44 = arith.maximumf %42, %43 : vector<8x12x120xf32>
    %cst_6 = arith.constant 0.000000e+00 : f32
    %45 = vector.broadcast %cst_6 : f32 to vector<8x12x120xf32>
    %46 = arith.maximumf %44, %45 : vector<8x12x120xf32>
    %47 = vector.extract_strided_slice %46 {offsets = [0, 0, 0], sizes = [8, 4, 120], strides = [1, 1, 1]} : vector<8x12x120xf32> to vector<8x4x120xf32>
    %48 = vector.extract_strided_slice %46 {offsets = [0, 6, 0], sizes = [8, 4, 120], strides = [1, 1, 1]} : vector<8x12x120xf32> to vector<8x4x120xf32>
    %49 = tpu.concatenate %47, %48 in 1 : vector<8x4x120xf32>, vector<8x4x120xf32> -> vector<8x8x120xf32>
    %50 = vector.shape_cast %49 : vector<8x8x120xf32> to vector<64x120xf32>
    %51 = arith.truncf %50 : vector<64x120xf32> to vector<64x120xbf16>
    %c0_7 = arith.constant 0 : index
    %c0_8 = arith.constant 0 : index
    %c0_9 = arith.constant 0 : index
    %52 = vector.load %arg3[%c0_7, %c0_8, %c0_9] : memref<5x120x160xbf16, #tpu.memory_space<vmem>>, vector<1x120x160xbf16>
    %53 = vector.shape_cast %52 : vector<1x120x160xbf16> to vector<120x160xbf16>
    %cst_10 = arith.constant dense<0.000000e+00> : vector<64x160xf32>
    %54 = tpu.matmul %51, %53, %cst_10 {dimension_numbers = #tpu.dot_dimension_numbers<[1], [0], [0], [1], [0, 0, 1, 1], [], []>} : vector<64x120xbf16>, vector<120x160xbf16>, vector<64x160xf32> -> vector<64x160xf32>
    %55 = vector.extract_strided_slice %46 {offsets = [0, 6, 0], sizes = [8, 4, 120], strides = [1, 1, 1]} : vector<8x12x120xf32> to vector<8x4x120xf32>
    %56 = vector.extract_strided_slice %46 {offsets = [0, 1, 0], sizes = [8, 4, 120], strides = [1, 1, 1]} : vector<8x12x120xf32> to vector<8x4x120xf32>
    %57 = tpu.concatenate %55, %56 in 1 : vector<8x4x120xf32>, vector<8x4x120xf32> -> vector<8x8x120xf32>
    %58 = vector.shape_cast %57 : vector<8x8x120xf32> to vector<64x120xf32>
    %59 = arith.truncf %58 : vector<64x120xf32> to vector<64x120xbf16>
    %c1 = arith.constant 1 : index
    %c0_11 = arith.constant 0 : index
    %c0_12 = arith.constant 0 : index
    %60 = vector.load %arg3[%c1, %c0_11, %c0_12] : memref<5x120x160xbf16, #tpu.memory_space<vmem>>, vector<1x120x160xbf16>
    %61 = vector.shape_cast %60 : vector<1x120x160xbf16> to vector<120x160xbf16>
    %cst_13 = arith.constant dense<0.000000e+00> : vector<64x160xf32>
    %62 = tpu.matmul %59, %61, %cst_13 {dimension_numbers = #tpu.dot_dimension_numbers<[1], [0], [0], [1], [0, 0, 1, 1], [], []>} : vector<64x120xbf16>, vector<120x160xbf16>, vector<64x160xf32> -> vector<64x160xf32>
    %63 = arith.addf %54, %62 : vector<64x160xf32>
    %64 = vector.extract_strided_slice %46 {offsets = [0, 1, 0], sizes = [8, 4, 120], strides = [1, 1, 1]} : vector<8x12x120xf32> to vector<8x4x120xf32>
    %65 = vector.extract_strided_slice %46 {offsets = [0, 7, 0], sizes = [8, 4, 120], strides = [1, 1, 1]} : vector<8x12x120xf32> to vector<8x4x120xf32>
    %66 = tpu.concatenate %64, %65 in 1 : vector<8x4x120xf32>, vector<8x4x120xf32> -> vector<8x8x120xf32>
    %67 = vector.shape_cast %66 : vector<8x8x120xf32> to vector<64x120xf32>
    %68 = arith.truncf %67 : vector<64x120xf32> to vector<64x120xbf16>
    %c2 = arith.constant 2 : index
    %c0_14 = arith.constant 0 : index
    %c0_15 = arith.constant 0 : index
    %69 = vector.load %arg3[%c2, %c0_14, %c0_15] : memref<5x120x160xbf16, #tpu.memory_space<vmem>>, vector<1x120x160xbf16>
    %70 = vector.shape_cast %69 : vector<1x120x160xbf16> to vector<120x160xbf16>
    %cst_16 = arith.constant dense<0.000000e+00> : vector<64x160xf32>
    %71 = tpu.matmul %68, %70, %cst_16 {dimension_numbers = #tpu.dot_dimension_numbers<[1], [0], [0], [1], [0, 0, 1, 1], [], []>} : vector<64x120xbf16>, vector<120x160xbf16>, vector<64x160xf32> -> vector<64x160xf32>
    %72 = arith.addf %63, %71 : vector<64x160xf32>
    %73 = vector.extract_strided_slice %46 {offsets = [0, 7, 0], sizes = [8, 4, 120], strides = [1, 1, 1]} : vector<8x12x120xf32> to vector<8x4x120xf32>
    %74 = vector.extract_strided_slice %46 {offsets = [0, 2, 0], sizes = [8, 4, 120], strides = [1, 1, 1]} : vector<8x12x120xf32> to vector<8x4x120xf32>
    %75 = tpu.concatenate %73, %74 in 1 : vector<8x4x120xf32>, vector<8x4x120xf32> -> vector<8x8x120xf32>
    %76 = vector.shape_cast %75 : vector<8x8x120xf32> to vector<64x120xf32>
    %77 = arith.truncf %76 : vector<64x120xf32> to vector<64x120xbf16>
    %c3 = arith.constant 3 : index
    %c0_17 = arith.constant 0 : index
    %c0_18 = arith.constant 0 : index
    %78 = vector.load %arg3[%c3, %c0_17, %c0_18] : memref<5x120x160xbf16, #tpu.memory_space<vmem>>, vector<1x120x160xbf16>
    %79 = vector.shape_cast %78 : vector<1x120x160xbf16> to vector<120x160xbf16>
    %cst_19 = arith.constant dense<0.000000e+00> : vector<64x160xf32>
    %80 = tpu.matmul %77, %79, %cst_19 {dimension_numbers = #tpu.dot_dimension_numbers<[1], [0], [0], [1], [0, 0, 1, 1], [], []>} : vector<64x120xbf16>, vector<120x160xbf16>, vector<64x160xf32> -> vector<64x160xf32>
    %81 = arith.addf %72, %80 : vector<64x160xf32>
    %82 = vector.extract_strided_slice %46 {offsets = [0, 2, 0], sizes = [8, 4, 120], strides = [1, 1, 1]} : vector<8x12x120xf32> to vector<8x4x120xf32>
    %83 = vector.extract_strided_slice %46 {offsets = [0, 8, 0], sizes = [8, 4, 120], strides = [1, 1, 1]} : vector<8x12x120xf32> to vector<8x4x120xf32>
    %84 = tpu.concatenate %82, %83 in 1 : vector<8x4x120xf32>, vector<8x4x120xf32> -> vector<8x8x120xf32>
    %85 = vector.shape_cast %84 : vector<8x8x120xf32> to vector<64x120xf32>
    %86 = arith.truncf %85 : vector<64x120xf32> to vector<64x120xbf16>
    %c4 = arith.constant 4 : index
    %c0_20 = arith.constant 0 : index
    %c0_21 = arith.constant 0 : index
    %87 = vector.load %arg3[%c4, %c0_20, %c0_21] : memref<5x120x160xbf16, #tpu.memory_space<vmem>>, vector<1x120x160xbf16>
    %88 = vector.shape_cast %87 : vector<1x120x160xbf16> to vector<120x160xbf16>
    %cst_22 = arith.constant dense<0.000000e+00> : vector<64x160xf32>
    %89 = tpu.matmul %86, %88, %cst_22 {dimension_numbers = #tpu.dot_dimension_numbers<[1], [0], [0], [1], [0, 0, 1, 1], [], []>} : vector<64x120xbf16>, vector<120x160xbf16>, vector<64x160xf32> -> vector<64x160xf32>
    %90 = arith.addf %81, %89 : vector<64x160xf32>
    %c1_23 = arith.constant 1 : index
    %c0_24 = arith.constant 0 : index
    %91 = vector.load %arg5[%c1_23, %c0_24] : memref<3x256xf32, #tpu.memory_space<vmem>>, vector<1x160xf32>
    %92 = vector.broadcast %91 : vector<1x160xf32> to vector<64x160xf32>
    %93 = arith.addf %90, %92 : vector<64x160xf32>
    %94 = vector.shape_cast %93 : vector<64x160xf32> to vector<8x8x160xf32>
    %95 = vector.extract_strided_slice %94 {offsets = [0, 0, 0], sizes = [8, 4, 160], strides = [1, 1, 1]} : vector<8x8x160xf32> to vector<8x4x160xf32>
    %96 = vector.extract_strided_slice %94 {offsets = [0, 4, 0], sizes = [8, 4, 160], strides = [1, 1, 1]} : vector<8x8x160xf32> to vector<8x4x160xf32>
    %97 = arith.maximumf %95, %96 : vector<8x4x160xf32>
    %98 = vector.extract_strided_slice %97 {offsets = [0, 0, 0], sizes = [8, 4, 80], strides = [1, 1, 1]} : vector<8x4x160xf32> to vector<8x4x80xf32>
    %99 = vector.extract_strided_slice %97 {offsets = [0, 0, 80], sizes = [8, 4, 80], strides = [1, 1, 1]} : vector<8x4x160xf32> to vector<8x4x80xf32>
    %100 = arith.maximumf %98, %99 : vector<8x4x80xf32>
    %cst_25 = arith.constant 0.000000e+00 : f32
    %101 = vector.broadcast %cst_25 : f32 to vector<8x4x80xf32>
    %102 = arith.maximumf %100, %101 : vector<8x4x80xf32>
    %cst_26 = arith.constant 0.000000e+00 : f32
    %103 = vector.broadcast %cst_26 : f32 to vector<8x4x80xf32>
    %104 = tpu.concatenate %102, %103 in 1 : vector<8x4x80xf32>, vector<8x4x80xf32> -> vector<8x8x80xf32>
    %105 = vector.shape_cast %104 : vector<8x8x80xf32> to vector<64x80xf32>
    %106 = arith.truncf %105 : vector<64x80xf32> to vector<64x80xbf16>
    %c0_27 = arith.constant 0 : index
    %c0_28 = arith.constant 0 : index
    %107 = vector.load %arg4[%c0_27, %c0_28] : memref<80x40xbf16, #tpu.memory_space<vmem>>, vector<80x40xbf16>
    %cst_29 = arith.constant dense<0.000000e+00> : vector<64x40xf32>
    %108 = tpu.matmul %106, %107, %cst_29 {dimension_numbers = #tpu.dot_dimension_numbers<[1], [0], [0], [1], [0, 0, 1, 1], [], []>} : vector<64x80xbf16>, vector<80x40xbf16>, vector<64x40xf32> -> vector<64x40xf32>
    %109 = vector.shape_cast %108 : vector<64x40xf32> to vector<8x8x40xf32>
    %c2_30 = arith.constant 2 : index
    %c0_31 = arith.constant 0 : index
    %110 = vector.load %arg5[%c2_30, %c0_31] : memref<3x256xf32, #tpu.memory_space<vmem>>, vector<1x10xf32>
    %111 = vector.extract_strided_slice %109 {offsets = [0, 0, 0], sizes = [8, 1, 10], strides = [1, 1, 1]} : vector<8x8x40xf32> to vector<8x1x10xf32>
    %112 = vector.shape_cast %110 : vector<1x10xf32> to vector<1x1x10xf32>
    %113 = vector.broadcast %112 : vector<1x1x10xf32> to vector<8x1x10xf32>
    %114 = arith.addf %113, %111 : vector<8x1x10xf32>
    %115 = vector.extract_strided_slice %109 {offsets = [0, 1, 10], sizes = [8, 1, 10], strides = [1, 1, 1]} : vector<8x8x40xf32> to vector<8x1x10xf32>
    %116 = arith.addf %114, %115 : vector<8x1x10xf32>
    %117 = vector.extract_strided_slice %109 {offsets = [0, 2, 20], sizes = [8, 1, 10], strides = [1, 1, 1]} : vector<8x8x40xf32> to vector<8x1x10xf32>
    %118 = arith.addf %116, %117 : vector<8x1x10xf32>
    %119 = vector.extract_strided_slice %109 {offsets = [0, 3, 30], sizes = [8, 1, 10], strides = [1, 1, 1]} : vector<8x8x40xf32> to vector<8x1x10xf32>
    %120 = arith.addf %118, %119 : vector<8x1x10xf32>
    %cst_32 = arith.constant dense<0xFF800000> : vector<8x1xf32>
    %121 = vector.multi_reduction <maximumf>, %120, %cst_32 [2] : vector<8x1x10xf32> to vector<8x1xf32>
    %122 = vector.shape_cast %121 : vector<8x1xf32> to vector<8x1x1xf32>
    %123 = vector.broadcast %122 : vector<8x1x1xf32> to vector<8x1x10xf32>
    %124 = arith.subf %120, %123 : vector<8x1x10xf32>
    %125 = math.exp %124 : vector<8x1x10xf32>
    %cst_33 = arith.constant dense<0.000000e+00> : vector<8x1xf32>
    %126 = vector.multi_reduction <add>, %125, %cst_33 [2] : vector<8x1x10xf32> to vector<8x1xf32>
    %127 = vector.shape_cast %126 : vector<8x1xf32> to vector<8x1x1xf32>
    %128 = math.log %127 : vector<8x1x1xf32>
    %129 = vector.broadcast %128 : vector<8x1x1xf32> to vector<8x1x10xf32>
    %130 = arith.subf %124, %129 : vector<8x1x10xf32>
    %cst_34 = arith.constant 0.000000e+00 : f32
    %131 = vector.broadcast %cst_34 : f32 to vector<8x1x118xf32>
    %132 = tpu.concatenate %130, %131 in 2 : vector<8x1x10xf32>, vector<8x1x118xf32> -> vector<8x1x128xf32>
    %133 = vector.shape_cast %132 : vector<8x1x128xf32> to vector<8x128xf32>
    %c0_35 = arith.constant 0 : index
    %c0_36 = arith.constant 0 : index
    %134 = vector.load %arg6[%c0_35, %c0_36] : memref<8x128xf32, #tpu.memory_space<vmem>>, vector<8x128xf32>
    tpu.vector_store %arg6[%c0_35, %c0_36], %133 {strides = array<i32>} : memref<8x128xf32, #tpu.memory_space<vmem>>, vector<8x128xf32>,
    return
  }
  func.func @transform_0(%arg0: i32) -> (i32, i32, i32) {
    %c0_i32 = arith.constant 0 : i32
    %c0_i32_0 = arith.constant 0 : i32
    %c0_i32_1 = arith.constant 0 : i32
    return %arg0, %c0_i32, %c0_i32_0 : i32, i32, i32
  }
  func.func @transform_1(%arg0: i32) -> (i32, i32) {
    %c0_i32 = arith.constant 0 : i32
    %c0_i32_0 = arith.constant 0 : i32
    %c0_i32_1 = arith.constant 0 : i32
    return %c0_i32, %c0_i32_0 : i32, i32
  }
  func.func @transform_2(%arg0: i32) -> (i32, i32, i32) {
    %c0_i32 = arith.constant 0 : i32
    %c0_i32_0 = arith.constant 0 : i32
    %c0_i32_1 = arith.constant 0 : i32
    %c0_i32_2 = arith.constant 0 : i32
    return %c0_i32, %c0_i32_0, %c0_i32_1 : i32, i32, i32
  }
  func.func @transform_3(%arg0: i32) -> (i32, i32) {
    %c0_i32 = arith.constant 0 : i32
    %c0_i32_0 = arith.constant 0 : i32
    %c0_i32_1 = arith.constant 0 : i32
    return %c0_i32, %c0_i32_0 : i32, i32
  }
  func.func @transform_4(%arg0: i32) -> (i32, i32) {
    %c0_i32 = arith.constant 0 : i32
    %c0_i32_0 = arith.constant 0 : i32
    %c0_i32_1 = arith.constant 0 : i32
    return %c0_i32, %c0_i32_0 : i32, i32
  }
  func.func @transform_5(%arg0: i32) -> (i32, i32) {
    %c0_i32 = arith.constant 0 : i32
    %c0_i32_0 = arith.constant 0 : i32
    return %arg0, %c0_i32 : i32, i32
  }
}

</mosaic_0001>

<bundles_post_ra>
// kernel: net_forward.1
= control target key start
LH: loop header
LB: loop body
LE: loop exit
PB: predicated region body
PF: predicated region fallthrough
CT: control target
= control target key end

     0   :  { %s3943_s26 = smov 72   ;;  %s3944_s27 = smov 44   ;;  %vm133_vm0 = vcmask 1045504   ;;  %vm142_vm1 = vcmask 1043456   ;;  %vm151_vm2 = vcmask 1041408   ;;  %vm513_vm3 = vcmask 457728   ;;  %s5584_s0 = inlined_call_operand.vmem [shape: f32[8,7,112], index: 0, kind: input, shape index: {}]   ;;  %s5585_s1 = inlined_call_operand.vmem [shape: bf16[140,240], index: 1, kind: input, shape index: {}]   ;;  %s5586_s4 = inlined_call_operand.vmem [shape: f32[3,256], index: 4, kind: input, shape index: {}]   ;;  %s5587_s2 = inlined_call_operand.vmem [shape: bf16[5,120,160], index: 2, kind: input, shape index: {}]   ;;  %s5588_s3 = inlined_call_operand.vmem [shape: bf16[80,40], index: 3, kind: input, shape index: {}]   ;;  %s5589_s5 = inlined_call_operand.vmem [shape: f32[8,128], index: 5, kind: output, shape index: {}]  }
   0x1   :  { %v3989_v0 = vld [vmem:[%s5584_s0] sm:$0x7f]  ;;  %v3994_v1 = vld [vmem:[%s5584_s0 + $0x8] sm:$0x7f]  ;;  %v4003_v6 = vld [vmem:[%s5584_s0 + $0x10] sm:$0x7f] }
   0x2   :  { %v200_v2 = vrot.slane %v3989_v0, 3  ;;  %v201_v3 = vrot.slane %v3994_v1, 3  ;;  %v248_v4 = vrot.slane %v3989_v0, 5  ;;  %v249_v5 = vrot.slane %v3994_v1, 5  ;;  %v4010_v9 = vld [vmem:[%s5584_s0 + $0x18] sm:$0x7f] }
   0x3   :  { %v160_v7 = vrot.slane %v3989_v0, 7  ;;  %v161_v8 = vrot.slane %v3994_v1, 7  ;;  %v202_v10 = vrot.slane %v4003_v6, 3  ;;  %v203_v12 = vrot.slane %v4010_v9, 3  ;;  %v4025_v20 = vld [vmem:[%s5584_s0 + $0x20] sm:$0x7f] }
   0x4   :  { %v3415_v11 = vpack.i.bf16 %v201_v3, %v200_v2  ;;  %v3420_v14 = vpack.i.bf16 %v249_v5, %v248_v4  ;;  %v250_v15 = vrot.slane %v4003_v6, 5  ;;  %v251_v16 = vrot.slane %v4010_v9, 5  ;;  %s3945_s30 = smov 100   ;;  %v4041_v27 = vld [vmem:[%s5584_s0 + $0x28] sm:$0x7f]  ;;  %s3946_s8 = smov 56  }
   0x5   :  { %v3425_v13 = vpack.i.bf16 %v161_v8, %v160_v7  ;;  %v4018_v17 = vpack.i.bf16 %v203_v12, %v202_v10  ;;  %v162_v18 = vrot.slane %v4003_v6, 7  ;;  %v163_v19 = vrot.slane %v4010_v9, 7  ;;  %s3947_s9 = smov 84   ;;  %v4064_v38 = vld [vmem:[%s5584_s0 + $0x30] sm:$0x7f]  ;;  %s3948_s12 = smov 28  }
   0x6   :  { %3416 = vrot.lane.b32.xlu0 %v3415_v11, %s3943_s26  ;;  %v4028_v21 = vpack.i.bf16 %v251_v16, %v250_v15  ;;  %v37_v22 = vrot.slane %v3989_v0, 2  ;;  %v204_v23 = vrot.slane %v4025_v20, 3  ;;  %v69_v25 = vrot.slane %v3989_v0, 4  ;;  %v3750_v45 = vld [vmem:[%s5585_s1 + $0x4] ss:$8 sps:$4 sm:$0xff]   ;;  %s3950_s21 = smov 8  }
   0x7   :  { %3426 = vrot.lane.b32.xlu1 %v3425_v13, %s3944_s27  ;;  %v4034_v24 = vpack.i.bf16 %v163_v19, %v162_v18  ;;  %v252_v26 = vrot.slane %v4025_v20, 5  ;;  %v38_v30 = vrot.slane %v3994_v1, 2  ;;  %v205_v31 = vrot.slane %v4041_v27, 3  ;;  %v3752_v46 = vld [vmem:[%s5585_s1] ss:$8 sps:$4 sm:$0xff]   ;;  %773 = vmatprep.subr.bf16.mxu0 %v3750_v45  ;;  %s3952_s10 = smov 48  }
   0x8   :  { %v3445_v28 = vpack.i.bf16 %v37_v22, %v204_v23  ;;  %v101_v32 = vrot.slane %v3989_v0, 6  ;;  %v164_v33 = vrot.slane %v4025_v20, 7  ;;  %v102_v36 = vrot.slane %v3994_v1, 6  ;;  %v3753_v47 = vld [vmem:[%s5585_s1 + $0x14] ss:$8 sps:$4 sm:$0xff]   ;;  %774 = vmatpush1.bf16.msra.mxu0 %v3752_v46 }
   0x9   :  { %v3450_v29 = vpack.i.bf16 %v69_v25, %v252_v26  ;;  %v3460_v34 = vpack.i.bf16 %v38_v30, %v205_v31  ;;  %v165_v37 = vrot.slane %v4041_v27, 7  ;;  %v39_v40 = vrot.slane %v4003_v6, 2  ;;  %v3755_v48 = vld [vmem:[%s5585_s1 + $0x10] ss:$8 sps:$4 sm:$0xff]   ;;  %775 = vmatprep.subr.bf16.mxu0 %v3753_v47  ;;  %v3756_v49 = vld [vmem:[%s5585_s1 + $0x24] ss:$8 sps:$4 sm:$0xff]  }
   0xa   :  { %3421 = vrot.lane.b32.xlu0 %v3420_v14, %s3945_s30  ;;  %v3465_v35 = vpack.i.bf16 %v101_v32, %v164_v33  ;;  %v206_v41 = vrot.slane %v4064_v38, 3  ;;  %v4072_v43 = vpack.i.bf16 %v205_v31, %v204_v23  ;;  %v3758_v50 = vld [vmem:[%s5585_s1 + $0x20] ss:$8 sps:$4 sm:$0xff]   ;;  %v3759_v51 = vld [vmem:[%s5585_s1 + $0x34] ss:$8 sps:$4 sm:$0xff]   ;;  %v296_v7 = vrot.slane %v3989_v0, 1 }
   0xb   :  { %3431 = vrot.lane.b32.xlu1 %v4018_v17, %s3943_s26  ;;  %v3490_v39 = vpack.i.bf16 %v102_v36, %v165_v37  ;;  %v4075_v44 = vpack.i.bf16 %v165_v37, %v164_v33  ;;  %v3761_v52 = vld [vmem:[%s5585_s1 + $0x30] ss:$8 sps:$4 sm:$0xff]   ;;  %v3762_v53 = vld [vmem:[%s5585_s1 + $0x44] ss:$8 sps:$4 sm:$0xff]   ;;  %v3764_v54 = vld [vmem:[%s5585_s1 + $0x40] ss:$8 sps:$4 sm:$0xff]  }
   0xc   :  { %v3495_v42 = vpack.i.bf16 %v39_v40, %v206_v41  ;;  %776 = vmatpush1.bf16.msra.mxu0 %v3755_v48  ;;  %v3765_v55 = vld [vmem:[%s5585_s1 + $0x54] ss:$8 sps:$4 sm:$0xff]   ;;  %v3767_v56 = vld [vmem:[%s5585_s1 + $0x50] ss:$8 sps:$4 sm:$0xff]   ;;  %v3768_v57 = vld [vmem:[%s5585_s1 + $0x64] ss:$8 sps:$4 sm:$0xff]  }
   0xd   :  { %777 = vmatprep.subr.bf16.mxu0 %v3756_v49  ;;  %v3770_v58 = vld [vmem:[%s5585_s1 + $0x60] ss:$8 sps:$4 sm:$0xff]   ;;  %v3771_v59 = vld [vmem:[%s5585_s1 + $0x74] ss:$8 sps:$4 sm:$0xff]   ;;  %v3773_v60 = vld [vmem:[%s5585_s1 + $0x70] ss:$8 sps:$4 sm:$0xff]  }
   0xe   :  { %3436 = vrot.lane.b32.xlu0 %v4028_v21, %s3945_s30  ;;  %v3774_v61 = vld [vmem:[%s5585_s1 + $0x84] ss:$8 sps:$4 sm:$0x3f]   ;;  %v3776_v62 = vld [vmem:[%s5585_s1 + $0x80] ss:$8 sps:$4 sm:$0x3f]  }
   0xf   :  { %3441 = vrot.lane.b32.xlu1 %v4034_v24, %s3944_s27  ;;  %v768_v63 = vsel %vm133_vm0, %v3776_v62, 0  ;;  %v4137_v8 = vld [vmem:[%s5584_s0 + $0x38] sm:$0x7f]  ;;  %v70_v16 = vrot.slane %v3994_v1, 4  ;;  %v253_v18 = vrot.slane %v4041_v27, 5  ;;  %s3949_s0 = smov 112  }
  0x10   :  { %778 = vmatpush1.bf16.msra.mxu0 %v3758_v50  ;;  %v207_v15 = vrot.slane %v4137_v8, 3  ;;  %v71_v36 = vrot.slane %v4003_v6, 4  ;;  %v254_v37 = vrot.slane %v4064_v38, 5  ;;  %v104_v47 = vrot.slane %v4010_v9, 6 }
  0x11   :  { %779 = vmatprep.subr.bf16.mxu0 %v3759_v51  ;;  %v3485_v32 = vpack.i.bf16 %v70_v16, %v253_v18  ;;  %v167_v48 = vrot.slane %v4137_v8, 7  ;;  %v74_v62 = vrot.slane %v4041_v27, 4  ;;  %vm538_vm4 = vcmask 687104  }
  0x12   :  { %3446 = vrot.lane.b32.xlu0 %v3445_v28, %s3943_s26  ;;  %v3505_v46 = vpack.i.bf16 %v71_v36, %v254_v37  ;;  %vm504_vm5 = vcmask 228352   ;;  %vm563_vm6 = vcmask 916480   ;;  %vm730_vm7 = vcmask 97280  }
  0x13   :  { %3451 = vrot.lane.b32.xlu1 %v3450_v29, %s3945_s30  ;;  %vm1166_vm8 = vcmask 64512   ;;  %vm1731_vm9 = vcmask 1044480   ;;  %vm1457_vm10 = vcmask 982016   ;;  %vm1974_vm11 = vcmask 1040384  }
  0x14   :  { %780 = vmatpush1.bf16.msra.mxu0 %v3761_v52  ;;  %vm2600_vm12 = vcmask 392192   ;;  %vm2685_vm13 = vcmask 654336   ;;  %vm2924_vm14 = vcmask 73728   ;;  %vm3021_vm15 = vcmask 80896  }
  0x15   :  { %781 = vmatprep.subr.bf16.mxu0 %v3762_v53  ;;  %v103_v53 = vrot.slane %v4003_v6, 6 }
  0x16   :  { %3456 = vrot.lane.b32.xlu0 %v3415_v11, %s3946_s8 }
  0x17   :  { %3461 = vrot.lane.b32.xlu1 %v3460_v34, %s3943_s26  ;;  %v297_v34 = vrot.slane %v3994_v1, 1 }
  0x18   :  { %782 = vmatpush1.bf16.msra.mxu0 %v3764_v54  ;;  %v166_v54 = vrot.slane %v4064_v38, 7 }
  0x19   :  { %783 = vmatprep.subr.bf16.mxu0 %v3765_v55  ;;  %v298_v55 = vrot.slane %v4003_v6, 1 }
  0x1a   :  { %3466 = vrot.lane.b32.xlu0 %v3465_v35, %s3944_s27 }
  0x1b   :  { %3471 = vrot.lane.b32.xlu1 %v3420_v14, %s3947_s9  ;;  %v40_v14 = vrot.slane %v4010_v9, 2 }
  0x1c   :  { %784 = vmatpush1.bf16.msra.mxu0 %v3767_v56 }
  0x1d   :  { %785 = vmatprep.subr.bf16.mxu0 %v3768_v57  ;;  %v3520_v31 = vpack.i.bf16 %v40_v14, %v207_v15  ;;  %v299_v14 = vrot.slane %v4010_v9, 1 }
  0x1f   :  { %3476 = vrot.lane.b32.xlu1 %v3425_v13, %s3948_s12 }
  0x20   :  { %786 = vmatpush1.bf16.msra.mxu0 %v3770_v58 }
  0x21   :  { %787 = vmatprep.subr.bf16.mxu0 %v3771_v59 }
  0x23   :  { %3491 = vrot.lane.b32.xlu1 %v3490_v39, %s3944_s27 }
  0x24   :  { %788 = vmatpush1.bf16.msra.mxu0 %v3773_v60 }
  0x25   :  { %3083 = vmatprep.subr.msk.bf16.mxu0 %vm133_vm0, %v3774_v61  ;;  %v73_v61 = vrot.slane %v4025_v20, 4 }
  0x27   :  { %3496 = vrot.lane.b32.xlu1 %v3495_v42, %s3943_s26 }
  0x28   :  { %790 = vmatpush1.bf16.msra.mxu0 %v768_v63 }
  0x78   :  { %v3417_v2 = vpop.permute.xlu0 %3416 }
  0x79   :  { %v3427_v3 = vpop.permute.xlu1 %3426  ;;  %v3418_v4 = vunpack.i.l.bf16 %v3417_v2  ;;  %v3419_v11 = vunpack.i.h.bf16 %v3417_v2 }
  0x7a   :  { %v3429_v5 = vunpack.i.h.bf16 %v3427_v3  ;;  %v3428_v30 = vunpack.i.l.bf16 %v3427_v3 }
  0x7b   :  { %v384_v23 = vsel %vm133_vm0, %v296_v7, %v3418_v4  ;;  %v385_v39 = vsel %vm133_vm0, %v297_v34, %v3419_v11  ;;  %v255_v7 = vrot.slane %v4137_v8, 5 }
  0x7c   :  { %v3422_v10 = vpop.permute.xlu0 %3421 }
  0x7d   :  { %v3424_v12 = vunpack.i.h.bf16 %v3422_v10  ;;  %v3423_v13 = vunpack.i.l.bf16 %v3422_v10  ;;  %v3432_v33 = vpop.permute.xlu1 %3431  ;;  %v3570_v10 = vpack.i.bf16 %v74_v62, %v73_v61 }
  0x7e   :  { %v3434_v49 = vunpack.i.h.bf16 %v3432_v33  ;;  %v3433_v56 = vunpack.i.l.bf16 %v3432_v33  ;;  %v42_v33 = vrot.slane %v4041_v27, 2 }
  0x7f   :  { %v393_v19 = vsel %vm142_vm1, %v3419_v11, %v3424_v12  ;;  %v401_v22 = vsel %vm151_vm2, %v3424_v12, %v3429_v5  ;;  %v392_v25 = vsel %vm142_vm1, %v3418_v4, %v3423_v13  ;;  %v400_v35 = vsel %vm151_vm2, %v3423_v13, %v3428_v30 }
  0x80   :  { %v3515_v28 = vpack.i.bf16 %v401_v22, %v393_v19  ;;  %v3480_v29 = vpack.i.bf16 %v392_v25, %v384_v23  ;;  %v3500_v40 = vpack.i.bf16 %v385_v39, %v400_v35  ;;  %v3437_v42 = vpop.permute.xlu0 %3436  ;;  %v386_v2 = vsel %vm133_vm0, %v298_v55, %v3433_v56 }
  0x81   :  { %v3442_v45 = vpop.permute.xlu1 %3441  ;;  %v3439_v50 = vunpack.i.h.bf16 %v3437_v42  ;;  %v3438_v57 = vunpack.i.l.bf16 %v3437_v42  ;;  %v72_v5 = vrot.slane %v4010_v9, 4  ;;  %v105_v19 = vrot.slane %v4025_v20, 6 }
  0x82   :  { %3516 = vrot.lane.b32.xlu1 %v3515_v28, %s3949_s0  ;;  %3481 = vrot.lane.b32.xlu0 %v3480_v29, %s3949_s0  ;;  %v3444_v51 = vunpack.i.h.bf16 %v3442_v45  ;;  %v3443_v13 = vunpack.i.l.bf16 %v3442_v45  ;;  %v106_v22 = vrot.slane %v4041_v27, 6  ;;  %v301_v28 = vrot.slane %v4041_v27, 1 }
  0x83   :  { %v395_v58 = vsel %vm142_vm1, %v3434_v49, %v3439_v50  ;;  %v394_v3 = vsel %vm142_vm1, %v3433_v56, %v3438_v57  ;;  %v3545_v16 = vpack.i.bf16 %v72_v5, %v255_v7  ;;  %v387_v29 = vsel %vm133_vm0, %v299_v14, %v3434_v49 }
  0x84   :  { %v4167_v52 = vpop.permute.xlu0 %3446  ;;  %v403_v59 = vsel %vm151_vm2, %v3439_v50, %v3444_v51  ;;  %v402_v30 = vsel %vm151_vm2, %v3438_v57, %v3443_v13  ;;  %v3580_v34 = vpack.i.bf16 %v106_v22, %v105_v19  ;;  %v3600_v50 = vpack.i.bf16 %v254_v37, %v253_v18 }
  0x85   :  { %v3565_v60 = vpack.i.bf16 %v403_v59, %v395_v58  ;;  %v3452_v4 = vpop.permute.xlu1 %3451  ;;  %v3555_v39 = vpack.i.bf16 %v387_v29, %v402_v30  ;;  %v3448_v45 = vunpack.i.l.bf16 %v4167_v52  ;;  %v43_v51 = vrot.slane %v4064_v38, 2 }
  0x86   :  { %3521 = vrot.lane.b32.xlu1 %v3520_v31, %s3943_s26  ;;  %3486 = vrot.lane.b32.xlu0 %v3485_v32, %s3945_s30  ;;  %v3453_v31 = vunpack.i.l.bf16 %v3452_v4  ;;  %v41_v32 = vrot.slane %v4025_v20, 2  ;;  %v3454_v55 = vunpack.i.h.bf16 %v3452_v4  ;;  %v3449_v56 = vunpack.i.h.bf16 %v4167_v52 }
  0x88   :  { %v4186_v63 = vpop.permute.xlu0 %3456 }
  0x89   :  { %v4194_v11 = vpop.permute.xlu1 %3461  ;;  %v3458_v57 = vunpack.i.l.bf16 %v4186_v63 }
  0x8a   :  { %3531 = vrot.lane.b32.xlu1 %v4028_v21, %s3947_s9  ;;  %3501 = vrot.lane.b32.xlu0 %v3500_v40, %s3949_s0  ;;  %v3550_v21 = vpack.i.bf16 %v104_v47, %v167_v48  ;;  %v3463_v23 = vunpack.i.l.bf16 %v4194_v11  ;;  %v3560_v40 = vpack.i.bf16 %v42_v33, %v41_v32  ;;  %v396_v47 = vsel %vm142_vm1, %v3448_v45, %v3453_v31 }
  0x8b   :  { %v3464_v59 = vunpack.i.h.bf16 %v4194_v11  ;;  %v232_v52 = vsel %vm133_vm0, %v3989_v0, %v3458_v57  ;;  %v240_v61 = vsel %vm142_vm1, %v3458_v57, %v3454_v55 }
  0x8c   :  { %v4196_v12 = vpop.permute.xlu0 %3466  ;;  %v389_v35 = vsel %vm133_vm0, %v301_v28, %v3463_v23 }
  0x8d   :  { %v3468_v25 = vunpack.i.l.bf16 %v4196_v12  ;;  %v4254_v18 = vpop.permute.xlu1 %3471  ;;  %v3469_v62 = vunpack.i.h.bf16 %v4196_v12 }
  0x8e   :  { %3536 = vrot.lane.b32.xlu1 %v4034_v24, %s3948_s12  ;;  %3506 = vrot.lane.b32.xlu0 %v3505_v46, %s3945_s30  ;;  %v3525_v24 = vpack.i.bf16 %v103_v53, %v166_v54  ;;  %v300_v46 = vrot.slane %v4025_v20, 1 }
  0x8f   :  { %v404_v36 = vsel %vm151_vm2, %v3453_v31, %v3468_v25  ;;  %v152_v12 = vsel %vm151_vm2, %v3454_v55, %v3469_v62 }
  0x90   :  { %v3595_v42 = vpack.i.bf16 %v389_v35, %v404_v36 }
  0x91   :  { %v4256_v37 = vpop.permute.xlu1 %3476 }
  0x92   :  { %3511 = vrot.lane.b32.xlu0 %v4018_v17, %s3946_s8  ;;  %3551 = vrot.lane.b32.xlu1 %v3550_v21, %s3944_s27  ;;  %v3540_v17 = vpack.i.bf16 %v394_v3, %v386_v2  ;;  %v44_v21 = vrot.slane %v4137_v8, 2  ;;  %v135_v3 = vsel %vm133_vm0, %v3994_v1, %v3464_v59  ;;  %v3479_v36 = vunpack.i.h.bf16 %v4256_v37 }
  0x94   :  { %v3605_v53 = vpack.i.bf16 %v44_v21, %v43_v51 }
  0x96   :  { %3526 = vrot.lane.b32.xlu0 %v3525_v24, %s3944_s27  ;;  %3566 = vrot.lane.b32.xlu1 %v3565_v60, %s3949_s0  ;;  %v3473_v24 = vunpack.i.l.bf16 %v4254_v18  ;;  %v143_v60 = vsel %vm142_vm1, %v3449_v56, %v3454_v55 }
  0x98   :  { %v280_v4 = vsel %vm142_vm1, %v3458_v57, %v3473_v24 }
  0x9a   :  { %3541 = vrot.lane.b32.xlu0 %v3540_v17, %s3949_s0  ;;  %3571 = vrot.lane.b32.xlu1 %v3570_v10, %s3945_s30 }
  0x9e   :  { %3546 = vrot.lane.b32.xlu0 %v3545_v16, %s3945_s30  ;;  %264 = vrot.lane.b32.xlu1 %v252_v26, %s3947_s9  ;;  %v388_v26 = vsel %vm133_vm0, %v300_v46, %v3448_v45 }
  0x9f   :  { %v3585_v49 = vpack.i.bf16 %v396_v47, %v388_v26  ;;  %v302_v26 = vrot.slane %v4064_v38, 1 }
  0xa2   :  { %3556 = vrot.lane.b32.xlu0 %v3555_v39, %s3949_s0  ;;  %3581 = vrot.lane.b32.xlu1 %v3580_v34, %s3944_s27 }
  0xa6   :  { %3561 = vrot.lane.b32.xlu0 %v3560_v40, %s3943_s26  ;;  %3596 = vrot.lane.b32.xlu1 %v3595_v42, %s3949_s0  ;;  %v3474_v42 = vunpack.i.h.bf16 %v4254_v18 }
  0xaa   :  { %3576 = vrot.lane.b32.xlu0 %v4072_v43, %s3946_s8  ;;  %v107_v43 = vrot.slane %v4064_v38, 6 }
  0xae   :  { %3586 = vrot.lane.b32.xlu0 %v3585_v49, %s3949_s0 }
  0xb2   :  { %3591 = vrot.lane.b32.xlu0 %v4075_v44, %s3948_s12  ;;  %v76_v44 = vrot.slane %v4137_v8, 4 }
  0xb6   :  { %3601 = vrot.lane.b32.xlu0 %v3600_v50, %s3947_s9 }
  0xba   :  { %3606 = vrot.lane.b32.xlu0 %v3605_v53, %s3943_s26 }
  0xbe   :  { %220 = vrot.lane.b32.xlu0 %v206_v41, %s3946_s8  ;;  %v3492_v41 = vpop.permute.xlu1 %3491 }
  0xbf   :  { %v3494_v25 = vunpack.i.h.bf16 %v3492_v41  ;;  %v3493_v32 = vunpack.i.l.bf16 %v3492_v41 }
  0xc2   :  { %121 = vrot.lane.b32.xlu0 %v107_v43, %s3944_s27  ;;  %v4263_v58 = vpop.permute.xlu1 %3496 }
  0xc6   :  { %222 = vrot.lane.b32.xlu0 %v207_v15, %s3946_s8  ;;  %v4261_v15 = vunpack.i.h.bf16 %v4186_v63  ;;  %v3478_v63 = vunpack.i.l.bf16 %v4256_v37  ;;  %s3954_s8 = smov 118  }
  0xc8   :  { %v233_v2 = vsel %vm133_vm0, %v3994_v1, %v4261_v15  ;;  %v192_v13 = vsel %vm151_vm2, %v3454_v55, %v3478_v63  ;;  %v288_v45 = vsel %vm151_vm2, %v3473_v24, %v3478_v63 }
  0xc9   :  { %v517_v22 = vsel %vm513_vm3, %v135_v3, %v233_v2  ;;  %v505_v31 = vsel %vm504_vm5, %v152_v12, %v192_v13 }
  0xca   :  { %91 = vrot.lane.b32.xlu0 %v76_v44, %s3945_s30  ;;  %v542_v46 = vsel %vm538_vm4, %v517_v22, %v233_v2  ;;  %v516_v51 = vsel %vm513_vm3, %v505_v31, %v192_v13  ;;  %v75_v2 = vrot.slane %v4064_v38, 4  ;;  %v303_v31 = vrot.slane %v4137_v8, 1 }
  0xce   :  { %182 = vrot.lane.b32.xlu0 %v167_v48, %s3948_s12  ;;  %v134_v48 = vsel %vm133_vm0, %v3989_v0, %v3449_v56  ;;  %v515_v0 = vsel %vm513_vm3, %v143_v60, %v240_v61 }
  0xcf   :  { %v514_v17 = vsel %vm513_vm3, %v134_v48, %v232_v52  ;;  %v540_v19 = vsel %vm538_vm4, %v515_v0, %v280_v4  ;;  %v541_v48 = vsel %vm538_vm4, %v516_v51, %v288_v45  ;;  %v281_v4 = vsel %vm142_vm1, %v4261_v15, %v3474_v42 }
  0xd0   :  { %v539_v1 = vsel %vm538_vm4, %v514_v17, %v232_v52  ;;  %v289_v17 = vsel %vm151_vm2, %v3474_v42, %v3479_v36 }
  0xf4   :  { %v4283_v5 = vpop.permute.xlu1 %3516  ;;  %v3482_v10 = vpop.permute.xlu0 %3481 }
  0xf5   :  { %v3484_v14 = vunpack.i.h.bf16 %v3482_v10  ;;  %v3483_v16 = vunpack.i.l.bf16 %v3482_v10  ;;  %v3519_v41 = vunpack.i.h.bf16 %v4283_v5  ;;  %v3518_v55 = vunpack.i.l.bf16 %v4283_v5 }
  0xf7   :  { %v589_v28 = vpack.c.bf16 %v3484_v14, %v3483_v16  ;;  %v564_v29 = vsel %vm563_vm6, %v539_v1, %v3483_v16  ;;  %v565_v30 = vsel %vm563_vm6, %v540_v19, %v3484_v14  ;;  %v593_v0 = vpack.c.bf16 %v3519_v41, %v3518_v55 }
  0xf8   :  { %v4293_v33 = vpop.permute.xlu1 %3521  ;;  %v3487_v34 = vpop.permute.xlu0 %3486  ;;  %v588_v35 = vpack.c.bf16 %v565_v30, %v564_v29 }
  0xf9   :  { %v3489_v39 = vunpack.i.h.bf16 %v3487_v34  ;;  %v3488_v40 = vunpack.i.l.bf16 %v3487_v34  ;;  %3084 = vmatprep.mubr.msk.bf16.mxu0 %vm730_vm7, %v589_v28  ;;  %v3499_v28 = vunpack.i.h.bf16 %v4263_v58  ;;  %v3523_v29 = vunpack.i.l.bf16 %v4293_v33 }
  0xfa   :  { %806 = vmatmul.mubr.bf16.vlgmr.msra.gmra.mrb[0].mxu0 %v588_v35 }
  0xfb   :  { %v144_v47 = vsel %vm142_vm1, %v3464_v59, %v3489_v39  ;;  %v153_v49 = vsel %vm151_vm2, %v3489_v39, %v3494_v25  ;;  %v193_v50 = vsel %vm151_vm2, %v3489_v39, %v3479_v36  ;;  %v241_v21 = vsel %vm142_vm1, %v4261_v15, %v3489_v39 }
  0xfc   :  { %v4307_v53 = vpop.permute.xlu1 %3531  ;;  %v3502_v43 = vpop.permute.xlu0 %3501  ;;  %v397_v44 = vsel %vm142_vm1, %v3463_v23, %v3488_v40  ;;  %v405_v18 = vsel %vm151_vm2, %v3488_v40, %v3493_v32  ;;  %v506_v37 = vsel %vm504_vm5, %v153_v49, %v193_v50  ;;  %v3498_v59 = vunpack.i.l.bf16 %v4263_v58 }
  0xfd   :  { %v3504_v56 = vunpack.i.h.bf16 %v3502_v43  ;;  %v3503_v57 = vunpack.i.l.bf16 %v3502_v43  ;;  %v3610_v24 = vpack.i.bf16 %v405_v18, %v397_v44  ;;  %v518_v60 = vsel %vm513_vm3, %v144_v47, %v241_v21 }
  0xfe   :  { %v519_v61 = vsel %vm513_vm3, %v506_v37, %v193_v50  ;;  %v543_v10 = vsel %vm538_vm4, %v518_v60, %v281_v4  ;;  %v390_v13 = vsel %vm133_vm0, %v302_v26, %v3498_v59  ;;  %v3533_v32 = vunpack.i.l.bf16 %v4307_v53 }
  0xff   :  { %v591_v11 = vpack.c.bf16 %v3504_v56, %v3503_v57  ;;  %v566_v23 = vsel %vm563_vm6, %v541_v48, %v3503_v57  ;;  %v567_v52 = vsel %vm563_vm6, %v542_v46, %v3504_v56  ;;  %3611 = vrot.lane.b32.xlu1 %v3610_v24, %s3949_s0  ;;  %v544_v12 = vsel %vm538_vm4, %v519_v61, %v289_v17 }
 0x100   :  { %v4323_v62 = vpop.permute.xlu1 %3536  ;;  %v3507_v63 = vpop.permute.xlu0 %3506  ;;  %v590_v3 = vpack.c.bf16 %v567_v52, %v566_v23  ;;  %v568_v22 = vsel %vm563_vm6, %v543_v10, %v3518_v55  ;;  %v569_v25 = vsel %vm563_vm6, %v544_v12, %v3519_v41  ;;  %v3524_v58 = vunpack.i.h.bf16 %v4293_v33 }
 0x101   :  { %v3508_v5 = vunpack.i.l.bf16 %v3507_v63  ;;  %3085 = vmatprep.mubr.msk.bf16.mxu0 %vm730_vm7, %v591_v11  ;;  %v3509_v30 = vunpack.i.h.bf16 %v3507_v63  ;;  %v592_v39 = vpack.c.bf16 %v569_v25, %v568_v22  ;;  %v3538_v42 = vunpack.i.l.bf16 %v4323_v62 }
 0x102   :  { %816 = vmatmul.mubr.bf16.gmra.mrb[4].mxu0 %v590_v3  ;;  %v136_v26 = vsel %vm133_vm0, %v4003_v6, %v3499_v28  ;;  %v391_v50 = vsel %vm133_vm0, %v303_v31, %v3523_v29  ;;  %v137_v55 = vsel %vm133_vm0, %v4010_v9, %v3524_v58  ;;  %v3534_v17 = vunpack.i.h.bf16 %v4307_v53 }
 0x103   :  { %3086 = vmatprep.mubr.msk.bf16.mxu0 %vm730_vm7, %v593_v0  ;;  %v398_v14 = vsel %vm142_vm1, %v3498_v59, %v3508_v5  ;;  %89 = vrot.lane.b32.xlu1 %v75_v2, %s3945_s30  ;;  %v145_v49 = vsel %vm142_vm1, %v3499_v28, %v3509_v30  ;;  %v194_v56 = vsel %vm151_vm2, %v3509_v30, %v3538_v42  ;;  %v3539_v0 = vunpack.i.h.bf16 %v4323_v62 }
 0x104   :  { %v3512_v15 = vpop.permute.xlu0 %3511  ;;  %v3615_v16 = vpack.i.bf16 %v398_v14, %v390_v13  ;;  %v4336_v1 = vpop.permute.xlu1 %3551  ;;  %v290_v12 = vsel %vm151_vm2, %v3533_v32, %v3538_v42 }
 0x105   :  { %v3513_v19 = vunpack.i.l.bf16 %v3512_v15  ;;  %v4354_v47 = vunpack.i.h.bf16 %v3512_v15  ;;  %v3554_v48 = vunpack.i.h.bf16 %v4336_v1  ;;  %v3553_v63 = vunpack.i.l.bf16 %v4336_v1 }
 0x107   :  { %v234_v34 = vsel %vm133_vm0, %v4003_v6, %v3513_v19  ;;  %v242_v35 = vsel %vm142_vm1, %v3513_v19, %v3509_v30  ;;  %3616 = vrot.lane.b32.xlu1 %v3615_v16, %s3949_s0  ;;  %v282_v51 = vsel %vm142_vm1, %v3513_v19, %v3533_v32  ;;  %v235_v24 = vsel %vm133_vm0, %v4010_v9, %v4354_v47 }
 0x108   :  { %v3527_v36 = vpop.permute.xlu0 %3526  ;;  %v4348_v40 = vpop.permute.xlu1 %3566  ;;  %v520_v21 = vsel %vm513_vm3, %v136_v26, %v234_v34  ;;  %v521_v43 = vsel %vm513_vm3, %v145_v49, %v242_v35  ;;  %v108_v9 = vrot.slane %v4137_v8, 6  ;;  %v523_v13 = vsel %vm513_vm3, %v137_v55, %v235_v24 }
 0x109   :  { %v3529_v45 = vunpack.i.h.bf16 %v3527_v36  ;;  %v3528_v46 = vunpack.i.l.bf16 %v3527_v36  ;;  %v545_v60 = vsel %vm538_vm4, %v520_v21, %v234_v34  ;;  %v3569_v14 = vunpack.i.h.bf16 %v4348_v40 }
 0x10a   :  { %826 = vmatmul.mubr.bf16.gmra.mrb[8].mxu0 %v592_v39  ;;  %v3568_v19 = vunpack.i.l.bf16 %v4348_v40  ;;  %v548_v35 = vsel %vm538_vm4, %v523_v13, %v235_v24  ;;  %v291_v26 = vsel %vm151_vm2, %v3534_v17, %v3539_v0  ;;  %v283_v49 = vsel %vm142_vm1, %v4354_v47, %v3534_v17 }
 0x10b   :  { %v406_v44 = vsel %vm151_vm2, %v3508_v5, %v3528_v46  ;;  %v154_v18 = vsel %vm151_vm2, %v3509_v30, %v3529_v45  ;;  %180 = vrot.lane.b32.xlu1 %v166_v54, %s3948_s12  ;;  %v546_v54 = vsel %vm538_vm4, %v521_v43, %v282_v51 }
 0x10c   :  { %v3542_v6 = vpop.permute.xlu0 %3541  ;;  %v3620_v37 = vpack.i.bf16 %v391_v50, %v406_v44  ;;  %v4368_v41 = vpop.permute.xlu1 %3571  ;;  %v507_v11 = vsel %vm504_vm5, %v154_v18, %v194_v56  ;;  %v599_v43 = vpack.c.bf16 %v3569_v14, %v3568_v19 }
 0x10d   :  { %v3544_v57 = vunpack.i.h.bf16 %v3542_v6  ;;  %v3543_v59 = vunpack.i.l.bf16 %v3542_v6  ;;  %v522_v15 = vsel %vm513_vm3, %v507_v11, %v194_v56  ;;  %v3574_v40 = vunpack.i.h.bf16 %v4368_v41 }
 0x10e   :  { %v547_v39 = vsel %vm538_vm4, %v522_v15, %v290_v12 }
 0x10f   :  { %v595_v23 = vpack.c.bf16 %v3544_v57, %v3543_v59  ;;  %v570_v52 = vsel %vm563_vm6, %v545_v60, %v3543_v59  ;;  %v571_v61 = vsel %vm563_vm6, %v546_v54, %v3544_v57  ;;  %3621 = vrot.lane.b32.xlu1 %v3620_v37, %s3949_s0  ;;  %v3573_v37 = vunpack.i.l.bf16 %v4368_v41 }
 0x110   :  { %v3547_v2 = vpop.permute.xlu0 %3546  ;;  %v594_v3 = vpack.c.bf16 %v571_v61, %v570_v52  ;;  %v4385_v4 = vpop.permute.xlu1 %264 }
 0x111   :  { %v3549_v5 = vunpack.i.h.bf16 %v3547_v2  ;;  %v3548_v10 = vunpack.i.l.bf16 %v3547_v2  ;;  %3087 = vmatprep.mubr.msk.bf16.mxu0 %vm730_vm7, %v595_v23 }
 0x112   :  { %836 = vmatmul.mubr.bf16.gmra.mrb[12].mxu0 %v594_v3 }
 0x113   :  { %v146_v16 = vsel %vm142_vm1, %v3524_v58, %v3549_v5  ;;  %v155_v1 = vsel %vm151_vm2, %v3549_v5, %v3554_v48  ;;  %v195_v53 = vsel %vm151_vm2, %v3549_v5, %v3539_v0  ;;  %v243_v62 = vsel %vm142_vm1, %v4354_v47, %v3549_v5  ;;  %123 = vrot.lane.b32.xlu1 %v108_v9, %s3944_s27 }
 0x114   :  { %v3557_v22 = vpop.permute.xlu0 %3556  ;;  %v399_v25 = vsel %vm142_vm1, %v3523_v29, %v3548_v10  ;;  %v407_v28 = vsel %vm151_vm2, %v3548_v10, %v3553_v63  ;;  %v508_v30 = vsel %vm504_vm5, %v155_v1, %v195_v53  ;;  %v3582_v36 = vpop.permute.xlu1 %3581  ;;  %v524_v58 = vsel %vm513_vm3, %v146_v16, %v243_v62 }
 0x115   :  { %v3559_v31 = vunpack.i.h.bf16 %v3557_v22  ;;  %v3558_v32 = vunpack.i.l.bf16 %v3557_v22  ;;  %v3625_v34 = vpack.i.bf16 %v407_v28, %v399_v25  ;;  %v3584_v42 = vunpack.i.h.bf16 %v3582_v36 }
 0x116   :  { %v525_v46 = vsel %vm513_vm3, %v508_v30, %v195_v53  ;;  %v549_v6 = vsel %vm538_vm4, %v524_v58, %v283_v49  ;;  %v3583_v23 = vunpack.i.l.bf16 %v3582_v36 }
 0x117   :  { %v597_v33 = vpack.c.bf16 %v3559_v31, %v3558_v32  ;;  %3626 = vrot.lane.b32.xlu0 %v3625_v34, %s3949_s0  ;;  %v572_v29 = vsel %vm563_vm6, %v547_v39, %v3558_v32  ;;  %v573_v45 = vsel %vm563_vm6, %v548_v35, %v3559_v31  ;;  %270 = vrot.lane.b32.xlu1 %v255_v7, %s3947_s9  ;;  %s3955_s9 = smov 98  }
 0x118   :  { %v596_v50 = vpack.c.bf16 %v573_v45, %v572_v29  ;;  %v3562_v51 = vpop.permute.xlu0 %3561  ;;  %v157_v21 = vsel %vm151_vm2, %v3574_v40, %v3584_v42  ;;  %v550_v47 = vsel %vm538_vm4, %v525_v46, %v291_v26  ;;  %v574_v56 = vsel %vm563_vm6, %v549_v6, %v3568_v19  ;;  %v3597_v52 = vpop.permute.xlu1 %3596 }
 0x119   :  { %3088 = vmatprep.mubr.msk.bf16.mxu0 %vm730_vm7, %v597_v33  ;;  %v3564_v44 = vunpack.i.h.bf16 %v3562_v51  ;;  %v3563_v18 = vunpack.i.l.bf16 %v3562_v51  ;;  %v575_v48 = vsel %vm563_vm6, %v550_v47, %v3569_v14  ;;  %v3599_v14 = vunpack.i.h.bf16 %v3597_v52 }
 0x11a   :  { %846 = vmatmul.mubr.bf16.gmra.mrb[16].mxu0 %v596_v50  ;;  %v598_v2 = vpack.c.bf16 %v575_v48, %v574_v56  ;;  %v3598_v53 = vunpack.i.l.bf16 %v3597_v52  ;;  %v156_v22 = vsel %vm151_vm2, %v3573_v37, %v3583_v23 }
 0x11b   :  { %3089 = vmatprep.mubr.msk.bf16.mxu0 %vm730_vm7, %v599_v43  ;;  %v148_v7 = vsel %vm142_vm1, %v3564_v44, %v3574_v40  ;;  %v138_v57 = vsel %vm133_vm0, %v4025_v20, %v3563_v18  ;;  %v147_v60 = vsel %vm142_vm1, %v3563_v18, %v3573_v37 }
 0x11c   :  { %v3577_v55 = vpop.permute.xlu0 %3576  ;;  %v603_v34 = vpack.c.bf16 %v3599_v14, %v3598_v53 }
 0x11d   :  { %v3579_v59 = vunpack.i.h.bf16 %v3577_v55  ;;  %v3578_v24 = vunpack.i.l.bf16 %v3577_v55 }
 0x11f   :  { %v245_v41 = vsel %vm142_vm1, %v3579_v59, %v3574_v40  ;;  %v236_v54 = vsel %vm133_vm0, %v4025_v20, %v3578_v24  ;;  %v244_v11 = vsel %vm142_vm1, %v3578_v24, %v3573_v37  ;;  %v284_v9 = vsel %vm142_vm1, %v3578_v24, %v4385_v4 }
 0x120   :  { %v526_v61 = vsel %vm513_vm3, %v138_v57, %v236_v54  ;;  %v530_v63 = vsel %vm513_vm3, %v148_v7, %v245_v41  ;;  %v3587_v3 = vpop.permute.xlu0 %3586  ;;  %v527_v17 = vsel %vm513_vm3, %v147_v60, %v244_v11  ;;  %v139_v20 = vsel %vm133_vm0, %v4041_v27, %v3564_v44 }
 0x121   :  { %v3589_v0 = vunpack.i.h.bf16 %v3587_v3  ;;  %v3588_v5 = vunpack.i.l.bf16 %v3587_v3  ;;  %v551_v10 = vsel %vm538_vm4, %v526_v61, %v236_v54  ;;  %v237_v12 = vsel %vm133_vm0, %v4041_v27, %v3579_v59 }
 0x122   :  { %856 = vmatmul.mubr.bf16.gmra.mrb[20].mxu0 %v598_v2  ;;  %v552_v13 = vsel %vm538_vm4, %v527_v17, %v284_v9  ;;  %v529_v19 = vsel %vm513_vm3, %v139_v20, %v237_v12 }
 0x123   :  { %v601_v15 = vpack.c.bf16 %v3589_v0, %v3588_v5  ;;  %v576_v16 = vsel %vm563_vm6, %v551_v10, %v3588_v5  ;;  %v577_v1 = vsel %vm563_vm6, %v552_v13, %v3589_v0  ;;  %v554_v39 = vsel %vm538_vm4, %v529_v19, %v237_v12 }
 0x124   :  { %v3592_v62 = vpop.permute.xlu0 %3591  ;;  %v600_v27 = vpack.c.bf16 %v577_v1, %v576_v16  ;;  %v579_v45 = vsel %vm563_vm6, %v554_v39, %v3599_v14 }
 0x125   :  { %v3594_v25 = vunpack.i.h.bf16 %v3592_v62  ;;  %v3593_v28 = vunpack.i.l.bf16 %v3592_v62  ;;  %3090 = vmatprep.mubr.msk.bf16.mxu0 %vm730_vm7, %v601_v15 }
 0x127   :  { %v197_v30 = vsel %vm151_vm2, %v3574_v40, %v3594_v25  ;;  %v196_v31 = vsel %vm151_vm2, %v3573_v37, %v3593_v28  ;;  %v292_v32 = vsel %vm151_vm2, %v4385_v4, %v3593_v28 }
 0x128   :  { %v510_v35 = vsel %vm504_vm5, %v157_v21, %v197_v30  ;;  %v509_v36 = vsel %vm504_vm5, %v156_v22, %v196_v31  ;;  %v3602_v58 = vpop.permute.xlu0 %3601 }
 0x129   :  { %v531_v42 = vsel %vm513_vm3, %v510_v35, %v197_v30  ;;  %v528_v33 = vsel %vm513_vm3, %v509_v36, %v196_v31  ;;  %v3603_v29 = vunpack.i.l.bf16 %v3602_v58  ;;  %v3604_v60 = vunpack.i.h.bf16 %v3602_v58 }
 0x12a   :  { %866 = vmatmul.mubr.bf16.gmra.mrb[24].mxu0 %v600_v27  ;;  %v553_v40 = vsel %vm538_vm4, %v528_v33, %v292_v32 }
 0x12b   :  { %3091 = vmatprep.mubr.msk.bf16.mxu0 %vm730_vm7, %v603_v34  ;;  %v578_v4 = vsel %vm563_vm6, %v553_v40, %v3598_v53  ;;  %v285_v46 = vsel %vm142_vm1, %v3579_v59, %v3603_v29  ;;  %v293_v26 = vsel %vm151_vm2, %v3603_v29, %v3594_v25 }
 0x12c   :  { %v555_v49 = vsel %vm538_vm4, %v530_v63, %v285_v46  ;;  %v556_v50 = vsel %vm538_vm4, %v531_v42, %v293_v26  ;;  %v602_v51 = vpack.c.bf16 %v579_v45, %v578_v4  ;;  %v3607_v21 = vpop.permute.xlu0 %3606 }
 0x12d   :  { %v3608_v44 = vunpack.i.l.bf16 %v3607_v21  ;;  %v3609_v52 = vunpack.i.h.bf16 %v3607_v21 }
 0x12f   :  { %v140_v57 = vsel %vm133_vm0, %v4064_v38, %v3608_v44  ;;  %v141_v20 = vsel %vm133_vm0, %v4137_v8, %v3609_v52 }
 0x130   :  { %v221_v43 = vpop.permute.xlu0 %220 }
 0x131   :  { %v238_v59 = vsel %vm133_vm0, %v4064_v38, %v221_v43  ;;  %v286_v2 = vsel %vm142_vm1, %v221_v43, %v3604_v60 }
 0x132   :  { %876 = vmatmul.mubr.bf16.gmra.mrb[28].mxu0 %v602_v51  ;;  %v532_v11 = vsel %vm513_vm3, %v140_v57, %v238_v59  ;;  %v630_v57 = vld [vmem:[%s5586_s4] ss:$4 sm:$0x3] }
 0x133   :  { %v557_v3 = vsel %vm538_vm4, %v532_v11, %v238_v59 }
 0x134   :  { %v122_v47 = vpop.permute.xlu0 %121 }
 0x138   :  { %v223_v61 = vpop.permute.xlu0 %222 }
 0x139   :  { %v239_v12 = vsel %vm133_vm0, %v4137_v8, %v223_v61 }
 0x13a   :  { %v535_v62 = vsel %vm513_vm3, %v141_v20, %v239_v12 }
 0x13b   :  { %v560_v27 = vsel %vm538_vm4, %v535_v62, %v239_v12  ;;  %v3797_v62 = vld [vmem:[%s5587_s2 + $0x214] ss:$8 sps:$4 sm:$0xff]  }
 0x13c   :  { %v92_v1 = vpop.permute.xlu0 %91 }
 0x13d   :  { %v150_v33 = vsel %vm142_vm1, %v3609_v52, %v92_v1  ;;  %v247_v29 = vsel %vm142_vm1, %v223_v61, %v92_v1  ;;  %v3785_v52 = vld [vmem:[%s5587_s2 + $0x1f4] ss:$8 sps:$4 sm:$0xff]  }
 0x13e   :  { %v536_v51 = vsel %vm513_vm3, %v150_v33, %v247_v29  ;;  %v3801_v29 = vld [vmem:[%s5587_s2 + $0x220] ss:$8 sps:$4 sm:$0xff]  }
 0x140   :  { %v183_v31 = vpop.permute.xlu0 %182 }
 0x141   :  { %v199_v58 = vsel %vm151_vm2, %v92_v1, %v183_v31 }
 0x171   :  { %v3612_v18 = vpop.permute.xlu1 %3611 }
 0x172   :  { %v3614_v6 = vunpack.i.h.bf16 %v3612_v18  ;;  %v3613_v37 = vunpack.i.l.bf16 %v3612_v18 }
 0x174   :  { %v605_v7 = vpack.c.bf16 %v3614_v6, %v3613_v37  ;;  %v580_v55 = vsel %vm563_vm6, %v555_v49, %v3613_v37  ;;  %v581_v56 = vsel %vm563_vm6, %v556_v50, %v3614_v6 }
 0x175   :  { %v90_v24 = vpop.permute.xlu1 %89  ;;  %v604_v48 = vpack.c.bf16 %v581_v56, %v580_v55  ;;  %v3779_v56 = vld [vmem:[%s5587_s2 + $0x1e4] ss:$8 sps:$4 sm:$0xff]  }
 0x176   :  { %v149_v41 = vsel %vm142_vm1, %v3608_v44, %v90_v24  ;;  %v246_v54 = vsel %vm142_vm1, %v221_v43, %v90_v24  ;;  %3092 = vmatprep.mubr.msk.bf16.mxu0 %vm730_vm7, %v605_v7  ;;  %v158_v15 = vsel %vm151_vm2, %v90_v24, %v122_v47  ;;  %v632_v7 = vlaneseq  ;;  %2370 = vmatprep.subr.bf16.mxu0 %v3779_v56 }
 0x177   :  { %886 = vmatmul.mubr.bf16.gmra.mrb[32].mxu0 %v604_v48  ;;  %v533_v23 = vsel %vm513_vm3, %v149_v41, %v246_v54  ;;  %v3782_v41 = vld [vmem:[%s5587_s2 + $0x78] ss:$8 sps:$4 sm:$0xff]  }
 0x178   :  { %v558_v17 = vsel %vm538_vm4, %v533_v23, %v286_v2  ;;  %v4515_v55 = vshrl.u32 %v632_v7, 7  ;;  %v3786_v2 = vld [vmem:[%s5587_s2 + $0x8c] ss:$8 sps:$4 sm:$0xff]   ;;  %v3812_v7 = vld [vmem:[%s5587_s2 + $0xc8] ss:$8 sps:$4 sm:$0xff]  }
 0x179   :  { %v3617_v63 = vpop.permute.xlu1 %3616 }
 0x17a   :  { %v3619_v38 = vunpack.i.h.bf16 %v3617_v63  ;;  %v3618_v9 = vunpack.i.l.bf16 %v3617_v63  ;;  %v634_v59 = vsub.s32 0, %v4515_v55  ;;  %v5590_v11 = vsub.s32 1, %v4515_v55  ;;  %v3783_v63 = vld [vmem:[%s5587_s2 + $0x1f0] ss:$8 sps:$4 sm:$0xff]  }
 0x17c   :  { %v607_v0 = vpack.c.bf16 %v3619_v38, %v3618_v9  ;;  %v582_v5 = vsel %vm563_vm6, %v557_v3, %v3618_v9  ;;  %v583_v10 = vsel %vm563_vm6, %v558_v17, %v3619_v38  ;;  %v4545_v38 = vrot.slane %v630_v57, %v634_v59  ;;  %v3788_v9 = vld [vmem:[%s5587_s2 + $0x88] ss:$8 sps:$4 sm:$0xff]  }
 0x17d   :  { %v181_v13 = vpop.permute.xlu1 %180  ;;  %v606_v14 = vpack.c.bf16 %v583_v10, %v582_v5  ;;  %v4552_v3 = vrot.slane %v630_v57, %v5590_v11  ;;  %v3791_v5 = vld [vmem:[%s5587_s2 + $0x204] ss:$8 sps:$4 sm:$0xff]  }
 0x17e   :  { %v198_v16 = vsel %vm151_vm2, %v90_v24, %v181_v13  ;;  %3093 = vmatprep.mubr.msk.bf16.mxu0 %vm730_vm7, %v607_v0  ;;  %v294_v25 = vsel %vm151_vm2, %v3604_v60, %v181_v13  ;;  %v3777_v24 = vld [vmem:[%s5587_s2 + $0x1e0] ss:$8 sps:$4 sm:$0xff]   ;;  %v3780_v60 = vld [vmem:[%s5587_s2 + $0x7c] ss:$8 sps:$4 sm:$0xff]  }
 0x17f   :  { %v511_v53 = vsel %vm504_vm5, %v158_v15, %v198_v16  ;;  %896 = vmatmul.mubr.bf16.gmra.mrb[36].mxu0 %v606_v14  ;;  %1476 = vmatprep.subr.bf16.mxu1 %v3780_v60  ;;  %v3789_v0 = vld [vmem:[%s5587_s2 + $0x200] ss:$8 sps:$4 sm:$0xff]   ;;  %v3792_v10 = vld [vmem:[%s5587_s2 + $0x9c] ss:$8 sps:$4 sm:$0xff]  }
 0x180   :  { %v534_v19 = vsel %vm513_vm3, %v511_v53, %v198_v16  ;;  %2371 = vmatpush1.bf16.msra.mxu0 %v3777_v24  ;;  %1477 = vmatpush1.bf16.msra.mxu1 %v3782_v41  ;;  %v3794_v13 = vld [vmem:[%s5587_s2 + $0x98] ss:$8 sps:$4 sm:$0xff]   ;;  %v3815_v41 = vld [vmem:[%s5587_s2 + $0x244] ss:$8 sps:$4 sm:$0xff]  }
 0x181   :  { %v3622_v22 = vpop.permute.xlu1 %3621  ;;  %v559_v30 = vsel %vm538_vm4, %v534_v19, %v294_v25  ;;  %2372 = vmatprep.subr.bf16.mxu0 %v3785_v52  ;;  %1478 = vmatprep.subr.bf16.mxu1 %v3786_v2  ;;  %v3795_v25 = vld [vmem:[%s5587_s2 + $0x210] ss:$8 sps:$4 sm:$0xff]  }
 0x182   :  { %v3624_v8 = vunpack.i.h.bf16 %v3622_v22  ;;  %v3623_v28 = vunpack.i.l.bf16 %v3622_v22 }
 0x184   :  { %v609_v32 = vpack.c.bf16 %v3624_v8, %v3623_v28  ;;  %v584_v34 = vsel %vm563_vm6, %v559_v30, %v3623_v28  ;;  %v585_v35 = vsel %vm563_vm6, %v560_v27, %v3624_v8  ;;  %2373 = vmatpush1.bf16.msra.mxu0 %v3783_v63  ;;  %1479 = vmatpush1.bf16.msra.mxu1 %v3788_v9  ;;  %v3798_v8 = vld [vmem:[%s5587_s2 + $0xac] ss:$8 sps:$4 sm:$0xff]   ;;  %v3816_v63 = vld [vmem:[%s5587_s2 + $0xdc] ss:$8 sps:$4 sm:$0xff]  }
 0x185   :  { %v124_v36 = vpop.permute.xlu1 %123  ;;  %v608_v39 = vpack.c.bf16 %v585_v35, %v584_v34  ;;  %2374 = vmatprep.subr.bf16.mxu0 %v3791_v5  ;;  %1480 = vmatprep.subr.bf16.mxu1 %v3792_v10  ;;  %v3818_v5 = vld [vmem:[%s5587_s2 + $0xd8] ss:$8 sps:$4 sm:$0xff]  }
 0x186   :  { %v159_v42 = vsel %vm151_vm2, %v92_v1, %v124_v36  ;;  %3094 = vmatprep.mubr.msk.bf16.mxu0 %vm730_vm7, %v609_v32 }
 0x187   :  { %v512_v40 = vsel %vm504_vm5, %v159_v42, %v199_v58  ;;  %906 = vmatmul.mubr.bf16.gmra.mrb[40].mxu0 %v608_v39  ;;  %v3803_v42 = vld [vmem:[%s5587_s2 + $0x224] ss:$8 sps:$4 sm:$0xff]   ;;  %vm3054_vm5 = vcmask 1046534  }
 0x188   :  { %v537_v21 = vsel %vm513_vm3, %v512_v40, %v199_v58  ;;  %2375 = vmatpush1.bf16.msra.mxu0 %v3789_v0  ;;  %1481 = vmatpush1.bf16.msra.mxu1 %v3794_v13  ;;  %v3804_v40 = vld [vmem:[%s5587_s2 + $0xbc] ss:$8 sps:$4 sm:$0xff]   ;;  %vm3048_vm3 = vcmask 1044484  }
 0x189   :  { %v3627_v4 = vpop.permute.xlu0 %3626  ;;  %v271_v45 = vpop.permute.xlu1 %270  ;;  %2376 = vmatprep.subr.bf16.mxu0 %v3797_v62  ;;  %1482 = vmatprep.subr.bf16.mxu1 %v3798_v8 }
 0x18a   :  { %v3629_v46 = vunpack.i.h.bf16 %v3627_v4  ;;  %v3628_v26 = vunpack.i.l.bf16 %v3627_v4  ;;  %v287_v49 = vsel %vm142_vm1, %v223_v61, %v271_v45  ;;  %v295_v50 = vsel %vm151_vm2, %v271_v45, %v183_v31  ;;  %v3800_v31 = vld [vmem:[%s5587_s2 + $0xa8] ss:$8 sps:$4 sm:$0xff]  }
 0x18b   :  { %v561_v43 = vsel %vm538_vm4, %v536_v51, %v287_v49  ;;  %v562_v44 = vsel %vm538_vm4, %v537_v21, %v295_v50  ;;  %vm3051_vm4 = vcmask 1045509  }
 0x18c   :  { %v611_v18 = vpack.c.bf16 %v3629_v46, %v3628_v26  ;;  %v586_v6 = vsel %vm563_vm6, %v561_v43, %v3628_v26  ;;  %v587_v37 = vsel %vm563_vm6, %v562_v44, %v3629_v46  ;;  %2377 = vmatpush1.bf16.msra.mxu0 %v3795_v25  ;;  %1483 = vmatpush1.bf16.msra.mxu1 %v3800_v31  ;;  %v3806_v46 = vld [vmem:[%s5587_s2 + $0xb8] ss:$8 sps:$4 sm:$0xff]   ;;  %v3809_v43 = vld [vmem:[%s5587_s2 + $0x234] ss:$8 sps:$4 sm:$0xff]   ;;  %vm3057_vm6 = vcmask 1047559  }
 0x18d   :  { %v610_v47 = vpack.c.bf16 %v587_v37, %v586_v6  ;;  %2378 = vmatprep.subr.bf16.mxu0 %v3803_v42  ;;  %1484 = vmatprep.subr.bf16.mxu1 %v3804_v40  ;;  %v3807_v6 = vld [vmem:[%s5587_s2 + $0x230] ss:$8 sps:$4 sm:$0xff]   ;;  %v3810_v37 = vld [vmem:[%s5587_s2 + $0xcc] ss:$8 sps:$4 sm:$0xff]  }
 0x18e   :  { %3095 = vmatprep.mubr.msk.bf16.mxu0 %vm730_vm7, %v611_v18 }
 0x18f   :  { %916 = vmatmul.mubr.bf16.gmra.mrb[44].mxu0 %v610_v47 }
 0x190   :  { %2379 = vmatpush1.bf16.msra.mxu0 %v3801_v29  ;;  %1485 = vmatpush1.bf16.msra.mxu1 %v3806_v46 }
 0x191   :  { %2380 = vmatprep.subr.bf16.mxu0 %v3809_v43  ;;  %1486 = vmatprep.subr.bf16.mxu1 %v3810_v37 }
 0x194   :  { %2381 = vmatpush1.bf16.msra.mxu0 %v3807_v6  ;;  %1487 = vmatpush1.bf16.msra.mxu1 %v3812_v7 }
 0x195   :  { %2382 = vmatprep.subr.bf16.mxu0 %v3815_v41  ;;  %1488 = vmatprep.subr.bf16.mxu1 %v3816_v63 }
 0x198   :  { %1489 = vmatpush1.bf16.msra.mxu1 %v3818_v5 }
 0x1cd   :  { %v807_v48 = vpop.f32.mrb[0].mxu0 }
 0x1ce   :  { %v809_v54 = vpop.f32.mrb[1].mxu0  ;;  %v808_v28 = vadd.f32 %v807_v48, %v4545_v38 }
 0x1cf   :  { %v811_v23 = vpop.f32.mrb[2].mxu0  ;;  %v810_v32 = vadd.f32 %v809_v54, %v4552_v3 }
 0x1d0   :  { %v813_v61 = vpop.f32.mrb[3].mxu0  ;;  %v812_v17 = vadd.f32 %v811_v23, %v4545_v38 }
 0x1d1   :  { %v814_v20 = vadd.f32 %v813_v61, %v4552_v3  ;;  %v3813_v61 = vld [vmem:[%s5587_s2 + $0x240] ss:$8 sps:$4 sm:$0xff]  }
 0x1d2   :  { %v958_v16 = vrot.slane %v812_v17, 4  ;;  %2383 = vmatpush1.bf16.msra.mxu0 %v3813_v61 }
 0x1d3   :  { %v961_v27 = vrot.slane %v814_v20, 4 }
 0x1d5   :  { %v817_v12 = vpop.f32.mrb[4].mxu0 }
 0x1d6   :  { %v818_v14 = vadd.f32 %v817_v12, %v4545_v38  ;;  %v819_v15 = vpop.f32.mrb[5].mxu0  ;;  %v3239_v12 = vld [vmem:[%s5587_s2 + $0x250] sm:$0xff] }
 0x1d7   :  { %v820_v1 = vadd.f32 %v819_v15, %v4552_v3  ;;  %v821_v53 = vpop.f32.mrb[6].mxu0  ;;  %v4646_v15 = vcombine.high %v3239_v12, %v3239_v12 }
 0x1d8   :  { %v959_v19 = vrot.slane %v818_v14, 4  ;;  %v823_v22 = vpop.f32.mrb[7].mxu0  ;;  %v822_v24 = vadd.f32 %v821_v53, %v4545_v38 }
 0x1d9   :  { %v962_v30 = vrot.slane %v820_v1, 4  ;;  %v824_v54 = vadd.f32 %v823_v22, %v4552_v3  ;;  %v3254_v1 = vcombine.low %v3239_v12, %v3239_v12  ;;  %3256 = vmatprep.subr.msk.bf16.mxu0 %vm142_vm1, %v4646_v15 }
 0x1da   :  { %v960_v34 = vsel %vm142_vm1, %v958_v16, %v959_v19  ;;  %v4585_v35 = vmax.f32 %v812_v17, %v959_v19  ;;  %v3110_v16 = vld [vmem:[%s5587_s2 + $0xe8] sm:$0xff] }
 0x1db   :  { %v963_v36 = vsel %vm142_vm1, %v961_v27, %v962_v30  ;;  %v1041_v39 = vmax.f32 %v814_v20, %v962_v30  ;;  %v4588_v58 = vmax.f32 %v808_v28, %v960_v34  ;;  %v3126_v19 = vcombine.high %v3110_v16, %v3110_v16 }
 0x1dc   :  { %v1039_v33 = vmax.f32 %v810_v32, %v963_v36  ;;  %v3125_v22 = vcombine.low %v3110_v16, %v3110_v16  ;;  %v4656_v25 = vsel %vm142_vm1, %v3254_v1, 0  ;;  %v3951_v27 = vmov 0  }
 0x1dd   :  { %v827_v4 = vpop.f32.mrb[8].mxu0  ;;  %v3630_v45 = vpack.i.bf16 %v1041_v39, %v4585_v35  ;;  %3127 = vmatprep.subr.msk.bf16.mxu1 %vm142_vm1, %v3126_v19  ;;  %2385 = vmatpush1.bf16.msra.mxu0 %v4656_v25 }
 0x1de   :  { %v828_v26 = vadd.f32 %v827_v4, %v4545_v38  ;;  %v829_v49 = vpop.f32.mrb[9].mxu0  ;;  %v3635_v50 = vpack.i.bf16 %v1039_v33, %v4588_v58  ;;  %v1471_v8 = vsel %vm142_vm1, %v3125_v22, 0  ;;  %2402 = vmatprep.mubr.bf16.mxu0 %v3951_v27  ;;  %1508 = vmatprep.mubr.bf16.mxu1 %v3951_v27 }
 0x1df   :  { %v830_v51 = vadd.f32 %v829_v49, %v4552_v3  ;;  %v831_v21 = vpop.f32.mrb[10].mxu0  ;;  %3631 = vrot.lane.b32.xlu0 %v3630_v45, %s3950_s21  ;;  %1491 = vmatpush1.bf16.msra.mxu1 %v1471_v8 }
 0x1e0   :  { %v832_v44 = vadd.f32 %v831_v21, %v4545_v38  ;;  %v833_v18 = vpop.f32.mrb[11].mxu0  ;;  %3636 = vrot.lane.b32.xlu1 %v3635_v50, %s3950_s21  ;;  %v964_v56 = vrot.slane %v828_v26, 4 }
 0x1e1   :  { %v834_v47 = vadd.f32 %v833_v18, %v4552_v3  ;;  %v967_v48 = vrot.slane %v830_v51, 4 }
 0x1e2   :  { %v965_v57 = vrot.slane %v832_v44, 4 }
 0x1e3   :  { %v968_v60 = vrot.slane %v834_v47, 4 }
 0x1e4   :  { %v966_v23 = vsel %vm142_vm1, %v964_v56, %v965_v57  ;;  %v4628_v52 = vmax.f32 %v828_v26, %v965_v57 }
 0x1e5   :  { %v969_v2 = vsel %vm142_vm1, %v967_v48, %v968_v60  ;;  %v1045_v9 = vmax.f32 %v830_v51, %v968_v60  ;;  %v837_v17 = vpop.f32.mrb[12].mxu0  ;;  %v4637_v0 = vmax.f32 %v822_v24, %v966_v23 }
 0x1e6   :  { %v839_v10 = vpop.f32.mrb[13].mxu0  ;;  %v1043_v20 = vmax.f32 %v824_v54, %v969_v2  ;;  %v838_v40 = vadd.f32 %v837_v17, %v4545_v38 }
 0x1e7   :  { %v841_v13 = vpop.f32.mrb[14].mxu0  ;;  %v3640_v14 = vpack.i.bf16 %v1045_v9, %v4628_v52  ;;  %v840_v46 = vadd.f32 %v839_v10, %v4552_v3 }
 0x1e8   :  { %v843_v53 = vpop.f32.mrb[15].mxu0  ;;  %v3645_v62 = vpack.i.bf16 %v1043_v20, %v4637_v0  ;;  %v842_v28 = vadd.f32 %v841_v13, %v4545_v38 }
 0x1e9   :  { %3641 = vrot.lane.b32.xlu0 %v3640_v14, %s3950_s21  ;;  %v844_v30 = vadd.f32 %v843_v53, %v4552_v3 }
 0x1ea   :  { %3646 = vrot.lane.b32.xlu1 %v3645_v62, %s3950_s21  ;;  %v970_v42 = vrot.slane %v842_v28, 4 }
 0x1eb   :  { %v973_v4 = vrot.slane %v844_v30, 4 }
 0x1ed   :  { %v847_v31 = vpop.f32.mrb[16].mxu0 }
 0x1ee   :  { %v848_v32 = vadd.f32 %v847_v31, %v4545_v38  ;;  %v849_v34 = vpop.f32.mrb[17].mxu0 }
 0x1ef   :  { %v850_v36 = vadd.f32 %v849_v34, %v4552_v3  ;;  %v851_v39 = vpop.f32.mrb[18].mxu0 }
 0x1f0   :  { %v971_v33 = vrot.slane %v848_v32, 4  ;;  %v853_v29 = vpop.f32.mrb[19].mxu0  ;;  %v852_v54 = vadd.f32 %v851_v39, %v4545_v38 }
 0x1f1   :  { %v974_v45 = vrot.slane %v850_v36, 4  ;;  %v854_v63 = vadd.f32 %v853_v29, %v4552_v3 }
 0x1f2   :  { %v972_v26 = vsel %vm142_vm1, %v970_v42, %v971_v33  ;;  %v4671_v49 = vmax.f32 %v842_v28, %v971_v33 }
 0x1f3   :  { %v975_v50 = vsel %vm142_vm1, %v973_v4, %v974_v45  ;;  %v1049_v51 = vmax.f32 %v844_v30, %v974_v45  ;;  %v4674_v21 = vmax.f32 %v838_v40, %v972_v26 }
 0x1f4   :  { %v1047_v43 = vmax.f32 %v840_v46, %v975_v50 }
 0x1f5   :  { %v857_v44 = vpop.f32.mrb[20].mxu0  ;;  %v3650_v18 = vpack.i.bf16 %v1049_v51, %v4671_v49 }
 0x1f6   :  { %v858_v6 = vadd.f32 %v857_v44, %v4545_v38  ;;  %v859_v37 = vpop.f32.mrb[21].mxu0  ;;  %v3655_v47 = vpack.i.bf16 %v1047_v43, %v4674_v21 }
 0x1f7   :  { %v860_v7 = vadd.f32 %v859_v37, %v4552_v3  ;;  %v861_v56 = vpop.f32.mrb[22].mxu0  ;;  %3651 = vrot.lane.b32.xlu0 %v3650_v18, %s3950_s21 }
 0x1f8   :  { %v862_v57 = vadd.f32 %v861_v56, %v4545_v38  ;;  %v863_v24 = vpop.f32.mrb[23].mxu0  ;;  %3656 = vrot.lane.b32.xlu1 %v3655_v47, %s3950_s21  ;;  %v976_v60 = vrot.slane %v858_v6, 4 }
 0x1f9   :  { %v864_v48 = vadd.f32 %v863_v24, %v4552_v3  ;;  %v979_v23 = vrot.slane %v860_v7, 4 }
 0x1fa   :  { %v977_v41 = vrot.slane %v862_v57, 4 }
 0x1fb   :  { %v980_v61 = vrot.slane %v864_v48, 4 }
 0x1fc   :  { %v978_v2 = vsel %vm142_vm1, %v976_v60, %v977_v41  ;;  %v4687_v9 = vmax.f32 %v858_v6, %v977_v41  ;;  %v3825_v60 = vld [vmem:[%s5587_s2 + $0x4] ss:$8 sps:$4 sm:$0xff]  }
 0x1fd   :  { %v981_v17 = vsel %vm142_vm1, %v979_v23, %v980_v61  ;;  %v1053_v5 = vmax.f32 %v860_v7, %v980_v61  ;;  %v867_v10 = vpop.f32.mrb[24].mxu0  ;;  %v4690_v20 = vmax.f32 %v852_v54, %v978_v2  ;;  %1642 = vmatprep.subr.bf16.mxu1 %v3825_v60 }
 0x1fe   :  { %v1051_v12 = vmax.f32 %v854_v63, %v981_v17  ;;  %v869_v13 = vpop.f32.mrb[25].mxu0  ;;  %v868_v31 = vadd.f32 %v867_v10, %v4545_v38 }
 0x1ff   :  { %v3660_v14 = vpack.i.bf16 %v1053_v5, %v4687_v9  ;;  %v871_v16 = vpop.f32.mrb[26].mxu0  ;;  %v870_v39 = vadd.f32 %v869_v13, %v4552_v3 }
 0x200   :  { %v3665_v1 = vpack.i.bf16 %v1051_v12, %v4690_v20  ;;  %v873_v53 = vpop.f32.mrb[27].mxu0  ;;  %v872_v62 = vadd.f32 %v871_v16, %v4545_v38 }
 0x201   :  { %3661 = vrot.lane.b32.xlu0 %v3660_v14, %s3950_s21  ;;  %v874_v19 = vadd.f32 %v873_v53, %v4552_v3 }
 0x202   :  { %3666 = vrot.lane.b32.xlu1 %v3665_v1, %s3950_s21  ;;  %v982_v8 = vrot.slane %v872_v62, 4 }
 0x203   :  { %v985_v32 = vrot.slane %v874_v19, 4 }
 0x205   :  { %v877_v22 = vpop.f32.mrb[28].mxu0 }
 0x206   :  { %v878_v28 = vadd.f32 %v877_v22, %v4545_v38  ;;  %v879_v30 = vpop.f32.mrb[29].mxu0 }
 0x207   :  { %v880_v34 = vadd.f32 %v879_v30, %v4552_v3  ;;  %v881_v36 = vpop.f32.mrb[30].mxu0 }
 0x208   :  { %v983_v42 = vrot.slane %v878_v28, 4  ;;  %v883_v33 = vpop.f32.mrb[31].mxu0  ;;  %v882_v41 = vadd.f32 %v881_v36, %v4545_v38 }
 0x209   :  { %v986_v29 = vrot.slane %v880_v34, 4  ;;  %v884_v54 = vadd.f32 %v883_v33, %v4552_v3 }
 0x20a   :  { %v984_v40 = vsel %vm142_vm1, %v982_v8, %v983_v42  ;;  %v4703_v4 = vmax.f32 %v872_v62, %v983_v42 }
 0x20b   :  { %v987_v45 = vsel %vm142_vm1, %v985_v32, %v986_v29  ;;  %v1057_v46 = vmax.f32 %v874_v19, %v986_v29  ;;  %v4706_v26 = vmax.f32 %v868_v31, %v984_v40 }
 0x20c   :  { %v1055_v50 = vmax.f32 %v870_v39, %v987_v45 }
 0x20d   :  { %v3670_v51 = vpack.i.bf16 %v1057_v46, %v4703_v4 }
 0x20e   :  { %v3675_v43 = vpack.i.bf16 %v1055_v50, %v4706_v26 }
 0x20f   :  { %3671 = vrot.lane.b32.xlu0 %v3670_v51, %s3950_s21 }
 0x210   :  { %3676 = vrot.lane.b32.xlu1 %v3675_v43, %s3950_s21 }
 0x24a   :  { %v887_v44 = vpop.f32.mrb[32].mxu0 }
 0x24b   :  { %v888_v18 = vadd.f32 %v887_v44, %v4545_v38  ;;  %v889_v6 = vpop.f32.mrb[33].mxu0 }
 0x24c   :  { %v890_v37 = vadd.f32 %v889_v6, %v4552_v3  ;;  %v891_v47 = vpop.f32.mrb[34].mxu0 }
 0x24d   :  { %v892_v7 = vadd.f32 %v891_v47, %v4545_v38  ;;  %v893_v56 = vpop.f32.mrb[35].mxu0  ;;  %v988_v24 = vrot.slane %v888_v18, 4 }
 0x24e   :  { %v894_v57 = vadd.f32 %v893_v56, %v4552_v3  ;;  %v991_v23 = vrot.slane %v890_v37, 4 }
 0x24f   :  { %v989_v48 = vrot.slane %v892_v7, 4 }
 0x250   :  { %v992_v61 = vrot.slane %v894_v57, 4 }
 0x251   :  { %v3632_v63 = vpop.permute.xlu0 %3631  ;;  %v990_v2 = vsel %vm142_vm1, %v988_v24, %v989_v48  ;;  %v4722_v17 = vmax.f32 %v888_v18, %v989_v48 }
 0x252   :  { %v3634_v5 = vunpack.i.h.bf16 %v3632_v63  ;;  %v3633_v10 = vunpack.i.l.bf16 %v3632_v63  ;;  %v3637_v12 = vpop.permute.xlu1 %3636  ;;  %v993_v13 = vsel %vm142_vm1, %v991_v23, %v992_v61  ;;  %v1061_v14 = vmax.f32 %v890_v37, %v992_v61  ;;  %v897_v16 = vpop.f32.mrb[36].mxu0 }
 0x253   :  { %v3639_v1 = vunpack.i.h.bf16 %v3637_v12  ;;  %v3638_v53 = vunpack.i.l.bf16 %v3637_v12  ;;  %v899_v19 = vpop.f32.mrb[37].mxu0  ;;  %v4726_v22 = vmax.f32 %v882_v41, %v990_v2  ;;  %v1059_v8 = vmax.f32 %v884_v54, %v993_v13 }
 0x254   :  { %v1168_v62 = vsel %vm1166_vm8, %v3633_v10, %v3634_v5  ;;  %v901_v31 = vpop.f32.mrb[38].mxu0  ;;  %v3680_v32 = vpack.i.bf16 %v1061_v14, %v4722_v17  ;;  %v900_v45 = vadd.f32 %v899_v19, %v4552_v3 }
 0x255   :  { %v1200_v28 = vmax.f32 %v4585_v35, %v1168_v62  ;;  %v1167_v30 = vsel %vm1166_vm8, %v3638_v53, %v3639_v1  ;;  %v902_v36 = vadd.f32 %v901_v31, %v4545_v38  ;;  %v903_v39 = vpop.f32.mrb[39].mxu0  ;;  %v3685_v42 = vpack.i.bf16 %v1059_v8, %v4726_v22 }
 0x256   :  { %v1199_v34 = vmax.f32 %v4588_v58, %v1167_v30  ;;  %v904_v29 = vadd.f32 %v903_v39, %v4552_v3  ;;  %3681 = vrot.lane.b32.xlu0 %v3680_v32, %s3950_s21  ;;  %v898_v35 = vadd.f32 %v897_v16, %v4545_v38 }
 0x257   :  { %v4734_v33 = vmax.f32 %v1200_v28, 0.0  ;;  %v994_v46 = vrot.slane %v902_v36, 4  ;;  %3686 = vrot.lane.b32.xlu1 %v3685_v42, %s3950_s21 }
 0x258   :  { %v4739_v40 = vmax.f32 %v1199_v34, 0.0  ;;  %v997_v44 = vrot.slane %v904_v29, 4 }
 0x259   :  { %v1248_v58 = vrot.slane %v4734_v33, 2  ;;  %v1733_v50 = vrot.slane %v4734_v33, 3  ;;  %v1976_v51 = vrot.slane %v4734_v33, 7  ;;  %v2233_v43 = vrot.slane %v4734_v33, 4 }
 0x25a   :  { %v1247_v18 = vrot.slane %v4739_v40, 2  ;;  %v1306_v6 = vrot.slane %v4739_v40, 6  ;;  %v1307_v37 = vrot.slane %v4734_v33, 6  ;;  %v907_v47 = vpop.f32.mrb[40].mxu0  ;;  %v1338_v56 = vrot.slane %v4739_v40, 5 }
 0x25b   :  { %v3642_v7 = vpop.permute.xlu0 %3641  ;;  %v1715_v57 = vrot.slane %v4739_v40, 1  ;;  %v1732_v24 = vrot.slane %v4739_v40, 3  ;;  %v1975_v48 = vrot.slane %v4739_v40, 7  ;;  %v908_v60 = vadd.f32 %v907_v47, %v4545_v38  ;;  %v909_v41 = vpop.f32.mrb[41].mxu0 }
 0x25c   :  { %v3644_v54 = vunpack.i.h.bf16 %v3642_v7  ;;  %v3643_v23 = vunpack.i.l.bf16 %v3642_v7  ;;  %v3647_v61 = vpop.permute.xlu1 %3646  ;;  %v4756_v63 = vsel %vm142_vm1, %v1247_v18, %v2233_v43  ;;  %v910_v2 = vadd.f32 %v909_v41, %v4552_v3  ;;  %v911_v5 = vpop.f32.mrb[42].mxu0 }
 0x25d   :  { %v3649_v10 = vunpack.i.h.bf16 %v3647_v61  ;;  %v3648_v12 = vunpack.i.l.bf16 %v3647_v61  ;;  %v1308_v13 = vsel %vm151_vm2, %v1306_v6, %v1307_v37  ;;  %v995_v14 = vrot.slane %v908_v60, 4  ;;  %v913_v53 = vpop.f32.mrb[43].mxu0 }
 0x25e   :  { %v1170_v16 = vsel %vm1166_vm8, %v3643_v23, %v3644_v54  ;;  %v4764_v1 = vadd.f32 %v911_v5, %v4545_v38  ;;  %v4767_v62 = vsel %vm142_vm1, %v1308_v13, %v1338_v56  ;;  %v998_v19 = vrot.slane %v910_v2, 4 }
 0x25f   :  { %v1202_v8 = vmax.f32 %v4628_v52, %v1170_v16  ;;  %v1169_v28 = vsel %vm1166_vm8, %v3648_v12, %v3649_v10  ;;  %v4772_v30 = vadd.f32 %v913_v53, %v4552_v3  ;;  %v996_v31 = vsel %vm142_vm1, %v994_v46, %v995_v14 }
 0x260   :  { %v4775_v32 = vmax.f32 %v902_v36, %v995_v14  ;;  %v1201_v34 = vmax.f32 %v4637_v0, %v1169_v28  ;;  %v1249_v39 = vsel %vm133_vm0, %v1247_v18, %v1248_v58  ;;  %v999_v42 = vsel %vm142_vm1, %v997_v44, %v998_v19  ;;  %v3823_v28 = vld [vmem:[%s5587_s2] ss:$8 sps:$4 sm:$0xff]  }
 0x261   :  { %v1065_v43 = vmax.f32 %v904_v29, %v998_v19  ;;  %v4780_v37 = vmax.f32 %v1202_v8, 0.0  ;;  %v4782_v47 = vmax.f32 %v898_v35, %v996_v31  ;;  %v1063_v7 = vmax.f32 %v900_v45, %v999_v42  ;;  %v3828_v42 = vld [vmem:[%s5587_s2 + $0x14] ss:$8 sps:$4 sm:$0xff]  }
 0x262   :  { %v4784_v52 = vmax.f32 %v1201_v34, 0.0  ;;  %v4788_v56 = vsel %vm142_vm1, %v4739_v40, %v1249_v39  ;;  %v4791_v36 = vsel %vm1731_vm9, %v1732_v24, %v1733_v50  ;;  %v917_v35 = vpop.f32.mrb[44].mxu0 }
 0x263   :  { %v1251_v0 = vrot.slane %v4780_v37, 2  ;;  %v1736_v46 = vrot.slane %v4780_v37, 3  ;;  %v1979_v29 = vrot.slane %v4780_v37, 7  ;;  %v2234_v58 = vrot.slane %v4780_v37, 4  ;;  %v919_v18 = vpop.f32.mrb[45].mxu0 }
 0x264   :  { %v918_v44 = vadd.f32 %v917_v35, %v4545_v38  ;;  %v3690_v45 = vpack.i.bf16 %v1065_v43, %v4775_v32  ;;  %v3695_v60 = vpack.i.bf16 %v1063_v7, %v4782_v47  ;;  %v1250_v41 = vrot.slane %v4784_v52, 2  ;;  %v921_v24 = vpop.f32.mrb[46].mxu0 }
 0x265   :  { %v920_v50 = vadd.f32 %v919_v18, %v4552_v3  ;;  %v1309_v54 = vrot.slane %v4784_v52, 6  ;;  %v1310_v23 = vrot.slane %v4780_v37, 6  ;;  %v1339_v61 = vrot.slane %v4784_v52, 5  ;;  %v923_v10 = vpop.f32.mrb[47].mxu0 }
 0x266   :  { %v1000_v2 = vrot.slane %v918_v44, 4  ;;  %v922_v5 = vadd.f32 %v921_v24, %v4545_v38  ;;  %3691 = vrot.lane.b32.xlu0 %v3690_v45, %s3950_s21  ;;  %3696 = vrot.lane.b32.xlu1 %v3695_v60, %s3950_s21  ;;  %v2250_v12 = vsel %vm142_vm1, %v1250_v41, %v2234_v58  ;;  %v1252_v13 = vsel %vm133_vm0, %v1250_v41, %v1251_v0 }
 0x267   :  { %v1003_v14 = vrot.slane %v920_v50, 4  ;;  %v924_v16 = vadd.f32 %v923_v10, %v4552_v3  ;;  %v2257_v53 = vpack.c.bf16 %v2250_v12, %v4756_v63  ;;  %v1311_v19 = vsel %vm151_vm2, %v1309_v54, %v1310_v23 }
 0x268   :  { %v1001_v8 = vrot.slane %v922_v5, 4  ;;  %v1355_v38 = vsel %vm142_vm1, %v1311_v19, %v1339_v61  ;;  %v4821_v31 = vsel %vm142_vm1, %v4784_v52, %v1252_v13  ;;  %v1716_v34 = vrot.slane %v4784_v52, 1 }
 0x269   :  { %v1004_v3 = vrot.slane %v924_v16, 4  ;;  %v3652_v39 = vpop.permute.xlu0 %3651  ;;  %3257 = vmatmul.mubr.msk.bf16.vlgmr.msra.gmra.mrb[48].mxu0 %vm1457_vm10, %v2257_v53  ;;  %v1362_v63 = vpack.c.bf16 %v1355_v38, %v4767_v62  ;;  %v1287_v43 = vpack.c.bf16 %v4821_v31, %v4788_v56  ;;  %v1735_v7 = vrot.slane %v4784_v52, 3  ;;  %v3852_v56 = vld [vmem:[%s5587_s2 + $0x110] ss:$8 sps:$4 sm:$0xff]   ;;  %v3857_v31 = vld [vmem:[%s5587_s2 + $0x124] ss:$8 sps:$4 sm:$0xff]  }
 0x26a   :  { %v1002_v0 = vsel %vm142_vm1, %v1000_v2, %v1001_v8  ;;  %v4833_v58 = vmax.f32 %v918_v44, %v1001_v8  ;;  %v3654_v35 = vunpack.i.h.bf16 %v3652_v39  ;;  %v3653_v18 = vunpack.i.l.bf16 %v3652_v39  ;;  %v3657_v45 = vpop.permute.xlu1 %3656  ;;  %2412 = vmatprep.mubr.bf16.mxu0 %v3951_v27  ;;  %v3826_v2 = vld [vmem:[%s5587_s2 + $0x10] ss:$8 sps:$4 sm:$0xff]  }
 0x26b   :  { %v1005_v62 = vsel %vm142_vm1, %v1003_v14, %v1004_v3  ;;  %v1069_v60 = vmax.f32 %v920_v50, %v1004_v3  ;;  %v3659_v41 = vunpack.i.h.bf16 %v3657_v45  ;;  %v3658_v24 = vunpack.i.l.bf16 %v3657_v45  ;;  %3128 = vmatmul.mubr.msk.bf16.vlgmr.msra.gmra.mrb[0].mxu1 %vm1457_vm10, %v1362_v63  ;;  %v3832_v39 = vld [vmem:[%s5587_s2 + $0x30] ss:$8 sps:$4 sm:$0xff]  }
 0x26c   :  { %v1172_v23 = vsel %vm1166_vm8, %v3653_v18, %v3654_v35  ;;  %v4840_v61 = vmax.f32 %v4764_v1, %v1002_v0  ;;  %v1067_v44 = vmax.f32 %v4772_v30, %v1005_v62  ;;  %1518 = vmatprep.mubr.bf16.mxu1 %v3951_v27  ;;  %1643 = vmatpush1.bf16.msra.mxu1 %v3823_v28  ;;  %v1978_v50 = vrot.slane %v4784_v52, 7  ;;  %v3831_v1 = vld [vmem:[%s5587_s2 + $0x24] ss:$8 sps:$4 sm:$0xff]   ;;  %v4911_v45 = vld [vmem:[%s5587_s2 + $0x70] sm:$0xff] }
 0x26d   :  { %v1204_v5 = vmax.f32 %v4671_v49, %v1172_v23  ;;  %v1171_v10 = vsel %vm1166_vm8, %v3658_v24, %v3659_v41  ;;  %v3705_v12 = vpack.i.bf16 %v1069_v60, %v4833_v58  ;;  %1644 = vmatprep.subr.bf16.mxu1 %v3828_v42  ;;  %v1737_v30 = vsel %vm1731_vm9, %v1735_v7, %v1736_v46  ;;  %v3829_v46 = vld [vmem:[%s5587_s2 + $0x20] ss:$8 sps:$4 sm:$0xff]   ;;  %v3837_v0 = vld [vmem:[%s5587_s2 + $0x44] ss:$8 sps:$4 sm:$0xff]  }
 0x26e   :  { %v1203_v13 = vmax.f32 %v4674_v21, %v1171_v10  ;;  %v3700_v14 = vpack.i.bf16 %v1067_v44, %v4840_v61  ;;  %v4861_v49 = vsel %vm142_vm1, %v1715_v57, %v4791_v36  ;;  %v4864_v16 = vsel %vm142_vm1, %v1716_v34, %v1737_v30 }
 0x26f   :  { %v1220_v53 = vmax.f32 %v1204_v5, 0.0  ;;  %3706 = vrot.lane.b32.xlu0 %v3705_v12, %s3950_s21  ;;  %v1772_v19 = vpack.c.bf16 %v4864_v16, %v4861_v49  ;;  %v1977_v21 = vsel %vm1974_vm11, %v1975_v48, %v1976_v51  ;;  %v1980_v57 = vsel %vm1974_vm11, %v1978_v50, %v1979_v29  ;;  %v3834_v48 = vld [vmem:[%s5587_s2 + $0x34] ss:$8 sps:$4 sm:$0xff]   ;;  %v3835_v5 = vld [vmem:[%s5587_s2 + $0x40] ss:$8 sps:$4 sm:$0xff]  }
 0x270   :  { %v4877_v36 = vmax.f32 %v1203_v13, 0.0  ;;  %3701 = vrot.lane.b32.xlu1 %v3700_v14, %s3950_s21  ;;  %1645 = vmatpush1.bf16.msra.mxu1 %v3826_v2  ;;  %v4886_v33 = vsel %vm142_vm1, %v1977_v21, %v1306_v6  ;;  %v4891_v51 = vsel %vm142_vm1, %v1980_v57, %v1309_v54  ;;  %v3147_v30 = vcombine.high %v4911_v45, %v4911_v45  ;;  %v3880_v49 = vld [vmem:[%s5587_s2 + $0x19c] ss:$8 sps:$4 sm:$0xff]   ;;  %v3878_v16 = vld [vmem:[%s5587_s2 + $0x198] ss:$8 sps:$4 sm:$0xff]  }
 0x271   :  { %1646 = vmatprep.subr.bf16.mxu1 %v3831_v1  ;;  %v1254_v29 = vrot.slane %v1220_v53, 2  ;;  %v1739_v6 = vrot.slane %v1220_v53, 3  ;;  %v2235_v3 = vrot.slane %v1220_v53, 4  ;;  %v1313_v54 = vrot.slane %v1220_v53, 6 }
 0x272   :  { %v1253_v37 = vrot.slane %v4877_v36, 2  ;;  %v1717_v38 = vrot.slane %v4877_v36, 1  ;;  %v1738_v40 = vrot.slane %v4877_v36, 3  ;;  %v1312_v7 = vrot.slane %v4877_v36, 6 }
 0x273   :  { %v3662_v8 = vpop.permute.xlu0 %3661  ;;  %v2023_v41 = vpack.c.bf16 %v4891_v51, %v4886_v33  ;;  %v1981_v2 = vrot.slane %v4877_v36, 7  ;;  %v1982_v10 = vrot.slane %v1220_v53, 7  ;;  %v1340_v1 = vrot.slane %v4877_v36, 5  ;;  %v3933_v51 = vld [vmem:[%s5587_s2 + $0x204] ss:$8 sps:$4 sm:$0xff]  }
 0x274   :  { %v3664_v28 = vunpack.i.h.bf16 %v3662_v8  ;;  %v3663_v34 = vunpack.i.l.bf16 %v3662_v8  ;;  %v3667_v52 = vpop.permute.xlu1 %3666  ;;  %1647 = vmatpush1.bf16.msra.mxu1 %v3829_v46  ;;  %v1255_v35 = vsel %vm133_vm0, %v1253_v37, %v1254_v29  ;;  %v1740_v60 = vsel %vm1731_vm9, %v1738_v40, %v1739_v6 }
 0x275   :  { %v3669_v63 = vunpack.i.h.bf16 %v3667_v52  ;;  %v3668_v42 = vunpack.i.l.bf16 %v3667_v52  ;;  %1648 = vmatprep.subr.bf16.mxu1 %v3834_v48  ;;  %v4915_v62 = vsel %vm142_vm1, %v4877_v36, %v1255_v35  ;;  %v4923_v44 = vsel %vm142_vm1, %v1717_v38, %v1740_v60  ;;  %v3838_v38 = vld [vmem:[%s5587_s2 + $0x50] ss:$8 sps:$4 sm:$0xff]  }
 0x276   :  { %v1174_v18 = vsel %vm1166_vm8, %v3663_v34, %v3664_v28  ;;  %v1314_v14 = vsel %vm151_vm2, %v1312_v7, %v1313_v54  ;;  %v1983_v21 = vsel %vm1974_vm11, %v1981_v2, %v1982_v10 }
 0x277   :  { %v1206_v24 = vmax.f32 %v4687_v9, %v1174_v18  ;;  %v1173_v23 = vsel %vm1166_vm8, %v3668_v42, %v3669_v63  ;;  %v3840_v9 = vld [vmem:[%s5587_s2 + $0x54] ss:$8 sps:$4 sm:$0xff]   ;;  %v1356_v6 = vsel %vm142_vm1, %v1314_v14, %v1340_v1  ;;  %v4947_v52 = vsel %vm142_vm1, %v1983_v21, %v1312_v7  ;;  %v3841_v7 = vld [vmem:[%s5587_s2 + $0x60] ss:$8 sps:$4 sm:$0xff]  }
 0x278   :  { %v1205_v50 = vmax.f32 %v4690_v20, %v1173_v23  ;;  %1649 = vmatpush1.bf16.msra.mxu1 %v3832_v39  ;;  %v2251_v20 = vsel %vm142_vm1, %v1253_v37, %v2235_v3  ;;  %v3843_v37 = vld [vmem:[%s5587_s2 + $0x64] ss:$8 sps:$4 sm:$0xff]  }
 0x279   :  { %v1222_v12 = vmax.f32 %v1206_v24, 0.0  ;;  %1650 = vmatprep.subr.bf16.mxu1 %v3837_v0 }
 0x27a   :  { %v1221_v13 = vmax.f32 %v1205_v50, 0.0 }
 0x27b   :  { %v2236_v57 = vrot.slane %v1222_v12, 4  ;;  %v1316_v53 = vrot.slane %v1222_v12, 6  ;;  %v1257_v46 = vrot.slane %v1222_v12, 2  ;;  %v1742_v48 = vrot.slane %v1222_v12, 3 }
 0x27c   :  { %v1256_v36 = vrot.slane %v1221_v13, 2  ;;  %v1315_v29 = vrot.slane %v1221_v13, 6  ;;  %v1341_v8 = vrot.slane %v1221_v13, 5  ;;  %1651 = vmatpush1.bf16.msra.mxu1 %v3835_v5  ;;  %v1718_v40 = vrot.slane %v1221_v13, 1 }
 0x27d   :  { %1652 = vmatprep.subr.bf16.mxu1 %v3840_v9  ;;  %v1741_v28 = vrot.slane %v1221_v13, 3  ;;  %v1984_v34 = vrot.slane %v1221_v13, 7  ;;  %v1985_v63 = vrot.slane %v1222_v12, 7  ;;  %v3146_v5 = vcombine.low %v4911_v45, %v4911_v45 }
 0x27e   :  { %v2252_v3 = vsel %vm142_vm1, %v1256_v36, %v2236_v57  ;;  %v1317_v54 = vsel %vm151_vm2, %v1315_v29, %v1316_v53  ;;  %v1258_v39 = vsel %vm133_vm0, %v1256_v36, %v1257_v46 }
 0x27f   :  { %v2258_v42 = vpack.c.bf16 %v2252_v3, %v2251_v20  ;;  %v1357_v0 = vsel %vm142_vm1, %v1317_v54, %v1341_v8  ;;  %v4954_v35 = vsel %vm142_vm1, %v1221_v13, %v1258_v39  ;;  %v1743_v18 = vsel %vm1731_vm9, %v1741_v28, %v1742_v48  ;;  %v3848_v48 = vld [vmem:[%s5587_s2 + $0xf4] ss:$8 sps:$4 sm:$0xff]  }
 0x280   :  { %v1363_v60 = vpack.c.bf16 %v1357_v0, %v1356_v6  ;;  %1653 = vmatpush1.bf16.msra.mxu1 %v3838_v38  ;;  %v1288_v24 = vpack.c.bf16 %v4954_v35, %v4915_v62  ;;  %v4963_v23 = vsel %vm142_vm1, %v1718_v40, %v1743_v18  ;;  %v1986_v2 = vsel %vm1974_vm11, %v1984_v34, %v1985_v63 }
 0x281   :  { %3258 = vmatmul.mubr.msk.bf16.gmra.mrb[52].mxu0 %vm1457_vm10, %v2258_v42  ;;  %v3672_v50 = vpop.permute.xlu0 %3671  ;;  %1654 = vmatprep.subr.bf16.mxu1 %v3843_v37  ;;  %v1773_v10 = vpack.c.bf16 %v4963_v23, %v4923_v44  ;;  %v4972_v12 = vsel %vm142_vm1, %v1986_v2, %v1315_v29  ;;  %v1637_v46 = vsel %vm142_vm1, %v3146_v5, 0  ;;  %v3886_v44 = vld [vmem:[%s5587_s2 + $0x1bc] ss:$8 sps:$4 sm:$0xff]   ;;  %v3884_v23 = vld [vmem:[%s5587_s2 + $0x1b8] ss:$8 sps:$4 sm:$0xff]  }
 0x282   :  { %v3674_v1 = vunpack.i.h.bf16 %v3672_v50  ;;  %v3673_v9 = vunpack.i.l.bf16 %v3672_v50  ;;  %3129 = vmatmul.mubr.msk.bf16.gmra.mrb[4].mxu1 %vm1457_vm10, %v1363_v60  ;;  %v3677_v13 = vpop.permute.xlu1 %3676  ;;  %2422 = vmatprep.mubr.bf16.mxu0 %v3951_v27  ;;  %v2024_v20 = vpack.c.bf16 %v4972_v12, %v4947_v52  ;;  %v3937_v52 = vld [vmem:[%s5587_s2 + $0x224] ss:$8 sps:$4 sm:$0xff]   ;;  %v3938_v12 = vld [vmem:[%s5587_s2 + $0x220] ss:$8 sps:$4 sm:$0xff]  }
 0x283   :  { %v3679_v14 = vunpack.i.h.bf16 %v3677_v13  ;;  %v3678_v21 = vunpack.i.l.bf16 %v3677_v13  ;;  %1528 = vmatprep.mubr.bf16.mxu1 %v3951_v27 }
 0x284   :  { %v1176_v45 = vsel %vm1166_vm8, %v3673_v9, %v3674_v1  ;;  %1655 = vmatpush1.bf16.msra.mxu1 %v3841_v7 }
 0x285   :  { %v1208_v57 = vmax.f32 %v4703_v4, %v1176_v45  ;;  %v1175_v53 = vsel %vm1166_vm8, %v3678_v21, %v3679_v14  ;;  %3148 = vmatprep.subr.msk.bf16.mxu1 %vm142_vm1, %v3147_v30 }
 0x286   :  { %v1207_v36 = vmax.f32 %v4706_v26, %v1175_v53 }
 0x287   :  { %v4988_v29 = vmax.f32 %v1208_v57, 0.0 }
 0x288   :  { %v4990_v8 = vmax.f32 %v1207_v36, 0.0  ;;  %1657 = vmatpush1.bf16.msra.mxu1 %v1637_v46 }
 0x289   :  { %1885 = vmatprep.subr.bf16.mxu1 %v3848_v48  ;;  %v1745_v4 = vrot.slane %v4988_v29, 3  ;;  %v1988_v37 = vrot.slane %v4988_v29, 7  ;;  %v1319_v50 = vrot.slane %v4988_v29, 6  ;;  %v2237_v14 = vrot.slane %v4988_v29, 4 }
 0x28a   :  { %v1318_v38 = vrot.slane %v4990_v8, 6  ;;  %v1719_v30 = vrot.slane %v4990_v8, 1  ;;  %v1744_v40 = vrot.slane %v4990_v8, 3  ;;  %v1987_v6 = vrot.slane %v4990_v8, 7 }
 0x28b   :  { %v1259_v13 = vrot.slane %v4990_v8, 2  ;;  %v1342_v21 = vrot.slane %v4990_v8, 5 }
 0x28c   :  { %v1746_v26 = vsel %vm1731_vm9, %v1744_v40, %v1745_v4  ;;  %v1989_v28 = vsel %vm1974_vm11, %v1987_v6, %v1988_v37 }
 0x28d   :  { %v5001_v34 = vsel %vm142_vm1, %v1719_v30, %v1746_v26  ;;  %v5004_v3 = vsel %vm142_vm1, %v1989_v28, %v1318_v38 }
 0x2c8   :  { %v3682_v54 = vpop.permute.xlu0 %3681 }
 0x2c9   :  { %v3684_v39 = vunpack.i.h.bf16 %v3682_v54  ;;  %v3683_v63 = vunpack.i.l.bf16 %v3682_v54  ;;  %v3687_v42 = vpop.permute.xlu1 %3686 }
 0x2ca   :  { %v3689_v0 = vunpack.i.h.bf16 %v3687_v42  ;;  %v3688_v18 = vunpack.i.l.bf16 %v3687_v42 }
 0x2cb   :  { %v1178_v60 = vsel %vm1166_vm8, %v3683_v63, %v3684_v39 }
 0x2cc   :  { %v1210_v7 = vmax.f32 %v4722_v17, %v1178_v60  ;;  %v1177_v2 = vsel %vm1166_vm8, %v3688_v18, %v3689_v0  ;;  %v1320_v17 = vsel %vm151_vm2, %v1318_v38, %v1319_v50  ;;  %v2253_v38 = vsel %vm142_vm1, %v1259_v13, %v2237_v14 }
 0x2cd   :  { %v1209_v5 = vmax.f32 %v4726_v22, %v1177_v2  ;;  %v1358_v28 = vsel %vm142_vm1, %v1320_v17, %v1342_v21 }
 0x2ce   :  { %v5011_v1 = vmax.f32 %v1210_v7, 0.0 }
 0x2cf   :  { %v5013_v9 = vmax.f32 %v1209_v5, 0.0 }
 0x2d0   :  { %v2238_v45 = vrot.slane %v5011_v1, 4  ;;  %v1322_v57 = vrot.slane %v5011_v1, 6  ;;  %v1748_v53 = vrot.slane %v5011_v1, 3  ;;  %v1991_v40 = vrot.slane %v5011_v1, 7 }
 0x2d1   :  { %v1262_v22 = vrot.slane %v5013_v9, 2  ;;  %v1321_v46 = vrot.slane %v5013_v9, 6  ;;  %v1343_v48 = vrot.slane %v5013_v9, 5  ;;  %v1720_v36 = vrot.slane %v5013_v9, 1 }
 0x2d2   :  { %v1747_v4 = vrot.slane %v5013_v9, 3  ;;  %v1990_v30 = vrot.slane %v5013_v9, 7 }
 0x2d3   :  { %v2254_v6 = vsel %vm142_vm1, %v1262_v22, %v2238_v45  ;;  %v1323_v37 = vsel %vm151_vm2, %v1321_v46, %v1322_v57 }
 0x2d4   :  { %v2259_v26 = vpack.c.bf16 %v2254_v6, %v2253_v38  ;;  %v1359_v54 = vsel %vm142_vm1, %v1323_v37, %v1343_v48  ;;  %v1749_v39 = vsel %vm1731_vm9, %v1747_v4, %v1748_v53  ;;  %v1992_v0 = vsel %vm1974_vm11, %v1990_v30, %v1991_v40 }
 0x2d5   :  { %v1364_v63 = vpack.c.bf16 %v1359_v54, %v1358_v28  ;;  %v5040_v42 = vsel %vm142_vm1, %v1720_v36, %v1749_v39  ;;  %v5047_v60 = vsel %vm142_vm1, %v1992_v0, %v1321_v46 }
 0x2d6   :  { %3259 = vmatmul.mubr.msk.bf16.gmra.mrb[56].mxu0 %vm1457_vm10, %v2259_v26  ;;  %v1774_v18 = vpack.c.bf16 %v5040_v42, %v5001_v34  ;;  %v2025_v50 = vpack.c.bf16 %v5047_v60, %v5004_v3  ;;  %v3887_v34 = vld [vmem:[%s5587_s2 + $0x1c8] ss:$8 sps:$4 sm:$0xff]   ;;  %v3941_v3 = vld [vmem:[%s5587_s2 + $0x244] ss:$8 sps:$4 sm:$0xff]  }
 0x2d7   :  { %3130 = vmatmul.mubr.msk.bf16.gmra.mrb[8].mxu1 %vm1457_vm10, %v1364_v63  ;;  %v3942_v60 = vld [vmem:[%s5587_s2 + $0x240] ss:$8 sps:$4 sm:$0xff]  }
 0x2d8   :  { %v3692_v7 = vpop.permute.xlu0 %3691  ;;  %v3697_v2 = vpop.permute.xlu1 %3696  ;;  %1538 = vmatprep.mubr.bf16.mxu1 %v3951_v27 }
 0x2d9   :  { %v3694_v5 = vunpack.i.h.bf16 %v3692_v7  ;;  %v3693_v14 = vunpack.i.l.bf16 %v3692_v7  ;;  %v3699_v21 = vunpack.i.h.bf16 %v3697_v2  ;;  %v3698_v45 = vunpack.i.l.bf16 %v3697_v2 }
 0x2db   :  { %v1180_v17 = vsel %vm1166_vm8, %v3693_v14, %v3694_v5  ;;  %v1179_v57 = vsel %vm1166_vm8, %v3698_v45, %v3699_v21 }
 0x2dc   :  { %v1212_v53 = vmax.f32 %v4775_v32, %v1180_v17  ;;  %v1211_v46 = vmax.f32 %v4782_v47, %v1179_v57 }
 0x2de   :  { %v5057_v48 = vmax.f32 %v1212_v53, 0.0  ;;  %v5059_v36 = vmax.f32 %v1211_v46, 0.0 }
 0x2e0   :  { %v2239_v4 = vrot.slane %v5057_v48, 4  ;;  %v1721_v40 = vrot.slane %v5059_v36, 1  ;;  %v1750_v38 = vrot.slane %v5059_v36, 3  ;;  %v1265_v28 = vrot.slane %v5059_v36, 2 }
 0x2e1   :  { %v3707_v30 = vpop.permute.xlu0 %3706  ;;  %v1751_v32 = vrot.slane %v5057_v48, 3  ;;  %v1324_v39 = vrot.slane %v5059_v36, 6  ;;  %v1325_v0 = vrot.slane %v5057_v48, 6  ;;  %v1993_v2 = vrot.slane %v5059_v36, 7 }
 0x2e2   :  { %v3709_v6 = vunpack.i.h.bf16 %v3707_v30  ;;  %v3708_v37 = vunpack.i.l.bf16 %v3707_v30  ;;  %v3702_v26 = vpop.permute.xlu1 %3701  ;;  %v1994_v45 = vrot.slane %v5057_v48, 7  ;;  %v5081_v57 = vsel %vm142_vm1, %v1265_v28, %v2239_v4 }
 0x2e3   :  { %v3704_v54 = vunpack.i.h.bf16 %v3702_v26  ;;  %v3703_v47 = vunpack.i.l.bf16 %v3702_v26  ;;  %v1752_v7 = vsel %vm1731_vm9, %v1750_v38, %v1751_v32 }
 0x2e4   :  { %v1182_v63 = vsel %vm1166_vm8, %v3708_v37, %v3709_v6  ;;  %v5074_v21 = vsel %vm142_vm1, %v1721_v40, %v1752_v7  ;;  %v1995_v46 = vsel %vm1974_vm11, %v1993_v2, %v1994_v45 }
 0x2e5   :  { %v1214_v5 = vmax.f32 %v4833_v58, %v1182_v63  ;;  %v1181_v14 = vsel %vm1166_vm8, %v3703_v47, %v3704_v54  ;;  %v1344_v58 = vrot.slane %v5059_v36, 5  ;;  %v5090_v40 = vsel %vm142_vm1, %v1995_v46, %v1324_v39 }
 0x2e6   :  { %v1213_v17 = vmax.f32 %v4840_v61, %v1181_v14  ;;  %v1326_v61 = vsel %vm151_vm2, %v1324_v39, %v1325_v0 }
 0x2e7   :  { %v5083_v53 = vmax.f32 %v1214_v5, 0.0  ;;  %v1360_v2 = vsel %vm142_vm1, %v1326_v61, %v1344_v58  ;;  %v3846_v61 = vld [vmem:[%s5587_s2 + $0xf0] ss:$8 sps:$4 sm:$0xff]  }
 0x2e8   :  { %v5086_v30 = vmax.f32 %v1213_v17, 0.0 }
 0x2e9   :  { %v2240_v38 = vrot.slane %v5083_v53, 4  ;;  %v1328_v6 = vrot.slane %v5083_v53, 6  ;;  %v1754_v4 = vrot.slane %v5083_v53, 3  ;;  %v1997_v7 = vrot.slane %v5083_v53, 7 }
 0x2ea   :  { %v1327_v37 = vrot.slane %v5086_v30, 6  ;;  %v1345_v26 = vrot.slane %v5086_v30, 5  ;;  %v1268_v32 = vrot.slane %v5086_v30, 2  ;;  %v1722_v54 = vrot.slane %v5086_v30, 1 }
 0x2eb   :  { %v1753_v47 = vrot.slane %v5086_v30, 3  ;;  %v1996_v63 = vrot.slane %v5086_v30, 7 }
 0x2ec   :  { %v1329_v39 = vsel %vm151_vm2, %v1327_v37, %v1328_v6  ;;  %v5105_v0 = vsel %vm142_vm1, %v1268_v32, %v2240_v38  ;;  %vm3045_vm2 = vcmask 1043459  }
 0x2ed   :  { %v1361_v5 = vsel %vm142_vm1, %v1329_v39, %v1345_v26  ;;  %v1755_v14 = vsel %vm1731_vm9, %v1753_v47, %v1754_v4  ;;  %v1998_v45 = vsel %vm1974_vm11, %v1996_v63, %v1997_v7  ;;  %v2260_v58 = vpack.c.bf16 %v5105_v0, %v5081_v57  ;;  %v3851_v4 = vld [vmem:[%s5587_s2 + $0x104] ss:$8 sps:$4 sm:$0xff]   ;;  %v3854_v26 = vld [vmem:[%s5587_s2 + $0x114] ss:$8 sps:$4 sm:$0xff]   ;;  %v3855_v47 = vld [vmem:[%s5587_s2 + $0x120] ss:$8 sps:$4 sm:$0xff]  }
 0x2ee   :  { %v1365_v17 = vpack.c.bf16 %v1361_v5, %v1360_v2  ;;  %v5112_v46 = vsel %vm142_vm1, %v1722_v54, %v1755_v14  ;;  %v5115_v11 = vsel %vm142_vm1, %v1998_v45, %v1327_v37  ;;  %v3849_v37 = vld [vmem:[%s5587_s2 + $0x100] ss:$8 sps:$4 sm:$0xff]   ;;  %v1263_v54 = vrot.slane %v5011_v1, 2  ;;  %v3863_v39 = vld [vmem:[%s5587_s2 + $0x144] ss:$8 sps:$4 sm:$0xff]  }
 0x2ef   :  { %v1775_v6 = vpack.c.bf16 %v5112_v46, %v5074_v21  ;;  %v2026_v38 = vpack.c.bf16 %v5115_v11, %v5090_v40  ;;  %v3864_v5 = vld [vmem:[%s5587_s2 + $0x150] ss:$8 sps:$4 sm:$0xff]   ;;  %v3930_v21 = vld [vmem:[%s5587_s2 + $0x1e0] ss:$8 sps:$4 sm:$0xff]   ;;  %v3931_v46 = vld [vmem:[%s5587_s2 + $0x1f4] ss:$8 sps:$4 sm:$0xff]  }
 0x2f0   :  { %3131 = vmatmul.mubr.msk.bf16.gmra.mrb[12].mxu1 %vm1457_vm10, %v1365_v17  ;;  %v1264_v1 = vsel %vm133_vm0, %v1262_v22, %v1263_v54  ;;  %v3858_v22 = vld [vmem:[%s5587_s2 + $0x130] ss:$8 sps:$4 sm:$0xff]   ;;  %v5591_v57 = vsub.s32 1, %v4515_v55  ;;  %v3892_v55 = vld [vmem:[%s5588_s3] sm:$0xff]  }
 0x2f1   :  { %1674 = vmatprep.mubr.bf16.mxu1 %v3951_v27  ;;  %v1284_v35 = vsel %vm142_vm1, %v5013_v9, %v1264_v1  ;;  %v3875_v54 = vld [vmem:[%s5587_s2 + $0x188] ss:$8 sps:$4 sm:$0xff]   ;;  %v3929_v1 = vld [vmem:[%s5587_s2 + $0x1e4] ss:$8 sps:$4 sm:$0xff]   ;;  %3304 = vmatprep.subr.bf16.mxu0 %v3892_v55 }
 0x2f2   :  { %3305 = vmatpush3.bf16.msra.mxu0 %v3892_v55 }
 0x2f8   :  { %3149 = vmatmul.mubr.msk.bf16.vlgmr.msra.gmra.mrb[0].mxu1 %vm1457_vm10, %v1287_v43  ;;  %v1260_v43 = vrot.slane %v4988_v29, 2  ;;  %v3860_v29 = vld [vmem:[%s5587_s2 + $0x134] ss:$8 sps:$4 sm:$0xff]  }
 0x2f9   :  { %1886 = vmatpush1.bf16.msra.mxu1 %v3846_v61  ;;  %1684 = vmatprep.mubr.bf16.mxu1 %v3951_v27 }
 0x2fa   :  { %1887 = vmatprep.subr.bf16.mxu1 %v3851_v4  ;;  %v1261_v62 = vsel %vm133_vm0, %v1259_v13, %v1260_v43  ;;  %v1266_v13 = vrot.slane %v5057_v48, 2  ;;  %v3874_v4 = vld [vmem:[%s5587_s2 + $0x17c] ss:$8 sps:$4 sm:$0xff]  }
 0x2fb   :  { %v1283_v63 = vsel %vm142_vm1, %v4990_v8, %v1261_v62  ;;  %v3866_v8 = vld [vmem:[%s5587_s2 + $0x154] ss:$8 sps:$4 sm:$0xff]   ;;  %v3934_v62 = vld [vmem:[%s5587_s2 + $0x200] ss:$8 sps:$4 sm:$0xff]  }
 0x2fc   :  { %v1289_v7 = vpack.c.bf16 %v1284_v35, %v1283_v63  ;;  %v1267_v48 = vsel %vm133_vm0, %v1265_v28, %v1266_v13  ;;  %v3935_v35 = vld [vmem:[%s5587_s2 + $0x214] ss:$8 sps:$4 sm:$0xff]  }
 0x2fd   :  { %1888 = vmatpush1.bf16.msra.mxu1 %v3849_v37  ;;  %v1285_v14 = vsel %vm142_vm1, %v5059_v36, %v1267_v48  ;;  %v3869_v36 = vld [vmem:[%s5587_s2 + $0x168] ss:$8 sps:$4 sm:$0xff]   ;;  %v3872_v37 = vld [vmem:[%s5587_s2 + $0x178] ss:$8 sps:$4 sm:$0xff]  }
 0x2fe   :  { %1889 = vmatprep.subr.bf16.mxu1 %v3854_v26  ;;  %v3877_v26 = vld [vmem:[%s5587_s2 + $0x18c] ss:$8 sps:$4 sm:$0xff]  }
 0x300   :  { %3150 = vmatmul.mubr.msk.bf16.gmra.mrb[4].mxu1 %vm1457_vm10, %v1288_v24  ;;  %v1269_v24 = vrot.slane %v5083_v53, 2  ;;  %v3861_v53 = vld [vmem:[%s5587_s2 + $0x140] ss:$8 sps:$4 sm:$0xff]  }
 0x301   :  { %1890 = vmatpush1.bf16.msra.mxu1 %v3852_v56  ;;  %1694 = vmatprep.mubr.bf16.mxu1 %v3951_v27  ;;  %v3881_v56 = vld [vmem:[%s5587_s2 + $0x1a8] ss:$8 sps:$4 sm:$0xff]  }
 0x302   :  { %1891 = vmatprep.subr.bf16.mxu1 %v3857_v31  ;;  %v1270_v9 = vsel %vm133_vm0, %v1268_v32, %v1269_v24  ;;  %v3167_v32 = vld [vmem:[%s5587_s2 + $0x160] sm:$0xff]  ;;  %v3203_v31 = vld [vmem:[%s5587_s2 + $0x1d8] sm:$0xff]  ;;  %vm3039_vm0 = vcmask 1041409  }
 0x303   :  { %v1286_v2 = vsel %vm142_vm1, %v5086_v30, %v1270_v9  ;;  %v3183_v17 = vcombine.high %v3167_v32, %v3167_v32  ;;  %v3182_v61 = vcombine.low %v3167_v32, %v3167_v32  ;;  %v3871_v30 = vld [vmem:[%s5587_s2 + $0x16c] ss:$8 sps:$4 sm:$0xff]   ;;  %v3219_v42 = vcombine.high %v3203_v31, %v3203_v31  ;;  %v3936_v24 = vld [vmem:[%s5587_s2 + $0x210] ss:$8 sps:$4 sm:$0xff]  }
 0x304   :  { %v1290_v45 = vpack.c.bf16 %v1286_v2, %v1285_v14 }
 0x305   :  { %1892 = vmatpush1.bf16.msra.mxu1 %v3855_v47  ;;  %v1880_v28 = vsel %vm142_vm1, %v3182_v61, 0  ;;  %v3932_v47 = vld [vmem:[%s5587_s2 + $0x1f0] ss:$8 sps:$4 sm:$0xff]  }
 0x306   :  { %1893 = vmatprep.subr.bf16.mxu1 %v3860_v29 }
 0x308   :  { %3151 = vmatmul.mubr.msk.bf16.gmra.mrb[8].mxu1 %vm1457_vm10, %v1289_v7 }
 0x309   :  { %1894 = vmatpush1.bf16.msra.mxu1 %v3858_v22  ;;  %1704 = vmatprep.mubr.bf16.mxu1 %v3951_v27  ;;  %v3940_v22 = vld [vmem:[%s5587_s2 + $0x230] ss:$8 sps:$4 sm:$0xff]  }
 0x30a   :  { %1895 = vmatprep.subr.bf16.mxu1 %v3863_v39 }
 0x30d   :  { %1896 = vmatpush1.bf16.msra.mxu1 %v3861_v53 }
 0x30e   :  { %1897 = vmatprep.subr.bf16.mxu1 %v3866_v8 }
 0x310   :  { %3152 = vmatmul.mubr.msk.bf16.gmra.mrb[12].mxu1 %vm1457_vm10, %v1290_v45 }
 0x311   :  { %1898 = vmatpush1.bf16.msra.mxu1 %v3864_v5  ;;  %1917 = vmatprep.mubr.bf16.mxu1 %v3951_v27 }
 0x312   :  { %3184 = vmatprep.subr.msk.bf16.mxu1 %vm142_vm1, %v3183_v17 }
 0x315   :  { %1900 = vmatpush1.bf16.msra.mxu1 %v1880_v28  ;;  %v3893_v28 = vld [vmem:[%s5588_s3 + $0x8] sm:$0xff]  }
 0x316   :  { %2136 = vmatprep.subr.bf16.mxu1 %v3871_v30  ;;  %3306 = vmatprep.subr.bf16.mxu0 %v3893_v28 }
 0x317   :  { %3307 = vmatpush3.bf16.msra.mxu0 %v3893_v28 }
 0x318   :  { %3185 = vmatmul.mubr.msk.bf16.vlgmr.msra.gmra.mrb[0].mxu1 %vm1457_vm10, %v1772_v19  ;;  %v3883_v19 = vld [vmem:[%s5587_s2 + $0x1ac] ss:$8 sps:$4 sm:$0xff]  }
 0x319   :  { %2137 = vmatpush1.bf16.msra.mxu1 %v3869_v36  ;;  %1927 = vmatprep.mubr.bf16.mxu1 %v3951_v27 }
 0x31a   :  { %2138 = vmatprep.subr.bf16.mxu1 %v3874_v4 }
 0x31d   :  { %2139 = vmatpush1.bf16.msra.mxu1 %v3872_v37 }
 0x31e   :  { %2140 = vmatprep.subr.bf16.mxu1 %v3877_v26 }
 0x320   :  { %3186 = vmatmul.mubr.msk.bf16.gmra.mrb[4].mxu1 %vm1457_vm10, %v1773_v10  ;;  %v3889_v10 = vld [vmem:[%s5587_s2 + $0x1cc] ss:$8 sps:$4 sm:$0xff]  }
 0x321   :  { %2141 = vmatpush1.bf16.msra.mxu1 %v3875_v54  ;;  %1937 = vmatprep.mubr.bf16.mxu1 %v3951_v27 }
 0x322   :  { %2142 = vmatprep.subr.bf16.mxu1 %v3880_v49 }
 0x325   :  { %2143 = vmatpush1.bf16.msra.mxu1 %v3878_v16 }
 0x326   :  { %2144 = vmatprep.subr.bf16.mxu1 %v3883_v19 }
 0x328   :  { %3187 = vmatmul.mubr.msk.bf16.gmra.mrb[8].mxu1 %vm1457_vm10, %v1774_v18  ;;  %v3218_v18 = vcombine.low %v3203_v31, %v3203_v31 }
 0x329   :  { %2145 = vmatpush1.bf16.msra.mxu1 %v3881_v56  ;;  %1947 = vmatprep.mubr.bf16.mxu1 %v3951_v27 }
 0x32a   :  { %2146 = vmatprep.subr.bf16.mxu1 %v3886_v44  ;;  %v2131_v43 = vsel %vm142_vm1, %v3218_v18, 0 }
 0x32d   :  { %2147 = vmatpush1.bf16.msra.mxu1 %v3884_v23 }
 0x32e   :  { %2148 = vmatprep.subr.bf16.mxu1 %v3889_v10 }
 0x330   :  { %3188 = vmatmul.mubr.msk.bf16.gmra.mrb[12].mxu1 %vm1457_vm10, %v1775_v6 }
 0x331   :  { %2149 = vmatpush1.bf16.msra.mxu1 %v3887_v34  ;;  %2168 = vmatprep.mubr.bf16.mxu1 %v3951_v27 }
 0x332   :  { %3220 = vmatprep.subr.msk.bf16.mxu1 %vm142_vm1, %v3219_v42 }
 0x335   :  { %2151 = vmatpush1.bf16.msra.mxu1 %v2131_v43 }
 0x336   :  { %3322 = vmatprep.subr.bf16.mxu1 %v3929_v1 }
 0x338   :  { %3221 = vmatmul.mubr.msk.bf16.vlgmr.msra.gmra.mrb[0].mxu1 %vm1457_vm10, %v2023_v41 }
 0x339   :  { %3330 = vmatpush1.bf16.msra.mxu1 %v3930_v21  ;;  %2178 = vmatprep.mubr.bf16.mxu1 %v3951_v27 }
 0x33a   :  { %3323 = vmatprep.subr.bf16.mxu1 %v3931_v46 }
 0x33c   :  { %v2404_v6 = vpop.f32.mrb[48].mxu0 }
 0x33d   :  { %3331 = vmatpush1.bf16.msra.mxu1 %v3932_v47  ;;  %v2406_v33 = vpop.f32.mrb[49].mxu0  ;;  %v3894_v47 = vld [vmem:[%s5588_s3 + $0x10] sm:$0xff]  }
 0x33e   :  { %3324 = vmatprep.subr.bf16.mxu1 %v3933_v51  ;;  %v2408_v41 = vpop.f32.mrb[50].mxu0  ;;  %3308 = vmatprep.subr.bf16.mxu0 %v3894_v47 }
 0x33f   :  { %v2410_v29 = vpop.f32.mrb[51].mxu0  ;;  %3309 = vmatpush3.bf16.msra.mxu0 %v3894_v47 }
 0x340   :  { %3222 = vmatmul.mubr.msk.bf16.gmra.mrb[4].mxu1 %vm1457_vm10, %v2024_v20  ;;  %v3939_v20 = vld [vmem:[%s5587_s2 + $0x234] ss:$8 sps:$4 sm:$0xff]  }
 0x341   :  { %3332 = vmatpush1.bf16.msra.mxu1 %v3934_v62  ;;  %2188 = vmatprep.mubr.bf16.mxu1 %v3951_v27 }
 0x342   :  { %3325 = vmatprep.subr.bf16.mxu1 %v3935_v35 }
 0x345   :  { %3333 = vmatpush1.bf16.msra.mxu1 %v3936_v24 }
 0x346   :  { %3326 = vmatprep.subr.bf16.mxu1 %v3937_v52 }
 0x348   :  { %3223 = vmatmul.mubr.msk.bf16.gmra.mrb[8].mxu1 %vm1457_vm10, %v2025_v50 }
 0x349   :  { %3334 = vmatpush1.bf16.msra.mxu1 %v3938_v12  ;;  %2198 = vmatprep.mubr.bf16.mxu1 %v3951_v27  ;;  %v3895_v12 = vld [vmem:[%s5588_s3 + $0x18] sm:$0xff]  }
 0x34a   :  { %3327 = vmatprep.subr.bf16.mxu1 %v3939_v20  ;;  %3310 = vmatprep.subr.bf16.mxu0 %v3895_v12 }
 0x34b   :  { %3311 = vmatpush3.bf16.msra.mxu0 %v3895_v12 }
 0x34d   :  { %3335 = vmatpush1.bf16.msra.mxu1 %v3940_v22 }
 0x34e   :  { %3328 = vmatprep.subr.bf16.mxu1 %v3941_v3 }
 0x350   :  { %3224 = vmatmul.mubr.msk.bf16.gmra.mrb[12].mxu1 %vm1457_vm10, %v2026_v38 }
 0x351   :  { %3336 = vmatpush1.bf16.msra.mxu1 %v3942_v60  ;;  %2432 = vmatprep.mubr.bf16.mxu1 %v3951_v27 }
 0x352   :  { %3329 = vmatprep.subr.msk.bf16.mxu1 %vm142_vm1, %v4646_v15  ;;  %v3261_v15 = vld [vmem:[%s5586_s4 + $0x1] ss:$4 sm:$0x3] }
 0x353   :  { %v5356_v0 = vrot.slane %v3261_v15, %v5591_v57 }
 0x354   :  { %v2414_v50 = vpop.f32.mrb[52].mxu0 }
 0x355   :  { %v2416_v63 = vpop.f32.mrb[53].mxu0  ;;  %3337 = vmatpush1.bf16.msra.mxu1 %v4656_v25  ;;  %v5352_v25 = vrot.slane %v3261_v15, %v634_v59 }
 0x356   :  { %v2418_v7 = vpop.f32.mrb[54].mxu0 }
 0x357   :  { %v2420_v39 = vpop.f32.mrb[55].mxu0 }
 0x35c   :  { %3260 = vmatmul.mubr.msk.bf16.vlgmr.msra.gmra.mrb[12].mxu1 %vm1457_vm10, %v2260_v58 }
 0x3a9   :  { %v2424_v11 = vpop.f32.mrb[56].mxu0 }
 0x3aa   :  { %v5341_v40 = vpop.f32.mrb[57].mxu0 }
 0x3ab   :  { %v5343_v38 = vpop.f32.mrb[58].mxu0 }
 0x3ac   :  { %v5345_v27 = vpop.f32.mrb[59].mxu0 }
 0x40b   :  { %v2170_v13 = vpop.f32.mrb[0].mxu1 }
 0x40c   :  { %v3338_v58 = vadd.f32 %v2404_v6, %v2170_v13  ;;  %v2172_v9 = vpop.f32.mrb[1].mxu1 }
 0x40d   :  { %v3339_v53 = vadd.f32 %v2406_v33, %v2172_v9  ;;  %v2174_v8 = vpop.f32.mrb[2].mxu1 }
 0x40e   :  { %v2472_v48 = vadd.f32 %v3338_v58, %v5352_v25  ;;  %v3340_v2 = vadd.f32 %v2408_v41, %v2174_v8  ;;  %v2176_v32 = vpop.f32.mrb[3].mxu1 }
 0x40f   :  { %v2473_v5 = vadd.f32 %v3339_v53, %v5356_v0  ;;  %v3341_v14 = vadd.f32 %v2410_v29, %v2176_v32 }
 0x410   :  { %v2504_v45 = vrot.slane %v2472_v48, 4  ;;  %v2474_v59 = vadd.f32 %v3340_v2, %v5352_v25 }
 0x411   :  { %v2505_v17 = vrot.slane %v2473_v5, 4  ;;  %v2475_v61 = vadd.f32 %v3341_v14, %v5356_v0 }
 0x412   :  { %v5368_v30 = vmax.f32 %v2472_v48, %v2504_v45  ;;  %v2506_v36 = vrot.slane %v2474_v59, 4 }
 0x413   :  { %v2537_v4 = vmax.f32 %v2473_v5, %v2505_v17  ;;  %v2507_v37 = vrot.slane %v2475_v61, 4  ;;  %v2180_v26 = vpop.f32.mrb[4].mxu1 }
 0x414   :  { %v5370_v54 = vmax.f32 %v2474_v59, %v2506_v36  ;;  %v3342_v49 = vadd.f32 %v2414_v50, %v2180_v26  ;;  %v2182_v16 = vpop.f32.mrb[5].mxu1 }
 0x415   :  { %v2539_v19 = vmax.f32 %v2475_v61, %v2507_v37  ;;  %v3343_v56 = vadd.f32 %v2416_v63, %v2182_v16  ;;  %v2184_v44 = vpop.f32.mrb[6].mxu1  ;;  %v3710_v23 = vpack.i.bf16 %v2537_v4, %v5368_v30 }
 0x416   :  { %v2476_v10 = vadd.f32 %v3342_v49, %v5352_v25  ;;  %v3344_v31 = vadd.f32 %v2418_v7, %v2184_v44  ;;  %v2186_v34 = vpop.f32.mrb[7].mxu1 }
 0x417   :  { %v2477_v42 = vadd.f32 %v3343_v56, %v5356_v0  ;;  %v3345_v18 = vadd.f32 %v2420_v39, %v2186_v34  ;;  %3711 = vrot.lane.b32.xlu1 %v3710_v23, %s3952_s10  ;;  %v3715_v43 = vpack.i.bf16 %v2539_v19, %v5370_v54 }
 0x418   :  { %v2508_v1 = vrot.slane %v2476_v10, 4  ;;  %v2478_v21 = vadd.f32 %v3344_v31, %v5352_v25 }
 0x419   :  { %v2509_v46 = vrot.slane %v2477_v42, 4  ;;  %v2479_v6 = vadd.f32 %v3345_v18, %v5356_v0  ;;  %3716 = vrot.lane.b32.xlu0 %v3715_v43, %s3952_s10 }
 0x41a   :  { %v5383_v33 = vmax.f32 %v2476_v10, %v2508_v1  ;;  %v2510_v51 = vrot.slane %v2478_v21, 4 }
 0x41b   :  { %v2541_v41 = vmax.f32 %v2477_v42, %v2509_v46  ;;  %v2511_v29 = vrot.slane %v2479_v6, 4  ;;  %v2190_v62 = vpop.f32.mrb[8].mxu1 }
 0x41c   :  { %v5385_v35 = vmax.f32 %v2478_v21, %v2510_v51  ;;  %v3346_v24 = vadd.f32 %v2424_v11, %v2190_v62  ;;  %v2192_v52 = vpop.f32.mrb[9].mxu1 }
 0x41d   :  { %v2543_v20 = vmax.f32 %v2479_v6, %v2511_v29  ;;  %v3347_v22 = vadd.f32 %v5341_v40, %v2192_v52  ;;  %v2194_v3 = vpop.f32.mrb[10].mxu1  ;;  %v3720_v60 = vpack.i.bf16 %v2541_v41, %v5383_v33  ;;  %v3896_v40 = vld [vmem:[%s5588_s3 + $0x20] sm:$0xff]   ;;  %s3953_s3 = smov 108  }
 0x41e   :  { %v2480_v50 = vadd.f32 %v3346_v24, %v5352_v25  ;;  %v3348_v63 = vadd.f32 %v5343_v38, %v2194_v3  ;;  %v2196_v7 = vpop.f32.mrb[11].mxu1  ;;  %3312 = vmatprep.subr.bf16.mxu0 %v3896_v40 }
 0x41f   :  { %v2481_v39 = vadd.f32 %v3347_v22, %v5356_v0  ;;  %v3349_v11 = vadd.f32 %v5345_v27, %v2196_v7  ;;  %3721 = vrot.lane.b32.xlu1 %v3720_v60, %s3952_s10  ;;  %v3725_v15 = vpack.i.bf16 %v2543_v20, %v5385_v35  ;;  %3313 = vmatpush3.bf16.msra.mxu0 %v3896_v40 }
 0x420   :  { %v2512_v13 = vrot.slane %v2480_v50, 4  ;;  %v2482_v57 = vadd.f32 %v3348_v63, %v5352_v25 }
 0x421   :  { %v2513_v58 = vrot.slane %v2481_v39, 4  ;;  %v2483_v38 = vadd.f32 %v3349_v11, %v5356_v0  ;;  %3726 = vrot.lane.b32.xlu0 %v3725_v15, %s3952_s10 }
 0x422   :  { %v5404_v9 = vmax.f32 %v2480_v50, %v2512_v13  ;;  %v2514_v27 = vrot.slane %v2482_v57, 4 }
 0x423   :  { %v2545_v53 = vmax.f32 %v2481_v39, %v2513_v58  ;;  %v2515_v8 = vrot.slane %v2483_v38, 4 }
 0x424   :  { %v5406_v48 = vmax.f32 %v2482_v57, %v2514_v27 }
 0x425   :  { %v2547_v2 = vmax.f32 %v2483_v38, %v2515_v8  ;;  %v3730_v32 = vpack.i.bf16 %v2545_v53, %v5404_v9 }
 0x427   :  { %3731 = vrot.lane.b32.xlu1 %v3730_v32, %s3952_s10  ;;  %v3735_v5 = vpack.i.bf16 %v2547_v2, %v5406_v48 }
 0x429   :  { %3736 = vrot.lane.b32.xlu0 %v3735_v5, %s3952_s10 }
 0x42f   :  { %v2434_v14 = vpop.f32.mrb[12].mxu1 }
 0x430   :  { %v2484_v45 = vadd.f32 %v5352_v25, %v2434_v14  ;;  %v2436_v59 = vpop.f32.mrb[13].mxu1 }
 0x431   :  { %v2485_v55 = vadd.f32 %v5356_v0, %v2436_v59  ;;  %v2438_v17 = vpop.f32.mrb[14].mxu1 }
 0x432   :  { %v2516_v61 = vrot.slane %v2484_v45, 4  ;;  %v2486_v28 = vadd.f32 %v5352_v25, %v2438_v17  ;;  %v2440_v36 = vpop.f32.mrb[15].mxu1 }
 0x433   :  { %v2517_v4 = vrot.slane %v2485_v55, 4  ;;  %v2487_v37 = vadd.f32 %v5356_v0, %v2440_v36 }
 0x434   :  { %v5416_v26 = vmax.f32 %v2484_v45, %v2516_v61  ;;  %v2518_v49 = vrot.slane %v2486_v28, 4 }
 0x435   :  { %v2549_v16 = vmax.f32 %v2485_v55, %v2517_v4  ;;  %v2519_v19 = vrot.slane %v2487_v37, 4 }
 0x436   :  { %v5418_v56 = vmax.f32 %v2486_v28, %v2518_v49 }
 0x437   :  { %v2551_v44 = vmax.f32 %v2487_v37, %v2519_v19  ;;  %v3740_v23 = vpack.i.bf16 %v2549_v16, %v5416_v26 }
 0x439   :  { %3741 = vrot.lane.b32.xlu1 %v3740_v23, %s3952_s10  ;;  %v3745_v10 = vpack.i.bf16 %v2551_v44, %v5418_v56 }
 0x43b   :  { %3746 = vrot.lane.b32.xlu0 %v3745_v10, %s3952_s10 }
 0x489   :  { %v3712_v25 = vpop.permute.xlu1 %3711 }
 0x48a   :  { %v3714_v31 = vunpack.i.h.bf16 %v3712_v25  ;;  %v3713_v0 = vunpack.i.l.bf16 %v3712_v25 }
 0x48b   :  { %v3717_v34 = vpop.permute.xlu0 %3716 }
 0x48c   :  { %v2601_v42 = vsel %vm2600_vm12, %v3713_v0, %v3714_v31  ;;  %v3719_v18 = vunpack.i.h.bf16 %v3717_v34  ;;  %v3718_v43 = vunpack.i.l.bf16 %v3717_v34 }
 0x48d   :  { %v2617_v1 = vmax.f32 %v5368_v30, %v2601_v42 }
 0x48e   :  { %v2602_v21 = vsel %vm2600_vm12, %v3718_v43, %v3719_v18 }
 0x48f   :  { %v2625_v46 = vmax.f32 %v2617_v1, 0.0  ;;  %v2618_v6 = vmax.f32 %v5370_v54, %v2602_v21 }
 0x491   :  { %v2626_v47 = vmax.f32 %v2618_v6, 0.0  ;;  %v3722_v51 = vpop.permute.xlu1 %3721  ;;  %v2633_v24 = vsel %vm142_vm1, %v2625_v46, 0.0 }
 0x492   :  { %v3724_v41 = vunpack.i.h.bf16 %v3722_v51  ;;  %v3723_v29 = vunpack.i.l.bf16 %v3722_v51 }
 0x493   :  { %v3727_v62 = vpop.permute.xlu0 %3726  ;;  %v2634_v52 = vsel %vm142_vm1, %v2626_v47, 0.0 }
 0x494   :  { %v2603_v12 = vsel %vm2600_vm12, %v3723_v29, %v3724_v41  ;;  %v3729_v20 = vunpack.i.h.bf16 %v3727_v62  ;;  %v3728_v22 = vunpack.i.l.bf16 %v3727_v62  ;;  %v2641_v30 = vpack.c.bf16 %v2634_v52, %v2633_v24 }
 0x495   :  { %v2619_v3 = vmax.f32 %v5383_v33, %v2603_v12 }
 0x496   :  { %v2604_v60 = vsel %vm2600_vm12, %v3728_v22, %v3729_v20  ;;  %3314 = vmatprep.mubr.msk.bf16.mxu0 %vm2685_vm13, %v2641_v30 }
 0x497   :  { %v2627_v54 = vmax.f32 %v2619_v3, 0.0  ;;  %v2620_v50 = vmax.f32 %v5385_v35, %v2604_v60 }
 0x499   :  { %v2628_v63 = vmax.f32 %v2620_v50, 0.0  ;;  %v3732_v7 = vpop.permute.xlu1 %3731  ;;  %v2635_v15 = vsel %vm142_vm1, %v2627_v54, 0.0 }
 0x49a   :  { %v3734_v39 = vunpack.i.h.bf16 %v3732_v7  ;;  %v3733_v11 = vunpack.i.l.bf16 %v3732_v7 }
 0x49b   :  { %v2636_v40 = vsel %vm142_vm1, %v2628_v63, 0.0  ;;  %v3737_v13 = vpop.permute.xlu0 %3736 }
 0x49c   :  { %v2642_v57 = vpack.c.bf16 %v2636_v40, %v2635_v15  ;;  %v2605_v58 = vsel %vm2600_vm12, %v3733_v11, %v3734_v39  ;;  %v3739_v33 = vunpack.i.h.bf16 %v3737_v13  ;;  %v3738_v38 = vunpack.i.l.bf16 %v3737_v13  ;;  %v2763_v39 = vld [vmem:[%s5586_s4 + $0x2] sm:$0x1] }
 0x49d   :  { %v2621_v27 = vmax.f32 %v5404_v9, %v2605_v58 }
 0x49e   :  { %v2606_v53 = vsel %vm2600_vm12, %v3738_v38, %v3739_v33  ;;  %3315 = vmatmul.mubr.msk.bf16.vlgmr.msra.gmra.mrb[60].mxu0 %vm2685_vm13, %v2642_v57 }
 0x49f   :  { %v2629_v35 = vmax.f32 %v2621_v27, 0.0  ;;  %v2622_v8 = vmax.f32 %v5406_v48, %v2606_v53 }
 0x4a1   :  { %v2630_v2 = vmax.f32 %v2622_v8, 0.0  ;;  %v2637_v32 = vsel %vm142_vm1, %v2629_v35, 0.0 }
 0x4a3   :  { %v2638_v5 = vsel %vm142_vm1, %v2630_v2, 0.0 }
 0x4a4   :  { %v2643_v14 = vpack.c.bf16 %v2638_v5, %v2637_v32 }
 0x4a6   :  { %3318 = vmatprep.mubr.msk.bf16.mxu0 %vm2685_vm13, %v2643_v14 }
 0x4ab   :  { %v3742_v45 = vpop.permute.xlu1 %3741 }
 0x4ac   :  { %v3744_v59 = vunpack.i.h.bf16 %v3742_v45  ;;  %v3743_v55 = vunpack.i.l.bf16 %v3742_v45 }
 0x4ad   :  { %v3747_v17 = vpop.permute.xlu0 %3746 }
 0x4ae   :  { %v2607_v9 = vsel %vm2600_vm12, %v3743_v55, %v3744_v59  ;;  %v3749_v61 = vunpack.i.h.bf16 %v3747_v17  ;;  %v3748_v28 = vunpack.i.l.bf16 %v3747_v17 }
 0x4af   :  { %v2623_v36 = vmax.f32 %v5416_v26, %v2607_v9 }
 0x4b0   :  { %v2608_v48 = vsel %vm2600_vm12, %v3748_v28, %v3749_v61 }
 0x4b1   :  { %v2631_v4 = vmax.f32 %v2623_v36, 0.0  ;;  %v2624_v37 = vmax.f32 %v5418_v56, %v2608_v48 }
 0x4b3   :  { %v2632_v49 = vmax.f32 %v2624_v37, 0.0  ;;  %v2639_v16 = vsel %vm142_vm1, %v2631_v4, 0.0 }
 0x4b5   :  { %v2640_v19 = vsel %vm142_vm1, %v2632_v49, 0.0  ;;  %vm3042_vm1 = vcmask 1042434  }
 0x4b6   :  { %v2644_v44 = vpack.c.bf16 %v2640_v19, %v2639_v16 }
 0x4b8   :  { %3319 = vmatmul.mubr.msk.bf16.gmra.mrb[64].mxu0 %vm2685_vm13, %v2644_v44 }
 0x571   :  { %v3316_v23 = vpop.f32.mrb[60].mxu0 }
 0x572   :  { %v5452_v10 = vpop.f32.mrb[61].mxu0  ;;  %v3281_v25 = vrot.slane %v3316_v23, 10  ;;  %v3273_v31 = vrot.slane %v3316_v23, 9  ;;  %v3289_v34 = vrot.slane %v3316_v23, 11  ;;  %v2766_v11 = vadd.f32 %v3316_v23, %v2763_v39 }
 0x573   :  { %v5454_v0 = vpop.f32.mrb[62].mxu0  ;;  %v3271_v56 = vrot.slane %v5452_v10, 9  ;;  %v3279_v42 = vrot.slane %v5452_v10, 10  ;;  %v3287_v43 = vrot.slane %v5452_v10, 11  ;;  %v2764_v27 = vadd.f32 %v2763_v39, %v5452_v10 }
 0x574   :  { %v5456_v26 = vpop.f32.mrb[63].mxu0  ;;  %2848 = vrot.lane.b32.xlu1 %v3281_v25, %s3953_s3  ;;  %2800 = vrot.lane.b32.xlu0 %v3273_v31, %s3954_s8  ;;  %v3274_v18 = vrot.slane %v5454_v0, 9  ;;  %v3282_v1 = vrot.slane %v5454_v0, 10  ;;  %v3290_v46 = vrot.slane %v5454_v0, 11  ;;  %v2767_v5 = vadd.f32 %v5454_v0, %v2763_v39 }
 0x575   :  { %v3272_v21 = vrot.slane %v5456_v26, 9  ;;  %v3280_v6 = vrot.slane %v5456_v26, 10  ;;  %v3288_v47 = vrot.slane %v5456_v26, 11  ;;  %v2765_v48 = vadd.f32 %v2763_v39, %v5456_v26 }
 0x578   :  { %2796 = vrot.lane.b32.xlu1 %v3271_v56, %s3954_s8  ;;  %2896 = vrot.lane.b32.xlu0 %v3289_v34, %s3955_s9 }
 0x57c   :  { %2844 = vrot.lane.b32.xlu1 %v3279_v42, %s3953_s3  ;;  %2802 = vrot.lane.b32.xlu0 %v3274_v18, %s3954_s8 }
 0x580   :  { %2892 = vrot.lane.b32.xlu1 %v3287_v43, %s3955_s9  ;;  %2850 = vrot.lane.b32.xlu0 %v3282_v1, %s3953_s3 }
 0x584   :  { %2798 = vrot.lane.b32.xlu1 %v3272_v21, %s3954_s8  ;;  %2898 = vrot.lane.b32.xlu0 %v3290_v46, %s3955_s9 }
 0x588   :  { %2846 = vrot.lane.b32.xlu1 %v3280_v6, %s3953_s3 }
 0x58b   :  { %v5478_v51 = vpop.f32.mrb[64].mxu0 }
 0x58c   :  { %2894 = vrot.lane.b32.xlu1 %v3288_v47, %s3955_s9  ;;  %v5481_v41 = vpop.f32.mrb[65].mxu0  ;;  %v3277_v29 = vrot.slane %v5478_v51, 9  ;;  %v3285_v52 = vrot.slane %v5478_v51, 10  ;;  %v3293_v50 = vrot.slane %v5478_v51, 11  ;;  %v2770_v1 = vadd.f32 %v5478_v51, %v2763_v39 }
 0x58d   :  { %v5484_v62 = vpop.f32.mrb[66].mxu0  ;;  %v3275_v12 = vrot.slane %v5481_v41, 9  ;;  %v3283_v20 = vrot.slane %v5481_v41, 10  ;;  %v3291_v22 = vrot.slane %v5481_v41, 11  ;;  %v2768_v31 = vadd.f32 %v2763_v39, %v5481_v41 }
 0x58e   :  { %2808 = vrot.lane.b32.xlu0 %v3277_v29, %s3954_s8  ;;  %v5487_v24 = vpop.f32.mrb[67].mxu0  ;;  %v3278_v30 = vrot.slane %v5484_v62, 9  ;;  %v3286_v60 = vrot.slane %v5484_v62, 10  ;;  %v3294_v7 = vrot.slane %v5484_v62, 11 }
 0x58f   :  { %v3276_v3 = vrot.slane %v5487_v24, 9  ;;  %v3284_v54 = vrot.slane %v5487_v24, 10  ;;  %v3292_v63 = vrot.slane %v5487_v24, 11  ;;  %v2769_v29 = vadd.f32 %v2763_v39, %v5487_v24 }
 0x590   :  { %2856 = vrot.lane.b32.xlu1 %v3285_v52, %s3953_s3 }
 0x592   :  { %2804 = vrot.lane.b32.xlu0 %v3275_v12, %s3954_s8 }
 0x594   :  { %2852 = vrot.lane.b32.xlu1 %v3283_v20, %s3953_s3 }
 0x596   :  { %2900 = vrot.lane.b32.xlu0 %v3291_v22, %s3955_s9  ;;  %v2771_v22 = vadd.f32 %v5484_v62, %v2763_v39 }
 0x598   :  { %2810 = vrot.lane.b32.xlu1 %v3278_v30, %s3954_s8 }
 0x59a   :  { %2806 = vrot.lane.b32.xlu0 %v3276_v3, %s3954_s8 }
 0x59c   :  { %2858 = vrot.lane.b32.xlu1 %v3286_v60, %s3953_s3 }
 0x59e   :  { %2854 = vrot.lane.b32.xlu0 %v3284_v54, %s3953_s3 }
 0x5a0   :  { %2904 = vrot.lane.b32.xlu1 %v3293_v50, %s3955_s9 }
 0x5a2   :  { %2902 = vrot.lane.b32.xlu0 %v3292_v63, %s3955_s9 }
 0x5a6   :  { %2906 = vrot.lane.b32.xlu0 %v3294_v7, %s3955_s9 }
 0x5e6   :  { %v2849_v15 = vpop.permute.xlu1 %2848  ;;  %v2801_v40 = vpop.permute.xlu0 %2800 }
 0x5e7   :  { %v2822_v13 = vadd.f32 %v2801_v40, %v2766_v11 }
 0x5e9   :  { %v2870_v57 = vadd.f32 %v2849_v15, %v2822_v13 }
 0x5ea   :  { %v2797_v58 = vpop.permute.xlu1 %2796  ;;  %v2897_v33 = vpop.permute.xlu0 %2896 }
 0x5eb   :  { %v5514_v38 = vadd.f32 %v2897_v33, %v2870_v57  ;;  %v2820_v2 = vadd.f32 %v2797_v58, %v2764_v27 }
 0x5ed   :  { %v2931_v53 = vsel %vm2924_vm14, %v5514_v38, -inf }
 0x5ee   :  { %v2845_v35 = vpop.permute.xlu1 %2844  ;;  %v2803_v8 = vpop.permute.xlu0 %2802  ;;  %2932 = vmax.xlane.f32.xlu0 %v2931_v53 }
 0x5ef   :  { %v2868_v32 = vadd.f32 %v2845_v35, %v2820_v2  ;;  %v2823_v59 = vadd.f32 %v2803_v8, %v2767_v5 }
 0x5f2   :  { %v2893_v14 = vpop.permute.xlu1 %2892  ;;  %v2851_v45 = vpop.permute.xlu0 %2850 }
 0x5f3   :  { %v2916_v55 = vadd.f32 %v2893_v14, %v2868_v32  ;;  %v2871_v17 = vadd.f32 %v2851_v45, %v2823_v59 }
 0x5f5   :  { %v2925_v9 = vsel %vm2924_vm14, %v2916_v55, -inf }
 0x5f6   :  { %v2799_v61 = vpop.permute.xlu1 %2798  ;;  %v2899_v28 = vpop.permute.xlu0 %2898  ;;  %2926 = vmax.xlane.f32.xlu0 %v2925_v9 }
 0x5f7   :  { %v2919_v36 = vadd.f32 %v2899_v28, %v2871_v17  ;;  %v2821_v49 = vadd.f32 %v2799_v61, %v2765_v48 }
 0x5f9   :  { %v2934_v4 = vsel %vm2924_vm14, %v2919_v36, -inf }
 0x5fa   :  { %v2847_v37 = vpop.permute.xlu1 %2846  ;;  %2935 = vmax.xlane.f32.xlu1 %v2934_v4 }
 0x5fb   :  { %v2869_v16 = vadd.f32 %v2847_v37, %v2821_v49 }
 0x5fe   :  { %v2895_v19 = vpop.permute.xlu1 %2894 }
 0x5ff   :  { %v2917_v44 = vadd.f32 %v2895_v19, %v2869_v16 }
 0x600   :  { %v2809_v23 = vpop.permute.xlu0 %2808 }
 0x601   :  { %v2928_v10 = vsel %vm2924_vm14, %v2917_v44, -inf  ;;  %v2826_v6 = vadd.f32 %v2809_v23, %v2770_v1 }
 0x602   :  { %v2857_v25 = vpop.permute.xlu1 %2856  ;;  %2929 = vmax.xlane.f32.xlu1 %v2928_v10 }
 0x603   :  { %v2874_v12 = vadd.f32 %v2857_v25, %v2826_v6 }
 0x604   :  { %v2805_v0 = vpop.permute.xlu0 %2804 }
 0x605   :  { %v2824_v56 = vadd.f32 %v2805_v0, %v2768_v31 }
 0x606   :  { %v2853_v34 = vpop.permute.xlu1 %2852 }
 0x607   :  { %v2872_v42 = vadd.f32 %v2853_v34, %v2824_v56 }
 0x608   :  { %v2901_v26 = vpop.permute.xlu0 %2900 }
 0x609   :  { %v2920_v18 = vadd.f32 %v2901_v26, %v2872_v42 }
 0x60a   :  { %v2811_v43 = vpop.permute.xlu1 %2810 }
 0x60b   :  { %v2937_v21 = vsel %vm2924_vm14, %v2920_v18, -inf  ;;  %v2827_v54 = vadd.f32 %v2811_v43, %v2771_v22 }
 0x60c   :  { %2938 = vmax.xlane.f32.xlu0 %v2937_v21  ;;  %v2807_v46 = vpop.permute.xlu0 %2806 }
 0x60d   :  { %v2825_v41 = vadd.f32 %v2807_v46, %v2769_v29 }
 0x60e   :  { %v2859_v47 = vpop.permute.xlu1 %2858 }
 0x60f   :  { %v2875_v63 = vadd.f32 %v2859_v47, %v2827_v54 }
 0x610   :  { %v2855_v52 = vpop.permute.xlu0 %2854 }
 0x611   :  { %v2873_v30 = vadd.f32 %v2855_v52, %v2825_v41 }
 0x612   :  { %v2905_v20 = vpop.permute.xlu1 %2904 }
 0x613   :  { %v2922_v3 = vadd.f32 %v2905_v20, %v2874_v12 }
 0x614   :  { %v2903_v60 = vpop.permute.xlu0 %2902 }
 0x615   :  { %v2921_v50 = vadd.f32 %v2903_v60, %v2873_v30  ;;  %v2943_v51 = vsel %vm2924_vm14, %v2922_v3, -inf }
 0x616   :  { %2944 = vmax.xlane.f32.xlu0 %v2943_v51 }
 0x617   :  { %v2940_v7 = vsel %vm2924_vm14, %v2921_v50, -inf }
 0x618   :  { %v2907_v11 = vpop.permute.xlu0 %2906  ;;  %2941 = vmax.xlane.f32.xlu1 %v2940_v7 }
 0x619   :  { %v2923_v24 = vadd.f32 %v2907_v11, %v2875_v63 }
 0x61b   :  { %v2946_v15 = vsel %vm2924_vm14, %v2923_v24, -inf }
 0x61c   :  { %2947 = vmax.xlane.f32.xlu1 %v2946_v15 }
 0x67b   :  { %v2933_v40 = vpop.xlane.xlu0 %2932 }
 0x67c   :  { %v5533_v62 = vsub.f32 %v5514_v38, %v2933_v40 }
 0x67e   :  { %v2961_v39 = vmul.f32 1.442695, %v5533_v62 }
 0x680   :  { %3897 = vpow2.f32 %v2961_v39 }
 0x683   :  { %v2927_v13 = vpop.xlane.xlu0 %2926 }
 0x684   :  { %v5536_v57 = vsub.f32 %v2916_v55, %v2927_v13 }
 0x686   :  { %v2957_v58 = vmul.f32 1.442695, %v5536_v57 }
 0x687   :  { %v2936_v33 = vpop.xlane.xlu1 %2935 }
 0x688   :  { %3899 = vpow2.f32 %v2957_v58  ;;  %v5539_v27 = vsub.f32 %v2919_v36, %v2936_v33 }
 0x68a   :  { %v3898_v53 = vpop.eup %3897  ;;  %v2963_v35 = vmul.f32 1.442695, %v5539_v27 }
 0x68b   :  { %v2979_v8 = vsel %vm2924_vm14, %v3898_v53, 0.0 }
 0x68c   :  { %3901 = vpow2.f32 %v2963_v35  ;;  %2980 = vadd.xlane.f32.xlu1 %v2979_v8 }
 0x68f   :  { %v2930_v38 = vpop.xlane.xlu1 %2929 }
 0x690   :  { %v5543_v2 = vsub.f32 %v2917_v44, %v2930_v38 }
 0x692   :  { %v3900_v32 = vpop.eup %3899  ;;  %v2959_v5 = vmul.f32 1.442695, %v5543_v2 }
 0x693   :  { %v2973_v14 = vsel %vm2924_vm14, %v3900_v32, 0.0 }
 0x694   :  { %3903 = vpow2.f32 %v2959_v5  ;;  %2974 = vadd.xlane.f32.xlu0 %v2973_v14 }
 0x696   :  { %v3902_v45 = vpop.eup %3901 }
 0x697   :  { %v2982_v59 = vsel %vm2924_vm14, %v3902_v45, 0.0 }
 0x698   :  { %2983 = vadd.xlane.f32.xlu1 %v2982_v59 }
 0x699   :  { %v2939_v55 = vpop.xlane.xlu0 %2938 }
 0x69a   :  { %v5548_v17 = vsub.f32 %v2920_v18, %v2939_v55 }
 0x69c   :  { %v2965_v9 = vmul.f32 1.442695, %v5548_v17 }
 0x69e   :  { %v3904_v61 = vpop.eup %3903  ;;  %3905 = vpow2.f32 %v2965_v9 }
 0x69f   :  { %v2976_v28 = vsel %vm2924_vm14, %v3904_v61, 0.0 }
 0x6a0   :  { %2977 = vadd.xlane.f32.xlu0 %v2976_v28 }
 0x6a3   :  { %v2945_v36 = vpop.xlane.xlu0 %2944 }
 0x6a4   :  { %v5552_v48 = vsub.f32 %v2922_v3, %v2945_v36 }
 0x6a5   :  { %v2942_v4 = vpop.xlane.xlu1 %2941 }
 0x6a6   :  { %v2969_v37 = vmul.f32 1.442695, %v5552_v48  ;;  %v5555_v49 = vsub.f32 %v2921_v50, %v2942_v4 }
 0x6a8   :  { %v3906_v16 = vpop.eup %3905  ;;  %3907 = vpow2.f32 %v2969_v37  ;;  %v2967_v19 = vmul.f32 1.442695, %v5555_v49 }
 0x6a9   :  { %v2948_v44 = vpop.xlane.xlu1 %2947  ;;  %v2985_v23 = vsel %vm2924_vm14, %v3906_v16, 0.0 }
 0x6aa   :  { %3909 = vpow2.f32 %v2967_v19  ;;  %v5559_v10 = vsub.f32 %v2923_v24, %v2948_v44  ;;  %2986 = vadd.xlane.f32.xlu0 %v2985_v23 }
 0x6ac   :  { %v2971_v25 = vmul.f32 1.442695, %v5559_v10 }
 0x6ae   :  { %3911 = vpow2.f32 %v2971_v25 }
 0x6b2   :  { %v3908_v31 = vpop.eup %3907 }
 0x6b3   :  { %v2991_v0 = vsel %vm2924_vm14, %v3908_v31, 0.0 }
 0x6b4   :  { %v3910_v56 = vpop.eup %3909  ;;  %2992 = vadd.xlane.f32.xlu0 %v2991_v0 }
 0x6b5   :  { %v2988_v34 = vsel %vm2924_vm14, %v3910_v56, 0.0 }
 0x6b6   :  { %2989 = vadd.xlane.f32.xlu1 %v2988_v34 }
 0x6b8   :  { %v3912_v42 = vpop.eup %3911 }
 0x6b9   :  { %v2994_v26 = vsel %vm2924_vm14, %v3912_v42, 0.0 }
 0x6ba   :  { %2995 = vadd.xlane.f32.xlu1 %v2994_v26 }
 0x719   :  { %v2981_v1 = vpop.xlane.xlu1 %2980 }
 0x721   :  { %v2975_v18 = vpop.xlane.xlu0 %2974 }
 0x725   :  { %v2984_v21 = vpop.xlane.xlu1 %2983 }
 0x72d   :  { %v2978_v43 = vpop.xlane.xlu0 %2977 }
 0x72e   :  { %3913 = vlog2.f32 %v2978_v43 }
 0x72f   :  { %3915 = vlog2.f32 %v2981_v1 }
 0x730   :  { %3917 = vlog2.f32 %v2975_v18 }
 0x737   :  { %v2987_v46 = vpop.xlane.xlu0 %2986 }
 0x738   :  { %3919 = vlog2.f32 %v2987_v46  ;;  %v3914_v6 = vpop.eup %3913 }
 0x739   :  { %3921 = vlog2.f32 %v2984_v21  ;;  %v3000_v47 = vmul.f32 0.6931472, %v3914_v6  ;;  %v3916_v29 = vpop.eup %3915 }
 0x73a   :  { %v3918_v12 = vpop.eup %3917  ;;  %v3002_v3 = vmul.f32 0.6931472, %v3916_v29 }
 0x73b   :  { %v3014_v20 = vsub.f32 %v5543_v2, %v3000_v47  ;;  %v2998_v60 = vmul.f32 0.6931472, %v3918_v12 }
 0x73c   :  { %v3015_v7 = vsub.f32 %v5533_v62, %v3002_v3 }
 0x73d   :  { %v3023_v51 = vsel %vm3021_vm15, %v3014_v20, 0.0  ;;  %v3013_v11 = vsub.f32 %v5536_v57, %v2998_v60 }
 0x73e   :  { %v3038_v24 = vrot.slane %v3023_v51, 7  ;;  %v3024_v13 = vsel %vm3021_vm15, %v3015_v7, 0.0 }
 0x73f   :  { %v3022_v58 = vsel %vm3021_vm15, %v3013_v11, 0.0  ;;  %v3041_v8 = vrot.slane %v3024_v13, 6 }
 0x740   :  { %v3040_v35 = vsel %vm3039_vm0, %v3038_v24, %v3022_v58 }
 0x741   :  { %v2993_v52 = vpop.xlane.xlu0 %2992  ;;  %v3043_v32 = vsel %vm3042_vm1, %v3041_v8, %v3040_v35 }
 0x742   :  { %3923 = vlog2.f32 %v2993_v52  ;;  %v3920_v41 = vpop.eup %3919 }
 0x743   :  { %v2990_v22 = vpop.xlane.xlu1 %2989  ;;  %v3922_v30 = vpop.eup %3921  ;;  %v3006_v54 = vmul.f32 0.6931472, %v3920_v41 }
 0x744   :  { %3925 = vlog2.f32 %v2990_v22  ;;  %v3004_v50 = vmul.f32 0.6931472, %v3922_v30 }
 0x745   :  { %v3017_v15 = vsub.f32 %v5548_v17, %v3006_v54 }
 0x746   :  { %v3016_v40 = vsub.f32 %v5539_v27, %v3004_v50 }
 0x747   :  { %v2996_v63 = vpop.xlane.xlu1 %2995  ;;  %v3026_v62 = vsel %vm3021_vm15, %v3017_v15, 0.0 }
 0x748   :  { %3927 = vlog2.f32 %v2996_v63  ;;  %v3025_v57 = vsel %vm3021_vm15, %v3016_v40, 0.0  ;;  %v3047_v27 = vrot.slane %v3026_v62, 4 }
 0x749   :  { %v3044_v45 = vrot.slane %v3025_v57, 5 }
 0x74b   :  { %v3046_v17 = vsel %vm3045_vm2, %v3044_v45, %v3043_v32 }
 0x74c   :  { %v3924_v39 = vpop.eup %3923  ;;  %v3049_v28 = vsel %vm3048_vm3, %v3047_v27, %v3046_v17 }
 0x74d   :  { %v3010_v33 = vmul.f32 0.6931472, %v3924_v39 }
 0x74e   :  { %v3926_v53 = vpop.eup %3925 }
 0x74f   :  { %v3008_v38 = vmul.f32 0.6931472, %v3926_v53  ;;  %v3019_v2 = vsub.f32 %v5552_v48, %v3010_v33 }
 0x751   :  { %v3018_v5 = vsub.f32 %v5555_v49, %v3008_v38  ;;  %v3028_v9 = vsel %vm3021_vm15, %v3019_v2, 0.0 }
 0x752   :  { %v3928_v14 = vpop.eup %3927  ;;  %v3053_v4 = vrot.slane %v3028_v9, 2 }
 0x753   :  { %v3027_v59 = vsel %vm3021_vm15, %v3018_v5, 0.0  ;;  %v3012_v55 = vmul.f32 0.6931472, %v3928_v14 }
 0x754   :  { %v3050_v61 = vrot.slane %v3027_v59, 3 }
 0x755   :  { %v3020_v36 = vsub.f32 %v5559_v10, %v3012_v55 }
 0x756   :  { %v3052_v48 = vsel %vm3051_vm4, %v3050_v61, %v3049_v28 }
 0x757   :  { %v3029_v37 = vsel %vm3021_vm15, %v3020_v36, 0.0  ;;  %v3055_v16 = vsel %vm3054_vm5, %v3053_v4, %v3052_v48 }
 0x758   :  { %v3056_v49 = vrot.slane %v3029_v37, 1 }
 0x75a   :  { %v3058_v19 = vsel %vm3057_vm6, %v3056_v49, %v3055_v16 }
 0x75b   :  { %3060 = vst [vmem:[%s5589_s5] sm:$0xff] %v3058_v19 }

</bundles_post_ra>
